<compile_context>
chip_gen: v7x
topology: tpu7x:2x2x1
jax: 0.10.0
libtpu: 0.0.40
codegen_flags: <defaults>
</compile_context>

<pallas_src>
import numpy as np
import jax
import jax.numpy as jnp
from jax.experimental import pallas as pl
from jax.experimental.pallas import tpu as pltpu


# VGG16 features[:28] structure (channel widths scaled down by 8x).
VGG9_CFG = (8, 8, "M", 16, 16, "M", 32, 32, 32, "M", 64, 64, 64, "M", 64, 64)


# --------------------------------------------------------------------------- #
# parameter / plan preparation (plain JAX, tiny, constant-folded under jit)
# --------------------------------------------------------------------------- #

def init_vgg9_params(key, cfg=VGG9_CFG, in_ch=3):
    """Synthetic He-init conv weights: (3, 3, Cin, Cout) + (Cout,) per conv."""
    params = []
    for item in cfg:
        if item == "M":
            continue
        key, kw_, kb_ = jax.random.split(key, 3)
        fan_in = 9 * in_ch
        w = jax.random.normal(kw_, (3, 3, in_ch, item), jnp.float32) * (2.0 / fan_in) ** 0.5
        b = jax.random.normal(kb_, (item,), jnp.float32) * 0.01
        params.append((w, b))
        in_ch = item
    return params


def _make_plan(cfg, H0, W0, C0):
    """Execution plan: ('conv', H, W, Cin, Cout) / ('pool', H, W, C)."""
    plan = []
    H, W, C = H0, W0, C0
    for item in cfg:
        if item == "M":
            assert H % 2 == 0 and W % 2 == 0
            plan.append(("pool", H, W, C))
            H, W = H // 2, W // 2
        else:
            plan.append(("conv", H, W, C, int(item)))
            C = int(item)
    return plan, C


def _banded_taps(w, W):
    """(3, 3, Cin, Cout) conv weight -> (3, W*Cin, W*Cout) banded matmul weights.

    bw[kh, wp*Cin + ci, w*Cout + co] = w[kh, (wp - w) + 1, ci, co] if |wp - w| <= 1
                                       0                           otherwise
    so (row-flattened activation) @ bw[kh] realizes the three horizontal taps of
    the 3x3 conv (with zero 'same' padding) for vertical offset kh - 1.
    """
    Cin, Cout = int(w.shape[2]), int(w.shape[3])
    kw = np.arange(3)[:, None, None]
    wp = np.arange(W)[None, :, None]
    wo = np.arange(W)[None, None, :]
    sel = (wp - wo == kw - 1).astype(np.float32)                  # (3, W, W)
    bw = jnp.einsum("kpw,hkcd->hpcwd", jnp.asarray(sel, w.dtype), w)
    return bw.reshape(3, W * Cin, W * Cout)


# --------------------------------------------------------------------------- #
# in-kernel helpers
# --------------------------------------------------------------------------- #

def _maxpool2x2(y, H, W, C):
    """(H, W*C) -> (H//2, (W//2)*C), 2x2/stride-2 max-pool via 0/1 selection matmuls."""
    assert C & (C - 1) == 0, "channel count must be a power of two"
    s = int(C).bit_length() - 1
    WC, WoC = W * C, (W // 2) * C

    i = jax.lax.broadcasted_iota(jnp.int32, (WC, WoC), 0)
    j = jax.lax.broadcasted_iota(jnp.int32, (WC, WoC), 1)
    same_c = (i & (C - 1)) == (j & (C - 1))
    ib, jb = i >> s, j >> s
    sel0 = jnp.where(same_c & (ib == 2 * jb), 1.0, 0.0)           # picks column 2*wo
    sel1 = jnp.where(same_c & (ib == 2 * jb + 1), 1.0, 0.0)       # picks column 2*wo+1
    hp = jnp.maximum(
        jnp.dot(y, sel0, preferred_element_type=jnp.float32),
        jnp.dot(y, sel1, preferred_element_type=jnp.float32))

    ii = jax.lax.broadcasted_iota(jnp.int32, (H // 2, H), 0)
    jj = jax.lax.broadcasted_iota(jnp.int32, (H // 2, H), 1)
    r0 = jnp.where(jj == 2 * ii, 1.0, 0.0)                        # picks row 2*ho
    r1 = jnp.where(jj == 2 * ii + 1, 1.0, 0.0)                    # picks row 2*ho+1
    return jnp.maximum(
        jnp.dot(r0, hp, preferred_element_type=jnp.float32),
        jnp.dot(r1, hp, preferred_element_type=jnp.float32))


def _build_vgg9_kernel(plan, c_last):
    n_conv = sum(1 for op in plan if op[0] == "conv")
    H0, W0, C0 = plan[0][1], plan[0][2], plan[0][3]

    def _stage(buf, act, H, WC):
        # activation rows [1, H] plus zero top/bottom halo rows; every read of this
        # region is the static slice buf[kh:kh+H, 0:WC], kh in {0, 1, 2}.
        zrow = jnp.zeros((1, WC), jnp.float32)
        buf[0:1, 0:WC] = zrow
        buf[H + 1:H + 2, 0:WC] = zrow
        buf[1:H + 1, 0:WC] = act

    def kernel(*refs):
        x_ref = refs[0]
        w_refs = [refs[1 + 2 * i] for i in range(n_conv)]
        b_refs = [refs[2 + 2 * i] for i in range(n_conv)]
        o_ref = refs[1 + 2 * n_conv]
        bufs = [refs[2 + 2 * n_conv], refs[3 + 2 * n_conv]]

        _stage(bufs[0], x_ref[0], H0, W0 * C0)

        cur, ci = 0, 0
        y = None
        Hn = Wn = Cn = None
        for idx, op in enumerate(plan):
            if op[0] == "conv":
                _, H, W, Cin, Cout = op
                WCin, WCout = W * Cin, W * Cout
                src = bufs[cur]
                acc = jnp.zeros((H, WCout), jnp.float32)
                for kh in range(3):                                # 3 MXU matmuls / conv
                    lhs = src[kh:kh + H, 0:WCin].astype(jnp.bfloat16)
                    acc = acc + jnp.dot(lhs, w_refs[ci][kh],
                                        preferred_element_type=jnp.float32)
                y = jnp.maximum(acc + b_refs[ci][...], 0.0)        # bias + ReLU in f32
                Hn, Wn, Cn = H, W, Cout
                ci += 1
            else:                                                  # fused 2x2 max-pool
                _, H, W, C = op
                y = _maxpool2x2(y, H, W, C)
                Hn, Wn, Cn = H // 2, W // 2, C

            next_is_conv = idx + 1 < len(plan) and plan[idx + 1][0] == "conv"
            if next_is_conv:                                       # ping-pong VMEM buffers
                cur = 1 - cur
                _stage(bufs[cur], y, Hn, Wn * Cn)

        # features output y has layout (H, W*C); pixel (0,0) == row 0, cols [0, C)
        # which equals y[:, :, 0, 0] of the NCHW reference.
        o_ref[0] = y[0:1, 0:c_last].astype(o_ref.dtype)

    return kernel


# --------------------------------------------------------------------------- #
# public wrapper
# --------------------------------------------------------------------------- #

def vgg9_forward(x_nchw, params, cfg=VGG9_CFG):
    """Equivalent of VGG9.forward: y = features(x); return y[:, :, 0, 0]."""
    N, Cin0, H0, W0 = (int(d) for d in x_nchw.shape)
    C0 = max(8, ((Cin0 + 7) // 8) * 8)        # pad input channels to a lane-friendly chunk

    # NCHW -> NHWC -> row-flattened (N, H, W*C0)   (lane index = w*C0 + c)
    x = jnp.transpose(x_nchw, (0, 2, 3, 1)).astype(jnp.float32)
    x = jnp.pad(x, ((0, 0), (0, 0), (0, 0), (0, C0 - Cin0)))
    x = x.reshape(N, H0, W0 * C0)

    plan, c_last = _make_plan(cfg, H0, W0, C0)

    inputs = [x]
    in_specs = [pl.BlockSpec((1, H0, W0 * C0), lambda n: (n, 0, 0))]
    pi = 0
    for op in plan:
        if op[0] != "conv":
            continue
        _, H, W, Cin, Cout = op
        w, b = params[pi]
        pi += 1
        if int(w.shape[2]) != Cin:            # first layer: zero-pad Cin (e.g. 3 -> 8)
            w = jnp.pad(w, ((0, 0), (0, 0), (0, Cin - int(w.shape[2])), (0, 0)))
        bw = _banded_taps(w, W).astype(jnp.bfloat16)               # bf16 MXU inputs
        brow = jnp.tile(b.astype(jnp.float32), W).reshape(1, W * Cout)
        inputs += [bw, brow]
        in_specs += [pl.BlockSpec(bw.shape, lambda n: (0, 0, 0)),
                     pl.BlockSpec(brow.shape, lambda n: (0, 0))]

    max_rows = ((max(op[1] for op in plan) + 2 + 7) // 8) * 8      # tallest layer + halo
    max_cols = ((max(op[2] * op[3] for op in plan) + 127) // 128) * 128

    out = pl.pallas_call(
        _build_vgg9_kernel(plan, c_last),
        out_shape=jax.ShapeDtypeStruct((N, 1, c_last), jnp.float32),
        grid_spec=pltpu.PrefetchScalarGridSpec(
            num_scalar_prefetch=0,
            grid=(N,),
            in_specs=in_specs,
            out_specs=pl.BlockSpec((1, 1, c_last), lambda n: (n, 0, 0)),
            scratch_shapes=[pltpu.VMEM((max_rows, max_cols), jnp.float32),
                            pltpu.VMEM((max_rows, max_cols), jnp.float32)],
        ),
        compiler_params=pltpu.CompilerParams(
            dimension_semantics=("parallel",),
            vmem_limit_bytes=32 * 1024 * 1024,
        ),
    )(*inputs)
    return out.reshape(N, c_last)


# --------------------------------------------------------------------------- #
# plain-XLA reference (for a loose sanity check)
# --------------------------------------------------------------------------- #

def _vgg9_reference(x_nchw, params, cfg=VGG9_CFG):
    x = jnp.transpose(x_nchw, (0, 2, 3, 1)).astype(jnp.float32)
    pi = 0
    for item in cfg:
        if item == "M":
            x = jnp.maximum(
                jnp.maximum(x[:, 0::2, 0::2, :], x[:, 0::2, 1::2, :]),
                jnp.maximum(x[:, 1::2, 0::2, :], x[:, 1::2, 1::2, :]))
        else:
            w, b = params[pi]
            pi += 1
            x = jax.lax.conv_general_dilated(
                x, w, window_strides=(1, 1), padding="SAME",
                dimension_numbers=("NHWC", "HWIO", "NHWC"))
            x = jnp.maximum(x + b, 0.0)
    return x[:, 0, 0, :]


if __name__ == "__main__":
    key = jax.random.PRNGKey(0)
    kx, kp = jax.random.split(key)
    x = jax.random.normal(kx, (2, 3, 16, 16), jnp.float32)        # NCHW, like PyTorch
    params = init_vgg9_params(kp)

    fwd = jax.jit(lambda xx: vgg9_forward(xx, params))
    y = fwd(x)
    jax.block_until_ready(y)
    assert y.shape == (2, VGG9_CFG[-1]), y.shape

    # loose aggregate check vs plain XLA (kernel matmul inputs are bf16)
    y_ref = jax.jit(lambda xx: _vgg9_reference(xx, params))(x)
    jax.block_until_ready(y_ref)
    rel = float(jnp.linalg.norm(y - y_ref) / (jnp.linalg.norm(y_ref) + 1e-6))
    assert rel < 0.1, f"relative error too large: {rel}"

    print("KERNEL_OK")
</pallas_src>

<mosaic_0001>
module attributes {stable_mosaic.version = 11 : i64} {
  func.func @kernel(%arg0: i32, %arg1: memref<1x16x128xf32, #tpu.memory_space<vmem>>, %arg2: memref<3x128x128xbf16, #tpu.memory_space<vmem>>, %arg3: memref<1x128xf32, #tpu.memory_space<vmem>>, %arg4: memref<3x128x128xbf16, #tpu.memory_space<vmem>>, %arg5: memref<1x128xf32, #tpu.memory_space<vmem>>, %arg6: memref<3x64x128xbf16, #tpu.memory_space<vmem>>, %arg7: memref<1x128xf32, #tpu.memory_space<vmem>>, %arg8: memref<3x128x128xbf16, #tpu.memory_space<vmem>>, %arg9: memref<1x128xf32, #tpu.memory_space<vmem>>, %arg10: memref<3x64x128xbf16, #tpu.memory_space<vmem>>, %arg11: memref<1x128xf32, #tpu.memory_space<vmem>>, %arg12: memref<3x128x128xbf16, #tpu.memory_space<vmem>>, %arg13: memref<1x128xf32, #tpu.memory_space<vmem>>, %arg14: memref<3x128x128xbf16, #tpu.memory_space<vmem>>, %arg15: memref<1x128xf32, #tpu.memory_space<vmem>>, %arg16: memref<3x64x128xbf16, #tpu.memory_space<vmem>>, %arg17: memref<1x128xf32, #tpu.memory_space<vmem>>, %arg18: memref<3x128x128xbf16, #tpu.memory_space<vmem>>, %arg19: memref<1x128xf32, #tpu.memory_space<vmem>>, %arg20: memref<3x128x128xbf16, #tpu.memory_space<vmem>>, %arg21: memref<1x128xf32, #tpu.memory_space<vmem>>, %arg22: memref<3x64x64xbf16, #tpu.memory_space<vmem>>, %arg23: memref<1x64xf32, #tpu.memory_space<vmem>>, %arg24: memref<3x64x64xbf16, #tpu.memory_space<vmem>>, %arg25: memref<1x64xf32, #tpu.memory_space<vmem>>, %arg26: memref<1x1x64xf32, #tpu.memory_space<vmem>>, %arg27: memref<24x128xf32, #tpu.memory_space<vmem>>, %arg28: memref<24x128xf32, #tpu.memory_space<vmem>>) attributes {dimension_semantics = [#tpu.dimension_semantics<parallel>], iteration_bounds = array<i64: 2>, scalar_prefetch = 0 : i64, scratch_operands = 2 : i64, tpu.core_type = #tpu.core_type<tc>, window_params = [{transform_indices = @transform_0, window_bounds = array<i64: 1, 16, 128>}, {pipeline_mode = #tpu.pipeline_mode<synchronous>, transform_indices = @transform_1, window_bounds = array<i64: 3, 128, 128>}, {pipeline_mode = #tpu.pipeline_mode<synchronous>, transform_indices = @transform_2, window_bounds = array<i64: 1, 128>}, {pipeline_mode = #tpu.pipeline_mode<synchronous>, transform_indices = @transform_3, window_bounds = array<i64: 3, 128, 128>}, {pipeline_mode = #tpu.pipeline_mode<synchronous>, transform_indices = @transform_4, window_bounds = array<i64: 1, 128>}, {pipeline_mode = #tpu.pipeline_mode<synchronous>, transform_indices = @transform_5, window_bounds = array<i64: 3, 64, 128>}, {pipeline_mode = #tpu.pipeline_mode<synchronous>, transform_indices = @transform_6, window_bounds = array<i64: 1, 128>}, {pipeline_mode = #tpu.pipeline_mode<synchronous>, transform_indices = @transform_7, window_bounds = array<i64: 3, 128, 128>}, {pipeline_mode = #tpu.pipeline_mode<synchronous>, transform_indices = @transform_8, window_bounds = array<i64: 1, 128>}, {pipeline_mode = #tpu.pipeline_mode<synchronous>, transform_indices = @transform_9, window_bounds = array<i64: 3, 64, 128>}, {pipeline_mode = #tpu.pipeline_mode<synchronous>, transform_indices = @transform_10, window_bounds = array<i64: 1, 128>}, {pipeline_mode = #tpu.pipeline_mode<synchronous>, transform_indices = @transform_11, window_bounds = array<i64: 3, 128, 128>}, {pipeline_mode = #tpu.pipeline_mode<synchronous>, transform_indices = @transform_12, window_bounds = array<i64: 1, 128>}, {pipeline_mode = #tpu.pipeline_mode<synchronous>, transform_indices = @transform_13, window_bounds = array<i64: 3, 128, 128>}, {pipeline_mode = #tpu.pipeline_mode<synchronous>, transform_indices = @transform_14, window_bounds = array<i64: 1, 128>}, {pipeline_mode = #tpu.pipeline_mode<synchronous>, transform_indices = @transform_15, window_bounds = array<i64: 3, 64, 128>}, {pipeline_mode = #tpu.pipeline_mode<synchronous>, transform_indices = @transform_16, window_bounds = array<i64: 1, 128>}, {pipeline_mode = #tpu.pipeline_mode<synchronous>, transform_indices = @transform_17, window_bounds = array<i64: 3, 128, 128>}, {pipeline_mode = #tpu.pipeline_mode<synchronous>, transform_indices = @transform_18, window_bounds = array<i64: 1, 128>}, {pipeline_mode = #tpu.pipeline_mode<synchronous>, transform_indices = @transform_19, window_bounds = array<i64: 3, 128, 128>}, {pipeline_mode = #tpu.pipeline_mode<synchronous>, transform_indices = @transform_20, window_bounds = array<i64: 1, 128>}, {pipeline_mode = #tpu.pipeline_mode<synchronous>, transform_indices = @transform_21, window_bounds = array<i64: 3, 64, 64>}, {pipeline_mode = #tpu.pipeline_mode<synchronous>, transform_indices = @transform_22, window_bounds = array<i64: 1, 64>}, {pipeline_mode = #tpu.pipeline_mode<synchronous>, transform_indices = @transform_23, window_bounds = array<i64: 3, 64, 64>}, {pipeline_mode = #tpu.pipeline_mode<synchronous>, transform_indices = @transform_24, window_bounds = array<i64: 1, 64>}, {transform_indices = @transform_25, window_bounds = array<i64: 1, 1, 64>}]} {
    %c0 = arith.constant 0 : index
    %c0_0 = arith.constant 0 : index
    %c0_1 = arith.constant 0 : index
    %0 = vector.load %arg1[%c0, %c0_0, %c0_1] : memref<1x16x128xf32, #tpu.memory_space<vmem>>, vector<1x16x128xf32>
    %1 = vector.shape_cast %0 : vector<1x16x128xf32> to vector<16x128xf32>
    %cst = arith.constant 0.000000e+00 : f32
    %2 = vector.broadcast %cst : f32 to vector<1x128xf32>
    %c0_2 = arith.constant 0 : index
    %c0_3 = arith.constant 0 : index
    %3 = vector.load %arg27[%c0_2, %c0_3] : memref<24x128xf32, #tpu.memory_space<vmem>>, vector<1x128xf32>
    tpu.vector_store %arg27[%c0_2, %c0_3], %2 {strides = array<i32>} : memref<24x128xf32, #tpu.memory_space<vmem>>, vector<1x128xf32>,
    %c17 = arith.constant 17 : index
    %c0_4 = arith.constant 0 : index
    %4 = vector.load %arg27[%c17, %c0_4] : memref<24x128xf32, #tpu.memory_space<vmem>>, vector<1x128xf32>
    tpu.vector_store %arg27[%c17, %c0_4], %2 {strides = array<i32>} : memref<24x128xf32, #tpu.memory_space<vmem>>, vector<1x128xf32>,
    %c1 = arith.constant 1 : index
    %c0_5 = arith.constant 0 : index
    %5 = vector.load %arg27[%c1, %c0_5] : memref<24x128xf32, #tpu.memory_space<vmem>>, vector<16x128xf32>
    tpu.vector_store %arg27[%c1, %c0_5], %1 {strides = array<i32>} : memref<24x128xf32, #tpu.memory_space<vmem>>, vector<16x128xf32>,
    %cst_6 = arith.constant 0.000000e+00 : f32
    %6 = vector.broadcast %cst_6 : f32 to vector<16x128xf32>
    %c0_7 = arith.constant 0 : index
    %c0_8 = arith.constant 0 : index
    %7 = vector.load %arg27[%c0_7, %c0_8] : memref<24x128xf32, #tpu.memory_space<vmem>>, vector<16x128xf32>
    %8 = arith.truncf %7 : vector<16x128xf32> to vector<16x128xbf16>
    %c0_9 = arith.constant 0 : index
    %c0_10 = arith.constant 0 : index
    %c0_11 = arith.constant 0 : index
    %9 = vector.load %arg2[%c0_9, %c0_10, %c0_11] : memref<3x128x128xbf16, #tpu.memory_space<vmem>>, vector<1x128x128xbf16>
    %10 = vector.shape_cast %9 : vector<1x128x128xbf16> to vector<128x128xbf16>
    %cst_12 = arith.constant dense<0.000000e+00> : vector<16x128xf32>
    %11 = tpu.matmul %8, %10, %cst_12 {dimension_numbers = #tpu.dot_dimension_numbers<[1], [0], [0], [1], [0, 0, 1, 1], [], []>} : vector<16x128xbf16>, vector<128x128xbf16>, vector<16x128xf32> -> vector<16x128xf32>
    %12 = arith.addf %6, %11 : vector<16x128xf32>
    %c1_13 = arith.constant 1 : index
    %c0_14 = arith.constant 0 : index
    %13 = vector.load %arg27[%c1_13, %c0_14] : memref<24x128xf32, #tpu.memory_space<vmem>>, vector<16x128xf32>
    %14 = arith.truncf %13 : vector<16x128xf32> to vector<16x128xbf16>
    %c1_15 = arith.constant 1 : index
    %c0_16 = arith.constant 0 : index
    %c0_17 = arith.constant 0 : index
    %15 = vector.load %arg2[%c1_15, %c0_16, %c0_17] : memref<3x128x128xbf16, #tpu.memory_space<vmem>>, vector<1x128x128xbf16>
    %16 = vector.shape_cast %15 : vector<1x128x128xbf16> to vector<128x128xbf16>
    %cst_18 = arith.constant dense<0.000000e+00> : vector<16x128xf32>
    %17 = tpu.matmul %14, %16, %cst_18 {dimension_numbers = #tpu.dot_dimension_numbers<[1], [0], [0], [1], [0, 0, 1, 1], [], []>} : vector<16x128xbf16>, vector<128x128xbf16>, vector<16x128xf32> -> vector<16x128xf32>
    %18 = arith.addf %12, %17 : vector<16x128xf32>
    %c2 = arith.constant 2 : index
    %c0_19 = arith.constant 0 : index
    %19 = vector.load %arg27[%c2, %c0_19] : memref<24x128xf32, #tpu.memory_space<vmem>>, vector<16x128xf32>
    %20 = arith.truncf %19 : vector<16x128xf32> to vector<16x128xbf16>
    %c2_20 = arith.constant 2 : index
    %c0_21 = arith.constant 0 : index
    %c0_22 = arith.constant 0 : index
    %21 = vector.load %arg2[%c2_20, %c0_21, %c0_22] : memref<3x128x128xbf16, #tpu.memory_space<vmem>>, vector<1x128x128xbf16>
    %22 = vector.shape_cast %21 : vector<1x128x128xbf16> to vector<128x128xbf16>
    %cst_23 = arith.constant dense<0.000000e+00> : vector<16x128xf32>
    %23 = tpu.matmul %20, %22, %cst_23 {dimension_numbers = #tpu.dot_dimension_numbers<[1], [0], [0], [1], [0, 0, 1, 1], [], []>} : vector<16x128xbf16>, vector<128x128xbf16>, vector<16x128xf32> -> vector<16x128xf32>
    %24 = arith.addf %18, %23 : vector<16x128xf32>
    %c0_24 = arith.constant 0 : index
    %c0_25 = arith.constant 0 : index
    %25 = vector.load %arg3[%c0_24, %c0_25] : memref<1x128xf32, #tpu.memory_space<vmem>>, vector<1x128xf32>
    %26 = vector.broadcast %25 : vector<1x128xf32> to vector<16x128xf32>
    %27 = arith.addf %24, %26 : vector<16x128xf32>
    %cst_26 = arith.constant 0.000000e+00 : f32
    %28 = vector.broadcast %cst_26 : f32 to vector<16x128xf32>
    %29 = arith.maximumf %27, %28 : vector<16x128xf32>
    %cst_27 = arith.constant 0.000000e+00 : f32
    %30 = vector.broadcast %cst_27 : f32 to vector<1x128xf32>
    %c0_28 = arith.constant 0 : index
    %c0_29 = arith.constant 0 : index
    %31 = vector.load %arg28[%c0_28, %c0_29] : memref<24x128xf32, #tpu.memory_space<vmem>>, vector<1x128xf32>
    tpu.vector_store %arg28[%c0_28, %c0_29], %30 {strides = array<i32>} : memref<24x128xf32, #tpu.memory_space<vmem>>, vector<1x128xf32>,
    %c17_30 = arith.constant 17 : index
    %c0_31 = arith.constant 0 : index
    %32 = vector.load %arg28[%c17_30, %c0_31] : memref<24x128xf32, #tpu.memory_space<vmem>>, vector<1x128xf32>
    tpu.vector_store %arg28[%c17_30, %c0_31], %30 {strides = array<i32>} : memref<24x128xf32, #tpu.memory_space<vmem>>, vector<1x128xf32>,
    %c1_32 = arith.constant 1 : index
    %c0_33 = arith.constant 0 : index
    %33 = vector.load %arg28[%c1_32, %c0_33] : memref<24x128xf32, #tpu.memory_space<vmem>>, vector<16x128xf32>
    tpu.vector_store %arg28[%c1_32, %c0_33], %29 {strides = array<i32>} : memref<24x128xf32, #tpu.memory_space<vmem>>, vector<16x128xf32>,
    %cst_34 = arith.constant 0.000000e+00 : f32
    %34 = vector.broadcast %cst_34 : f32 to vector<16x128xf32>
    %c0_35 = arith.constant 0 : index
    %c0_36 = arith.constant 0 : index
    %35 = vector.load %arg28[%c0_35, %c0_36] : memref<24x128xf32, #tpu.memory_space<vmem>>, vector<16x128xf32>
    %36 = arith.truncf %35 : vector<16x128xf32> to vector<16x128xbf16>
    %c0_37 = arith.constant 0 : index
    %c0_38 = arith.constant 0 : index
    %c0_39 = arith.constant 0 : index
    %37 = vector.load %arg4[%c0_37, %c0_38, %c0_39] : memref<3x128x128xbf16, #tpu.memory_space<vmem>>, vector<1x128x128xbf16>
    %38 = vector.shape_cast %37 : vector<1x128x128xbf16> to vector<128x128xbf16>
    %cst_40 = arith.constant dense<0.000000e+00> : vector<16x128xf32>
    %39 = tpu.matmul %36, %38, %cst_40 {dimension_numbers = #tpu.dot_dimension_numbers<[1], [0], [0], [1], [0, 0, 1, 1], [], []>} : vector<16x128xbf16>, vector<128x128xbf16>, vector<16x128xf32> -> vector<16x128xf32>
    %40 = arith.addf %34, %39 : vector<16x128xf32>
    %c1_41 = arith.constant 1 : index
    %c0_42 = arith.constant 0 : index
    %41 = vector.load %arg28[%c1_41, %c0_42] : memref<24x128xf32, #tpu.memory_space<vmem>>, vector<16x128xf32>
    %42 = arith.truncf %41 : vector<16x128xf32> to vector<16x128xbf16>
    %c1_43 = arith.constant 1 : index
    %c0_44 = arith.constant 0 : index
    %c0_45 = arith.constant 0 : index
    %43 = vector.load %arg4[%c1_43, %c0_44, %c0_45] : memref<3x128x128xbf16, #tpu.memory_space<vmem>>, vector<1x128x128xbf16>
    %44 = vector.shape_cast %43 : vector<1x128x128xbf16> to vector<128x128xbf16>
    %cst_46 = arith.constant dense<0.000000e+00> : vector<16x128xf32>
    %45 = tpu.matmul %42, %44, %cst_46 {dimension_numbers = #tpu.dot_dimension_numbers<[1], [0], [0], [1], [0, 0, 1, 1], [], []>} : vector<16x128xbf16>, vector<128x128xbf16>, vector<16x128xf32> -> vector<16x128xf32>
    %46 = arith.addf %40, %45 : vector<16x128xf32>
    %c2_47 = arith.constant 2 : index
    %c0_48 = arith.constant 0 : index
    %47 = vector.load %arg28[%c2_47, %c0_48] : memref<24x128xf32, #tpu.memory_space<vmem>>, vector<16x128xf32>
    %48 = arith.truncf %47 : vector<16x128xf32> to vector<16x128xbf16>
    %c2_49 = arith.constant 2 : index
    %c0_50 = arith.constant 0 : index
    %c0_51 = arith.constant 0 : index
    %49 = vector.load %arg4[%c2_49, %c0_50, %c0_51] : memref<3x128x128xbf16, #tpu.memory_space<vmem>>, vector<1x128x128xbf16>
    %50 = vector.shape_cast %49 : vector<1x128x128xbf16> to vector<128x128xbf16>
    %cst_52 = arith.constant dense<0.000000e+00> : vector<16x128xf32>
    %51 = tpu.matmul %48, %50, %cst_52 {dimension_numbers = #tpu.dot_dimension_numbers<[1], [0], [0], [1], [0, 0, 1, 1], [], []>} : vector<16x128xbf16>, vector<128x128xbf16>, vector<16x128xf32> -> vector<16x128xf32>
    %52 = arith.addf %46, %51 : vector<16x128xf32>
    %c0_53 = arith.constant 0 : index
    %c0_54 = arith.constant 0 : index
    %53 = vector.load %arg5[%c0_53, %c0_54] : memref<1x128xf32, #tpu.memory_space<vmem>>, vector<1x128xf32>
    %54 = vector.broadcast %53 : vector<1x128xf32> to vector<16x128xf32>
    %55 = arith.addf %52, %54 : vector<16x128xf32>
    %cst_55 = arith.constant 0.000000e+00 : f32
    %56 = vector.broadcast %cst_55 : f32 to vector<16x128xf32>
    %57 = arith.maximumf %55, %56 : vector<16x128xf32>
    %58 = tpu.iota {dimensions = array<i32: 0>} : vector<128x64xi32>
    %59 = tpu.iota {dimensions = array<i32: 1>} : vector<128x64xi32>
    %c7_i32 = arith.constant 7 : i32
    %60 = vector.broadcast %c7_i32 : i32 to vector<128x64xi32>
    %61 = arith.andi %58, %60 : vector<128x64xi32>
    %c7_i32_56 = arith.constant 7 : i32
    %62 = vector.broadcast %c7_i32_56 : i32 to vector<128x64xi32>
    %63 = arith.andi %59, %62 : vector<128x64xi32>
    %64 = arith.cmpi eq, %61, %63 : vector<128x64xi32>
    %c3_i32 = arith.constant 3 : i32
    %65 = vector.broadcast %c3_i32 : i32 to vector<128x64xi32>
    %66 = arith.shrsi %58, %65 : vector<128x64xi32>
    %c3_i32_57 = arith.constant 3 : i32
    %67 = vector.broadcast %c3_i32_57 : i32 to vector<128x64xi32>
    %68 = arith.shrsi %59, %67 : vector<128x64xi32>
    %c2_i32 = arith.constant 2 : i32
    %69 = vector.broadcast %c2_i32 : i32 to vector<128x64xi32>
    %70 = arith.muli %69, %68 : vector<128x64xi32>
    %71 = arith.cmpi eq, %66, %70 : vector<128x64xi32>
    %72 = arith.andi %64, %71 : vector<128x64xi1>
    %cst_58 = arith.constant 1.000000e+00 : f32
    %cst_59 = arith.constant 0.000000e+00 : f32
    %73 = vector.broadcast %cst_58 : f32 to vector<128x64xf32>
    %74 = vector.broadcast %cst_59 : f32 to vector<128x64xf32>
    %75 = arith.select %72, %73, %74 : vector<128x64xi1>, vector<128x64xf32>
    %c2_i32_60 = arith.constant 2 : i32
    %76 = vector.broadcast %c2_i32_60 : i32 to vector<128x64xi32>
    %77 = arith.muli %76, %68 : vector<128x64xi32>
    %c1_i32 = arith.constant 1 : i32
    %78 = vector.broadcast %c1_i32 : i32 to vector<128x64xi32>
    %79 = arith.addi %77, %78 : vector<128x64xi32>
    %80 = arith.cmpi eq, %66, %79 : vector<128x64xi32>
    %81 = arith.andi %64, %80 : vector<128x64xi1>
    %cst_61 = arith.constant 1.000000e+00 : f32
    %cst_62 = arith.constant 0.000000e+00 : f32
    %82 = vector.broadcast %cst_61 : f32 to vector<128x64xf32>
    %83 = vector.broadcast %cst_62 : f32 to vector<128x64xf32>
    %84 = arith.select %81, %82, %83 : vector<128x64xi1>, vector<128x64xf32>
    %cst_63 = arith.constant dense<0.000000e+00> : vector<16x64xf32>
    %85 = tpu.matmul %57, %75, %cst_63 {dimension_numbers = #tpu.dot_dimension_numbers<[1], [0], [0], [1], [0, 0, 1, 1], [], []>} : vector<16x128xf32>, vector<128x64xf32>, vector<16x64xf32> -> vector<16x64xf32>
    %cst_64 = arith.constant dense<0.000000e+00> : vector<16x64xf32>
    %86 = tpu.matmul %57, %84, %cst_64 {dimension_numbers = #tpu.dot_dimension_numbers<[1], [0], [0], [1], [0, 0, 1, 1], [], []>} : vector<16x128xf32>, vector<128x64xf32>, vector<16x64xf32> -> vector<16x64xf32>
    %87 = arith.maximumf %85, %86 : vector<16x64xf32>
    %88 = tpu.iota {dimensions = array<i32: 0>} : vector<8x16xi32>
    %89 = tpu.iota {dimensions = array<i32: 1>} : vector<8x16xi32>
    %c2_i32_65 = arith.constant 2 : i32
    %90 = vector.broadcast %c2_i32_65 : i32 to vector<8x16xi32>
    %91 = arith.muli %90, %88 : vector<8x16xi32>
    %92 = arith.cmpi eq, %89, %91 : vector<8x16xi32>
    %cst_66 = arith.constant 1.000000e+00 : f32
    %cst_67 = arith.constant 0.000000e+00 : f32
    %93 = vector.broadcast %cst_66 : f32 to vector<8x16xf32>
    %94 = vector.broadcast %cst_67 : f32 to vector<8x16xf32>
    %95 = arith.select %92, %93, %94 : vector<8x16xi1>, vector<8x16xf32>
    %c2_i32_68 = arith.constant 2 : i32
    %96 = vector.broadcast %c2_i32_68 : i32 to vector<8x16xi32>
    %97 = arith.muli %96, %88 : vector<8x16xi32>
    %c1_i32_69 = arith.constant 1 : i32
    %98 = vector.broadcast %c1_i32_69 : i32 to vector<8x16xi32>
    %99 = arith.addi %97, %98 : vector<8x16xi32>
    %100 = arith.cmpi eq, %89, %99 : vector<8x16xi32>
    %cst_70 = arith.constant 1.000000e+00 : f32
    %cst_71 = arith.constant 0.000000e+00 : f32
    %101 = vector.broadcast %cst_70 : f32 to vector<8x16xf32>
    %102 = vector.broadcast %cst_71 : f32 to vector<8x16xf32>
    %103 = arith.select %100, %101, %102 : vector<8x16xi1>, vector<8x16xf32>
    %cst_72 = arith.constant dense<0.000000e+00> : vector<8x64xf32>
    %104 = tpu.matmul %95, %87, %cst_72 {dimension_numbers = #tpu.dot_dimension_numbers<[1], [0], [0], [1], [0, 0, 1, 1], [], []>} : vector<8x16xf32>, vector<16x64xf32>, vector<8x64xf32> -> vector<8x64xf32>
    %cst_73 = arith.constant dense<0.000000e+00> : vector<8x64xf32>
    %105 = tpu.matmul %103, %87, %cst_73 {dimension_numbers = #tpu.dot_dimension_numbers<[1], [0], [0], [1], [0, 0, 1, 1], [], []>} : vector<8x16xf32>, vector<16x64xf32>, vector<8x64xf32> -> vector<8x64xf32>
    %106 = arith.maximumf %104, %105 : vector<8x64xf32>
    %cst_74 = arith.constant 0.000000e+00 : f32
    %107 = vector.broadcast %cst_74 : f32 to vector<1x64xf32>
    %c0_75 = arith.constant 0 : index
    %c0_76 = arith.constant 0 : index
    %108 = vector.load %arg27[%c0_75, %c0_76] : memref<24x128xf32, #tpu.memory_space<vmem>>, vector<1x64xf32>
    tpu.vector_store %arg27[%c0_75, %c0_76], %107 {strides = array<i32>} : memref<24x128xf32, #tpu.memory_space<vmem>>, vector<1x64xf32>,
    %c9 = arith.constant 9 : index
    %c0_77 = arith.constant 0 : index
    %109 = vector.load %arg27[%c9, %c0_77] : memref<24x128xf32, #tpu.memory_space<vmem>>, vector<1x64xf32>
    tpu.vector_store %arg27[%c9, %c0_77], %107 {strides = array<i32>} : memref<24x128xf32, #tpu.memory_space<vmem>>, vector<1x64xf32>,
    %c1_78 = arith.constant 1 : index
    %c0_79 = arith.constant 0 : index
    %110 = vector.load %arg27[%c1_78, %c0_79] : memref<24x128xf32, #tpu.memory_space<vmem>>, vector<8x64xf32>
    tpu.vector_store %arg27[%c1_78, %c0_79], %106 {strides = array<i32>} : memref<24x128xf32, #tpu.memory_space<vmem>>, vector<8x64xf32>,
    %cst_80 = arith.constant 0.000000e+00 : f32
    %111 = vector.broadcast %cst_80 : f32 to vector<8x128xf32>
    %c0_81 = arith.constant 0 : index
    %c0_82 = arith.constant 0 : index
    %112 = vector.load %arg27[%c0_81, %c0_82] : memref<24x128xf32, #tpu.memory_space<vmem>>, vector<8x64xf32>
    %113 = arith.truncf %112 : vector<8x64xf32> to vector<8x64xbf16>
    %c0_83 = arith.constant 0 : index
    %c0_84 = arith.constant 0 : index
    %c0_85 = arith.constant 0 : index
    %114 = vector.load %arg6[%c0_83, %c0_84, %c0_85] : memref<3x64x128xbf16, #tpu.memory_space<vmem>>, vector<1x64x128xbf16>
    %115 = vector.shape_cast %114 : vector<1x64x128xbf16> to vector<64x128xbf16>
    %cst_86 = arith.constant dense<0.000000e+00> : vector<8x128xf32>
    %116 = tpu.matmul %113, %115, %cst_86 {dimension_numbers = #tpu.dot_dimension_numbers<[1], [0], [0], [1], [0, 0, 1, 1], [], []>} : vector<8x64xbf16>, vector<64x128xbf16>, vector<8x128xf32> -> vector<8x128xf32>
    %117 = arith.addf %111, %116 : vector<8x128xf32>
    %c1_87 = arith.constant 1 : index
    %c0_88 = arith.constant 0 : index
    %118 = vector.load %arg27[%c1_87, %c0_88] : memref<24x128xf32, #tpu.memory_space<vmem>>, vector<8x64xf32>
    %119 = arith.truncf %118 : vector<8x64xf32> to vector<8x64xbf16>
    %c1_89 = arith.constant 1 : index
    %c0_90 = arith.constant 0 : index
    %c0_91 = arith.constant 0 : index
    %120 = vector.load %arg6[%c1_89, %c0_90, %c0_91] : memref<3x64x128xbf16, #tpu.memory_space<vmem>>, vector<1x64x128xbf16>
    %121 = vector.shape_cast %120 : vector<1x64x128xbf16> to vector<64x128xbf16>
    %cst_92 = arith.constant dense<0.000000e+00> : vector<8x128xf32>
    %122 = tpu.matmul %119, %121, %cst_92 {dimension_numbers = #tpu.dot_dimension_numbers<[1], [0], [0], [1], [0, 0, 1, 1], [], []>} : vector<8x64xbf16>, vector<64x128xbf16>, vector<8x128xf32> -> vector<8x128xf32>
    %123 = arith.addf %117, %122 : vector<8x128xf32>
    %c2_93 = arith.constant 2 : index
    %c0_94 = arith.constant 0 : index
    %124 = vector.load %arg27[%c2_93, %c0_94] : memref<24x128xf32, #tpu.memory_space<vmem>>, vector<8x64xf32>
    %125 = arith.truncf %124 : vector<8x64xf32> to vector<8x64xbf16>
    %c2_95 = arith.constant 2 : index
    %c0_96 = arith.constant 0 : index
    %c0_97 = arith.constant 0 : index
    %126 = vector.load %arg6[%c2_95, %c0_96, %c0_97] : memref<3x64x128xbf16, #tpu.memory_space<vmem>>, vector<1x64x128xbf16>
    %127 = vector.shape_cast %126 : vector<1x64x128xbf16> to vector<64x128xbf16>
    %cst_98 = arith.constant dense<0.000000e+00> : vector<8x128xf32>
    %128 = tpu.matmul %125, %127, %cst_98 {dimension_numbers = #tpu.dot_dimension_numbers<[1], [0], [0], [1], [0, 0, 1, 1], [], []>} : vector<8x64xbf16>, vector<64x128xbf16>, vector<8x128xf32> -> vector<8x128xf32>
    %129 = arith.addf %123, %128 : vector<8x128xf32>
    %c0_99 = arith.constant 0 : index
    %c0_100 = arith.constant 0 : index
    %130 = vector.load %arg7[%c0_99, %c0_100] : memref<1x128xf32, #tpu.memory_space<vmem>>, vector<1x128xf32>
    %131 = vector.broadcast %130 : vector<1x128xf32> to vector<8x128xf32>
    %132 = arith.addf %129, %131 : vector<8x128xf32>
    %cst_101 = arith.constant 0.000000e+00 : f32
    %133 = vector.broadcast %cst_101 : f32 to vector<8x128xf32>
    %134 = arith.maximumf %132, %133 : vector<8x128xf32>
    %cst_102 = arith.constant 0.000000e+00 : f32
    %135 = vector.broadcast %cst_102 : f32 to vector<1x128xf32>
    %c0_103 = arith.constant 0 : index
    %c0_104 = arith.constant 0 : index
    %136 = vector.load %arg28[%c0_103, %c0_104] : memref<24x128xf32, #tpu.memory_space<vmem>>, vector<1x128xf32>
    tpu.vector_store %arg28[%c0_103, %c0_104], %135 {strides = array<i32>} : memref<24x128xf32, #tpu.memory_space<vmem>>, vector<1x128xf32>,
    %c9_105 = arith.constant 9 : index
    %c0_106 = arith.constant 0 : index
    %137 = vector.load %arg28[%c9_105, %c0_106] : memref<24x128xf32, #tpu.memory_space<vmem>>, vector<1x128xf32>
    tpu.vector_store %arg28[%c9_105, %c0_106], %135 {strides = array<i32>} : memref<24x128xf32, #tpu.memory_space<vmem>>, vector<1x128xf32>,
    %c1_107 = arith.constant 1 : index
    %c0_108 = arith.constant 0 : index
    %138 = vector.load %arg28[%c1_107, %c0_108] : memref<24x128xf32, #tpu.memory_space<vmem>>, vector<8x128xf32>
    tpu.vector_store %arg28[%c1_107, %c0_108], %134 {strides = array<i32>} : memref<24x128xf32, #tpu.memory_space<vmem>>, vector<8x128xf32>,
    %cst_109 = arith.constant 0.000000e+00 : f32
    %139 = vector.broadcast %cst_109 : f32 to vector<8x128xf32>
    %c0_110 = arith.constant 0 : index
    %c0_111 = arith.constant 0 : index
    %140 = vector.load %arg28[%c0_110, %c0_111] : memref<24x128xf32, #tpu.memory_space<vmem>>, vector<8x128xf32>
    %141 = arith.truncf %140 : vector<8x128xf32> to vector<8x128xbf16>
    %c0_112 = arith.constant 0 : index
    %c0_113 = arith.constant 0 : index
    %c0_114 = arith.constant 0 : index
    %142 = vector.load %arg8[%c0_112, %c0_113, %c0_114] : memref<3x128x128xbf16, #tpu.memory_space<vmem>>, vector<1x128x128xbf16>
    %143 = vector.shape_cast %142 : vector<1x128x128xbf16> to vector<128x128xbf16>
    %cst_115 = arith.constant dense<0.000000e+00> : vector<8x128xf32>
    %144 = tpu.matmul %141, %143, %cst_115 {dimension_numbers = #tpu.dot_dimension_numbers<[1], [0], [0], [1], [0, 0, 1, 1], [], []>} : vector<8x128xbf16>, vector<128x128xbf16>, vector<8x128xf32> -> vector<8x128xf32>
    %145 = arith.addf %139, %144 : vector<8x128xf32>
    %c1_116 = arith.constant 1 : index
    %c0_117 = arith.constant 0 : index
    %146 = vector.load %arg28[%c1_116, %c0_117] : memref<24x128xf32, #tpu.memory_space<vmem>>, vector<8x128xf32>
    %147 = arith.truncf %146 : vector<8x128xf32> to vector<8x128xbf16>
    %c1_118 = arith.constant 1 : index
    %c0_119 = arith.constant 0 : index
    %c0_120 = arith.constant 0 : index
    %148 = vector.load %arg8[%c1_118, %c0_119, %c0_120] : memref<3x128x128xbf16, #tpu.memory_space<vmem>>, vector<1x128x128xbf16>
    %149 = vector.shape_cast %148 : vector<1x128x128xbf16> to vector<128x128xbf16>
    %cst_121 = arith.constant dense<0.000000e+00> : vector<8x128xf32>
    %150 = tpu.matmul %147, %149, %cst_121 {dimension_numbers = #tpu.dot_dimension_numbers<[1], [0], [0], [1], [0, 0, 1, 1], [], []>} : vector<8x128xbf16>, vector<128x128xbf16>, vector<8x128xf32> -> vector<8x128xf32>
    %151 = arith.addf %145, %150 : vector<8x128xf32>
    %c2_122 = arith.constant 2 : index
    %c0_123 = arith.constant 0 : index
    %152 = vector.load %arg28[%c2_122, %c0_123] : memref<24x128xf32, #tpu.memory_space<vmem>>, vector<8x128xf32>
    %153 = arith.truncf %152 : vector<8x128xf32> to vector<8x128xbf16>
    %c2_124 = arith.constant 2 : index
    %c0_125 = arith.constant 0 : index
    %c0_126 = arith.constant 0 : index
    %154 = vector.load %arg8[%c2_124, %c0_125, %c0_126] : memref<3x128x128xbf16, #tpu.memory_space<vmem>>, vector<1x128x128xbf16>
    %155 = vector.shape_cast %154 : vector<1x128x128xbf16> to vector<128x128xbf16>
    %cst_127 = arith.constant dense<0.000000e+00> : vector<8x128xf32>
    %156 = tpu.matmul %153, %155, %cst_127 {dimension_numbers = #tpu.dot_dimension_numbers<[1], [0], [0], [1], [0, 0, 1, 1], [], []>} : vector<8x128xbf16>, vector<128x128xbf16>, vector<8x128xf32> -> vector<8x128xf32>
    %157 = arith.addf %151, %156 : vector<8x128xf32>
    %c0_128 = arith.constant 0 : index
    %c0_129 = arith.constant 0 : index
    %158 = vector.load %arg9[%c0_128, %c0_129] : memref<1x128xf32, #tpu.memory_space<vmem>>, vector<1x128xf32>
    %159 = vector.broadcast %158 : vector<1x128xf32> to vector<8x128xf32>
    %160 = arith.addf %157, %159 : vector<8x128xf32>
    %cst_130 = arith.constant 0.000000e+00 : f32
    %161 = vector.broadcast %cst_130 : f32 to vector<8x128xf32>
    %162 = arith.maximumf %160, %161 : vector<8x128xf32>
    %163 = tpu.iota {dimensions = array<i32: 0>} : vector<128x64xi32>
    %164 = tpu.iota {dimensions = array<i32: 1>} : vector<128x64xi32>
    %c15_i32 = arith.constant 15 : i32
    %165 = vector.broadcast %c15_i32 : i32 to vector<128x64xi32>
    %166 = arith.andi %163, %165 : vector<128x64xi32>
    %c15_i32_131 = arith.constant 15 : i32
    %167 = vector.broadcast %c15_i32_131 : i32 to vector<128x64xi32>
    %168 = arith.andi %164, %167 : vector<128x64xi32>
    %169 = arith.cmpi eq, %166, %168 : vector<128x64xi32>
    %c4_i32 = arith.constant 4 : i32
    %170 = vector.broadcast %c4_i32 : i32 to vector<128x64xi32>
    %171 = arith.shrsi %163, %170 : vector<128x64xi32>
    %c4_i32_132 = arith.constant 4 : i32
    %172 = vector.broadcast %c4_i32_132 : i32 to vector<128x64xi32>
    %173 = arith.shrsi %164, %172 : vector<128x64xi32>
    %c2_i32_133 = arith.constant 2 : i32
    %174 = vector.broadcast %c2_i32_133 : i32 to vector<128x64xi32>
    %175 = arith.muli %174, %173 : vector<128x64xi32>
    %176 = arith.cmpi eq, %171, %175 : vector<128x64xi32>
    %177 = arith.andi %169, %176 : vector<128x64xi1>
    %cst_134 = arith.constant 1.000000e+00 : f32
    %cst_135 = arith.constant 0.000000e+00 : f32
    %178 = vector.broadcast %cst_134 : f32 to vector<128x64xf32>
    %179 = vector.broadcast %cst_135 : f32 to vector<128x64xf32>
    %180 = arith.select %177, %178, %179 : vector<128x64xi1>, vector<128x64xf32>
    %c2_i32_136 = arith.constant 2 : i32
    %181 = vector.broadcast %c2_i32_136 : i32 to vector<128x64xi32>
    %182 = arith.muli %181, %173 : vector<128x64xi32>
    %c1_i32_137 = arith.constant 1 : i32
    %183 = vector.broadcast %c1_i32_137 : i32 to vector<128x64xi32>
    %184 = arith.addi %182, %183 : vector<128x64xi32>
    %185 = arith.cmpi eq, %171, %184 : vector<128x64xi32>
    %186 = arith.andi %169, %185 : vector<128x64xi1>
    %cst_138 = arith.constant 1.000000e+00 : f32
    %cst_139 = arith.constant 0.000000e+00 : f32
    %187 = vector.broadcast %cst_138 : f32 to vector<128x64xf32>
    %188 = vector.broadcast %cst_139 : f32 to vector<128x64xf32>
    %189 = arith.select %186, %187, %188 : vector<128x64xi1>, vector<128x64xf32>
    %cst_140 = arith.constant dense<0.000000e+00> : vector<8x64xf32>
    %190 = tpu.matmul %162, %180, %cst_140 {dimension_numbers = #tpu.dot_dimension_numbers<[1], [0], [0], [1], [0, 0, 1, 1], [], []>} : vector<8x128xf32>, vector<128x64xf32>, vector<8x64xf32> -> vector<8x64xf32>
    %cst_141 = arith.constant dense<0.000000e+00> : vector<8x64xf32>
    %191 = tpu.matmul %162, %189, %cst_141 {dimension_numbers = #tpu.dot_dimension_numbers<[1], [0], [0], [1], [0, 0, 1, 1], [], []>} : vector<8x128xf32>, vector<128x64xf32>, vector<8x64xf32> -> vector<8x64xf32>
    %192 = arith.maximumf %190, %191 : vector<8x64xf32>
    %193 = tpu.iota {dimensions = array<i32: 0>} : vector<4x8xi32>
    %194 = tpu.iota {dimensions = array<i32: 1>} : vector<4x8xi32>
    %c2_i32_142 = arith.constant 2 : i32
    %195 = vector.broadcast %c2_i32_142 : i32 to vector<4x8xi32>
    %196 = arith.muli %195, %193 : vector<4x8xi32>
    %197 = arith.cmpi eq, %194, %196 : vector<4x8xi32>
    %cst_143 = arith.constant 1.000000e+00 : f32
    %cst_144 = arith.constant 0.000000e+00 : f32
    %198 = vector.broadcast %cst_143 : f32 to vector<4x8xf32>
    %199 = vector.broadcast %cst_144 : f32 to vector<4x8xf32>
    %200 = arith.select %197, %198, %199 : vector<4x8xi1>, vector<4x8xf32>
    %c2_i32_145 = arith.constant 2 : i32
    %201 = vector.broadcast %c2_i32_145 : i32 to vector<4x8xi32>
    %202 = arith.muli %201, %193 : vector<4x8xi32>
    %c1_i32_146 = arith.constant 1 : i32
    %203 = vector.broadcast %c1_i32_146 : i32 to vector<4x8xi32>
    %204 = arith.addi %202, %203 : vector<4x8xi32>
    %205 = arith.cmpi eq, %194, %204 : vector<4x8xi32>
    %cst_147 = arith.constant 1.000000e+00 : f32
    %cst_148 = arith.constant 0.000000e+00 : f32
    %206 = vector.broadcast %cst_147 : f32 to vector<4x8xf32>
    %207 = vector.broadcast %cst_148 : f32 to vector<4x8xf32>
    %208 = arith.select %205, %206, %207 : vector<4x8xi1>, vector<4x8xf32>
    %cst_149 = arith.constant dense<0.000000e+00> : vector<4x64xf32>
    %209 = tpu.matmul %200, %192, %cst_149 {dimension_numbers = #tpu.dot_dimension_numbers<[1], [0], [0], [1], [0, 0, 1, 1], [], []>} : vector<4x8xf32>, vector<8x64xf32>, vector<4x64xf32> -> vector<4x64xf32>
    %cst_150 = arith.constant dense<0.000000e+00> : vector<4x64xf32>
    %210 = tpu.matmul %208, %192, %cst_150 {dimension_numbers = #tpu.dot_dimension_numbers<[1], [0], [0], [1], [0, 0, 1, 1], [], []>} : vector<4x8xf32>, vector<8x64xf32>, vector<4x64xf32> -> vector<4x64xf32>
    %211 = arith.maximumf %209, %210 : vector<4x64xf32>
    %cst_151 = arith.constant 0.000000e+00 : f32
    %212 = vector.broadcast %cst_151 : f32 to vector<1x64xf32>
    %c0_152 = arith.constant 0 : index
    %c0_153 = arith.constant 0 : index
    %213 = vector.load %arg27[%c0_152, %c0_153] : memref<24x128xf32, #tpu.memory_space<vmem>>, vector<1x64xf32>
    tpu.vector_store %arg27[%c0_152, %c0_153], %212 {strides = array<i32>} : memref<24x128xf32, #tpu.memory_space<vmem>>, vector<1x64xf32>,
    %c5 = arith.constant 5 : index
    %c0_154 = arith.constant 0 : index
    %214 = vector.load %arg27[%c5, %c0_154] : memref<24x128xf32, #tpu.memory_space<vmem>>, vector<1x64xf32>
    tpu.vector_store %arg27[%c5, %c0_154], %212 {strides = array<i32>} : memref<24x128xf32, #tpu.memory_space<vmem>>, vector<1x64xf32>,
    %c1_155 = arith.constant 1 : index
    %c0_156 = arith.constant 0 : index
    %215 = vector.load %arg27[%c1_155, %c0_156] : memref<24x128xf32, #tpu.memory_space<vmem>>, vector<4x64xf32>
    tpu.vector_store %arg27[%c1_155, %c0_156], %211 {strides = array<i32>} : memref<24x128xf32, #tpu.memory_space<vmem>>, vector<4x64xf32>,
    %cst_157 = arith.constant 0.000000e+00 : f32
    %216 = vector.broadcast %cst_157 : f32 to vector<4x128xf32>
    %c0_158 = arith.constant 0 : index
    %c0_159 = arith.constant 0 : index
    %217 = vector.load %arg27[%c0_158, %c0_159] : memref<24x128xf32, #tpu.memory_space<vmem>>, vector<4x64xf32>
    %218 = arith.truncf %217 : vector<4x64xf32> to vector<4x64xbf16>
    %c0_160 = arith.constant 0 : index
    %c0_161 = arith.constant 0 : index
    %c0_162 = arith.constant 0 : index
    %219 = vector.load %arg10[%c0_160, %c0_161, %c0_162] : memref<3x64x128xbf16, #tpu.memory_space<vmem>>, vector<1x64x128xbf16>
    %220 = vector.shape_cast %219 : vector<1x64x128xbf16> to vector<64x128xbf16>
    %cst_163 = arith.constant dense<0.000000e+00> : vector<4x128xf32>
    %221 = tpu.matmul %218, %220, %cst_163 {dimension_numbers = #tpu.dot_dimension_numbers<[1], [0], [0], [1], [0, 0, 1, 1], [], []>} : vector<4x64xbf16>, vector<64x128xbf16>, vector<4x128xf32> -> vector<4x128xf32>
    %222 = arith.addf %216, %221 : vector<4x128xf32>
    %c1_164 = arith.constant 1 : index
    %c0_165 = arith.constant 0 : index
    %223 = vector.load %arg27[%c1_164, %c0_165] : memref<24x128xf32, #tpu.memory_space<vmem>>, vector<4x64xf32>
    %224 = arith.truncf %223 : vector<4x64xf32> to vector<4x64xbf16>
    %c1_166 = arith.constant 1 : index
    %c0_167 = arith.constant 0 : index
    %c0_168 = arith.constant 0 : index
    %225 = vector.load %arg10[%c1_166, %c0_167, %c0_168] : memref<3x64x128xbf16, #tpu.memory_space<vmem>>, vector<1x64x128xbf16>
    %226 = vector.shape_cast %225 : vector<1x64x128xbf16> to vector<64x128xbf16>
    %cst_169 = arith.constant dense<0.000000e+00> : vector<4x128xf32>
    %227 = tpu.matmul %224, %226, %cst_169 {dimension_numbers = #tpu.dot_dimension_numbers<[1], [0], [0], [1], [0, 0, 1, 1], [], []>} : vector<4x64xbf16>, vector<64x128xbf16>, vector<4x128xf32> -> vector<4x128xf32>
    %228 = arith.addf %222, %227 : vector<4x128xf32>
    %c2_170 = arith.constant 2 : index
    %c0_171 = arith.constant 0 : index
    %229 = vector.load %arg27[%c2_170, %c0_171] : memref<24x128xf32, #tpu.memory_space<vmem>>, vector<4x64xf32>
    %230 = arith.truncf %229 : vector<4x64xf32> to vector<4x64xbf16>
    %c2_172 = arith.constant 2 : index
    %c0_173 = arith.constant 0 : index
    %c0_174 = arith.constant 0 : index
    %231 = vector.load %arg10[%c2_172, %c0_173, %c0_174] : memref<3x64x128xbf16, #tpu.memory_space<vmem>>, vector<1x64x128xbf16>
    %232 = vector.shape_cast %231 : vector<1x64x128xbf16> to vector<64x128xbf16>
    %cst_175 = arith.constant dense<0.000000e+00> : vector<4x128xf32>
    %233 = tpu.matmul %230, %232, %cst_175 {dimension_numbers = #tpu.dot_dimension_numbers<[1], [0], [0], [1], [0, 0, 1, 1], [], []>} : vector<4x64xbf16>, vector<64x128xbf16>, vector<4x128xf32> -> vector<4x128xf32>
    %234 = arith.addf %228, %233 : vector<4x128xf32>
    %c0_176 = arith.constant 0 : index
    %c0_177 = arith.constant 0 : index
    %235 = vector.load %arg11[%c0_176, %c0_177] : memref<1x128xf32, #tpu.memory_space<vmem>>, vector<1x128xf32>
    %236 = vector.broadcast %235 : vector<1x128xf32> to vector<4x128xf32>
    %237 = arith.addf %234, %236 : vector<4x128xf32>
    %cst_178 = arith.constant 0.000000e+00 : f32
    %238 = vector.broadcast %cst_178 : f32 to vector<4x128xf32>
    %239 = arith.maximumf %237, %238 : vector<4x128xf32>
    %cst_179 = arith.constant 0.000000e+00 : f32
    %240 = vector.broadcast %cst_179 : f32 to vector<1x128xf32>
    %c0_180 = arith.constant 0 : index
    %c0_181 = arith.constant 0 : index
    %241 = vector.load %arg28[%c0_180, %c0_181] : memref<24x128xf32, #tpu.memory_space<vmem>>, vector<1x128xf32>
    tpu.vector_store %arg28[%c0_180, %c0_181], %240 {strides = array<i32>} : memref<24x128xf32, #tpu.memory_space<vmem>>, vector<1x128xf32>,
    %c5_182 = arith.constant 5 : index
    %c0_183 = arith.constant 0 : index
    %242 = vector.load %arg28[%c5_182, %c0_183] : memref<24x128xf32, #tpu.memory_space<vmem>>, vector<1x128xf32>
    tpu.vector_store %arg28[%c5_182, %c0_183], %240 {strides = array<i32>} : memref<24x128xf32, #tpu.memory_space<vmem>>, vector<1x128xf32>,
    %c1_184 = arith.constant 1 : index
    %c0_185 = arith.constant 0 : index
    %243 = vector.load %arg28[%c1_184, %c0_185] : memref<24x128xf32, #tpu.memory_space<vmem>>, vector<4x128xf32>
    tpu.vector_store %arg28[%c1_184, %c0_185], %239 {strides = array<i32>} : memref<24x128xf32, #tpu.memory_space<vmem>>, vector<4x128xf32>,
    %cst_186 = arith.constant 0.000000e+00 : f32
    %244 = vector.broadcast %cst_186 : f32 to vector<4x128xf32>
    %c0_187 = arith.constant 0 : index
    %c0_188 = arith.constant 0 : index
    %245 = vector.load %arg28[%c0_187, %c0_188] : memref<24x128xf32, #tpu.memory_space<vmem>>, vector<4x128xf32>
    %246 = arith.truncf %245 : vector<4x128xf32> to vector<4x128xbf16>
    %c0_189 = arith.constant 0 : index
    %c0_190 = arith.constant 0 : index
    %c0_191 = arith.constant 0 : index
    %247 = vector.load %arg12[%c0_189, %c0_190, %c0_191] : memref<3x128x128xbf16, #tpu.memory_space<vmem>>, vector<1x128x128xbf16>
    %248 = vector.shape_cast %247 : vector<1x128x128xbf16> to vector<128x128xbf16>
    %cst_192 = arith.constant dense<0.000000e+00> : vector<4x128xf32>
    %249 = tpu.matmul %246, %248, %cst_192 {dimension_numbers = #tpu.dot_dimension_numbers<[1], [0], [0], [1], [0, 0, 1, 1], [], []>} : vector<4x128xbf16>, vector<128x128xbf16>, vector<4x128xf32> -> vector<4x128xf32>
    %250 = arith.addf %244, %249 : vector<4x128xf32>
    %c1_193 = arith.constant 1 : index
    %c0_194 = arith.constant 0 : index
    %251 = vector.load %arg28[%c1_193, %c0_194] : memref<24x128xf32, #tpu.memory_space<vmem>>, vector<4x128xf32>
    %252 = arith.truncf %251 : vector<4x128xf32> to vector<4x128xbf16>
    %c1_195 = arith.constant 1 : index
    %c0_196 = arith.constant 0 : index
    %c0_197 = arith.constant 0 : index
    %253 = vector.load %arg12[%c1_195, %c0_196, %c0_197] : memref<3x128x128xbf16, #tpu.memory_space<vmem>>, vector<1x128x128xbf16>
    %254 = vector.shape_cast %253 : vector<1x128x128xbf16> to vector<128x128xbf16>
    %cst_198 = arith.constant dense<0.000000e+00> : vector<4x128xf32>
    %255 = tpu.matmul %252, %254, %cst_198 {dimension_numbers = #tpu.dot_dimension_numbers<[1], [0], [0], [1], [0, 0, 1, 1], [], []>} : vector<4x128xbf16>, vector<128x128xbf16>, vector<4x128xf32> -> vector<4x128xf32>
    %256 = arith.addf %250, %255 : vector<4x128xf32>
    %c2_199 = arith.constant 2 : index
    %c0_200 = arith.constant 0 : index
    %257 = vector.load %arg28[%c2_199, %c0_200] : memref<24x128xf32, #tpu.memory_space<vmem>>, vector<4x128xf32>
    %258 = arith.truncf %257 : vector<4x128xf32> to vector<4x128xbf16>
    %c2_201 = arith.constant 2 : index
    %c0_202 = arith.constant 0 : index
    %c0_203 = arith.constant 0 : index
    %259 = vector.load %arg12[%c2_201, %c0_202, %c0_203] : memref<3x128x128xbf16, #tpu.memory_space<vmem>>, vector<1x128x128xbf16>
    %260 = vector.shape_cast %259 : vector<1x128x128xbf16> to vector<128x128xbf16>
    %cst_204 = arith.constant dense<0.000000e+00> : vector<4x128xf32>
    %261 = tpu.matmul %258, %260, %cst_204 {dimension_numbers = #tpu.dot_dimension_numbers<[1], [0], [0], [1], [0, 0, 1, 1], [], []>} : vector<4x128xbf16>, vector<128x128xbf16>, vector<4x128xf32> -> vector<4x128xf32>
    %262 = arith.addf %256, %261 : vector<4x128xf32>
    %c0_205 = arith.constant 0 : index
    %c0_206 = arith.constant 0 : index
    %263 = vector.load %arg13[%c0_205, %c0_206] : memref<1x128xf32, #tpu.memory_space<vmem>>, vector<1x128xf32>
    %264 = vector.broadcast %263 : vector<1x128xf32> to vector<4x128xf32>
    %265 = arith.addf %262, %264 : vector<4x128xf32>
    %cst_207 = arith.constant 0.000000e+00 : f32
    %266 = vector.broadcast %cst_207 : f32 to vector<4x128xf32>
    %267 = arith.maximumf %265, %266 : vector<4x128xf32>
    %cst_208 = arith.constant 0.000000e+00 : f32
    %268 = vector.broadcast %cst_208 : f32 to vector<1x128xf32>
    %c0_209 = arith.constant 0 : index
    %c0_210 = arith.constant 0 : index
    %269 = vector.load %arg27[%c0_209, %c0_210] : memref<24x128xf32, #tpu.memory_space<vmem>>, vector<1x128xf32>
    tpu.vector_store %arg27[%c0_209, %c0_210], %268 {strides = array<i32>} : memref<24x128xf32, #tpu.memory_space<vmem>>, vector<1x128xf32>,
    %c5_211 = arith.constant 5 : index
    %c0_212 = arith.constant 0 : index
    %270 = vector.load %arg27[%c5_211, %c0_212] : memref<24x128xf32, #tpu.memory_space<vmem>>, vector<1x128xf32>
    tpu.vector_store %arg27[%c5_211, %c0_212], %268 {strides = array<i32>} : memref<24x128xf32, #tpu.memory_space<vmem>>, vector<1x128xf32>,
    %c1_213 = arith.constant 1 : index
    %c0_214 = arith.constant 0 : index
    %271 = vector.load %arg27[%c1_213, %c0_214] : memref<24x128xf32, #tpu.memory_space<vmem>>, vector<4x128xf32>
    tpu.vector_store %arg27[%c1_213, %c0_214], %267 {strides = array<i32>} : memref<24x128xf32, #tpu.memory_space<vmem>>, vector<4x128xf32>,
    %cst_215 = arith.constant 0.000000e+00 : f32
    %272 = vector.broadcast %cst_215 : f32 to vector<4x128xf32>
    %c0_216 = arith.constant 0 : index
    %c0_217 = arith.constant 0 : index
    %273 = vector.load %arg27[%c0_216, %c0_217] : memref<24x128xf32, #tpu.memory_space<vmem>>, vector<4x128xf32>
    %274 = arith.truncf %273 : vector<4x128xf32> to vector<4x128xbf16>
    %c0_218 = arith.constant 0 : index
    %c0_219 = arith.constant 0 : index
    %c0_220 = arith.constant 0 : index
    %275 = vector.load %arg14[%c0_218, %c0_219, %c0_220] : memref<3x128x128xbf16, #tpu.memory_space<vmem>>, vector<1x128x128xbf16>
    %276 = vector.shape_cast %275 : vector<1x128x128xbf16> to vector<128x128xbf16>
    %cst_221 = arith.constant dense<0.000000e+00> : vector<4x128xf32>
    %277 = tpu.matmul %274, %276, %cst_221 {dimension_numbers = #tpu.dot_dimension_numbers<[1], [0], [0], [1], [0, 0, 1, 1], [], []>} : vector<4x128xbf16>, vector<128x128xbf16>, vector<4x128xf32> -> vector<4x128xf32>
    %278 = arith.addf %272, %277 : vector<4x128xf32>
    %c1_222 = arith.constant 1 : index
    %c0_223 = arith.constant 0 : index
    %279 = vector.load %arg27[%c1_222, %c0_223] : memref<24x128xf32, #tpu.memory_space<vmem>>, vector<4x128xf32>
    %280 = arith.truncf %279 : vector<4x128xf32> to vector<4x128xbf16>
    %c1_224 = arith.constant 1 : index
    %c0_225 = arith.constant 0 : index
    %c0_226 = arith.constant 0 : index
    %281 = vector.load %arg14[%c1_224, %c0_225, %c0_226] : memref<3x128x128xbf16, #tpu.memory_space<vmem>>, vector<1x128x128xbf16>
    %282 = vector.shape_cast %281 : vector<1x128x128xbf16> to vector<128x128xbf16>
    %cst_227 = arith.constant dense<0.000000e+00> : vector<4x128xf32>
    %283 = tpu.matmul %280, %282, %cst_227 {dimension_numbers = #tpu.dot_dimension_numbers<[1], [0], [0], [1], [0, 0, 1, 1], [], []>} : vector<4x128xbf16>, vector<128x128xbf16>, vector<4x128xf32> -> vector<4x128xf32>
    %284 = arith.addf %278, %283 : vector<4x128xf32>
    %c2_228 = arith.constant 2 : index
    %c0_229 = arith.constant 0 : index
    %285 = vector.load %arg27[%c2_228, %c0_229] : memref<24x128xf32, #tpu.memory_space<vmem>>, vector<4x128xf32>
    %286 = arith.truncf %285 : vector<4x128xf32> to vector<4x128xbf16>
    %c2_230 = arith.constant 2 : index
    %c0_231 = arith.constant 0 : index
    %c0_232 = arith.constant 0 : index
    %287 = vector.load %arg14[%c2_230, %c0_231, %c0_232] : memref<3x128x128xbf16, #tpu.memory_space<vmem>>, vector<1x128x128xbf16>
    %288 = vector.shape_cast %287 : vector<1x128x128xbf16> to vector<128x128xbf16>
    %cst_233 = arith.constant dense<0.000000e+00> : vector<4x128xf32>
    %289 = tpu.matmul %286, %288, %cst_233 {dimension_numbers = #tpu.dot_dimension_numbers<[1], [0], [0], [1], [0, 0, 1, 1], [], []>} : vector<4x128xbf16>, vector<128x128xbf16>, vector<4x128xf32> -> vector<4x128xf32>
    %290 = arith.addf %284, %289 : vector<4x128xf32>
    %c0_234 = arith.constant 0 : index
    %c0_235 = arith.constant 0 : index
    %291 = vector.load %arg15[%c0_234, %c0_235] : memref<1x128xf32, #tpu.memory_space<vmem>>, vector<1x128xf32>
    %292 = vector.broadcast %291 : vector<1x128xf32> to vector<4x128xf32>
    %293 = arith.addf %290, %292 : vector<4x128xf32>
    %cst_236 = arith.constant 0.000000e+00 : f32
    %294 = vector.broadcast %cst_236 : f32 to vector<4x128xf32>
    %295 = arith.maximumf %293, %294 : vector<4x128xf32>
    %296 = tpu.iota {dimensions = array<i32: 0>} : vector<128x64xi32>
    %297 = tpu.iota {dimensions = array<i32: 1>} : vector<128x64xi32>
    %c31_i32 = arith.constant 31 : i32
    %298 = vector.broadcast %c31_i32 : i32 to vector<128x64xi32>
    %299 = arith.andi %296, %298 : vector<128x64xi32>
    %c31_i32_237 = arith.constant 31 : i32
    %300 = vector.broadcast %c31_i32_237 : i32 to vector<128x64xi32>
    %301 = arith.andi %297, %300 : vector<128x64xi32>
    %302 = arith.cmpi eq, %299, %301 : vector<128x64xi32>
    %c5_i32 = arith.constant 5 : i32
    %303 = vector.broadcast %c5_i32 : i32 to vector<128x64xi32>
    %304 = arith.shrsi %296, %303 : vector<128x64xi32>
    %c5_i32_238 = arith.constant 5 : i32
    %305 = vector.broadcast %c5_i32_238 : i32 to vector<128x64xi32>
    %306 = arith.shrsi %297, %305 : vector<128x64xi32>
    %c2_i32_239 = arith.constant 2 : i32
    %307 = vector.broadcast %c2_i32_239 : i32 to vector<128x64xi32>
    %308 = arith.muli %307, %306 : vector<128x64xi32>
    %309 = arith.cmpi eq, %304, %308 : vector<128x64xi32>
    %310 = arith.andi %302, %309 : vector<128x64xi1>
    %cst_240 = arith.constant 1.000000e+00 : f32
    %cst_241 = arith.constant 0.000000e+00 : f32
    %311 = vector.broadcast %cst_240 : f32 to vector<128x64xf32>
    %312 = vector.broadcast %cst_241 : f32 to vector<128x64xf32>
    %313 = arith.select %310, %311, %312 : vector<128x64xi1>, vector<128x64xf32>
    %c2_i32_242 = arith.constant 2 : i32
    %314 = vector.broadcast %c2_i32_242 : i32 to vector<128x64xi32>
    %315 = arith.muli %314, %306 : vector<128x64xi32>
    %c1_i32_243 = arith.constant 1 : i32
    %316 = vector.broadcast %c1_i32_243 : i32 to vector<128x64xi32>
    %317 = arith.addi %315, %316 : vector<128x64xi32>
    %318 = arith.cmpi eq, %304, %317 : vector<128x64xi32>
    %319 = arith.andi %302, %318 : vector<128x64xi1>
    %cst_244 = arith.constant 1.000000e+00 : f32
    %cst_245 = arith.constant 0.000000e+00 : f32
    %320 = vector.broadcast %cst_244 : f32 to vector<128x64xf32>
    %321 = vector.broadcast %cst_245 : f32 to vector<128x64xf32>
    %322 = arith.select %319, %320, %321 : vector<128x64xi1>, vector<128x64xf32>
    %cst_246 = arith.constant dense<0.000000e+00> : vector<4x64xf32>
    %323 = tpu.matmul %295, %313, %cst_246 {dimension_numbers = #tpu.dot_dimension_numbers<[1], [0], [0], [1], [0, 0, 1, 1], [], []>} : vector<4x128xf32>, vector<128x64xf32>, vector<4x64xf32> -> vector<4x64xf32>
    %cst_247 = arith.constant dense<0.000000e+00> : vector<4x64xf32>
    %324 = tpu.matmul %295, %322, %cst_247 {dimension_numbers = #tpu.dot_dimension_numbers<[1], [0], [0], [1], [0, 0, 1, 1], [], []>} : vector<4x128xf32>, vector<128x64xf32>, vector<4x64xf32> -> vector<4x64xf32>
    %325 = arith.maximumf %323, %324 : vector<4x64xf32>
    %326 = tpu.iota {dimensions = array<i32: 0>} : vector<2x4xi32>
    %327 = tpu.iota {dimensions = array<i32: 1>} : vector<2x4xi32>
    %c2_i32_248 = arith.constant 2 : i32
    %328 = vector.broadcast %c2_i32_248 : i32 to vector<2x4xi32>
    %329 = arith.muli %328, %326 : vector<2x4xi32>
    %330 = arith.cmpi eq, %327, %329 : vector<2x4xi32>
    %cst_249 = arith.constant 1.000000e+00 : f32
    %cst_250 = arith.constant 0.000000e+00 : f32
    %331 = vector.broadcast %cst_249 : f32 to vector<2x4xf32>
    %332 = vector.broadcast %cst_250 : f32 to vector<2x4xf32>
    %333 = arith.select %330, %331, %332 : vector<2x4xi1>, vector<2x4xf32>
    %c2_i32_251 = arith.constant 2 : i32
    %334 = vector.broadcast %c2_i32_251 : i32 to vector<2x4xi32>
    %335 = arith.muli %334, %326 : vector<2x4xi32>
    %c1_i32_252 = arith.constant 1 : i32
    %336 = vector.broadcast %c1_i32_252 : i32 to vector<2x4xi32>
    %337 = arith.addi %335, %336 : vector<2x4xi32>
    %338 = arith.cmpi eq, %327, %337 : vector<2x4xi32>
    %cst_253 = arith.constant 1.000000e+00 : f32
    %cst_254 = arith.constant 0.000000e+00 : f32
    %339 = vector.broadcast %cst_253 : f32 to vector<2x4xf32>
    %340 = vector.broadcast %cst_254 : f32 to vector<2x4xf32>
    %341 = arith.select %338, %339, %340 : vector<2x4xi1>, vector<2x4xf32>
    %cst_255 = arith.constant dense<0.000000e+00> : vector<2x64xf32>
    %342 = tpu.matmul %333, %325, %cst_255 {dimension_numbers = #tpu.dot_dimension_numbers<[1], [0], [0], [1], [0, 0, 1, 1], [], []>} : vector<2x4xf32>, vector<4x64xf32>, vector<2x64xf32> -> vector<2x64xf32>
    %cst_256 = arith.constant dense<0.000000e+00> : vector<2x64xf32>
    %343 = tpu.matmul %341, %325, %cst_256 {dimension_numbers = #tpu.dot_dimension_numbers<[1], [0], [0], [1], [0, 0, 1, 1], [], []>} : vector<2x4xf32>, vector<4x64xf32>, vector<2x64xf32> -> vector<2x64xf32>
    %344 = arith.maximumf %342, %343 : vector<2x64xf32>
    %cst_257 = arith.constant 0.000000e+00 : f32
    %345 = vector.broadcast %cst_257 : f32 to vector<1x64xf32>
    %c0_258 = arith.constant 0 : index
    %c0_259 = arith.constant 0 : index
    %346 = vector.load %arg28[%c0_258, %c0_259] : memref<24x128xf32, #tpu.memory_space<vmem>>, vector<1x64xf32>
    tpu.vector_store %arg28[%c0_258, %c0_259], %345 {strides = array<i32>} : memref<24x128xf32, #tpu.memory_space<vmem>>, vector<1x64xf32>,
    %c3 = arith.constant 3 : index
    %c0_260 = arith.constant 0 : index
    %347 = vector.load %arg28[%c3, %c0_260] : memref<24x128xf32, #tpu.memory_space<vmem>>, vector<1x64xf32>
    tpu.vector_store %arg28[%c3, %c0_260], %345 {strides = array<i32>} : memref<24x128xf32, #tpu.memory_space<vmem>>, vector<1x64xf32>,
    %c1_261 = arith.constant 1 : index
    %c0_262 = arith.constant 0 : index
    %348 = vector.load %arg28[%c1_261, %c0_262] : memref<24x128xf32, #tpu.memory_space<vmem>>, vector<2x64xf32>
    tpu.vector_store %arg28[%c1_261, %c0_262], %344 {strides = array<i32>} : memref<24x128xf32, #tpu.memory_space<vmem>>, vector<2x64xf32>,
    %cst_263 = arith.constant 0.000000e+00 : f32
    %349 = vector.broadcast %cst_263 : f32 to vector<2x128xf32>
    %c0_264 = arith.constant 0 : index
    %c0_265 = arith.constant 0 : index
    %350 = vector.load %arg28[%c0_264, %c0_265] : memref<24x128xf32, #tpu.memory_space<vmem>>, vector<2x64xf32>
    %351 = arith.truncf %350 : vector<2x64xf32> to vector<2x64xbf16>
    %c0_266 = arith.constant 0 : index
    %c0_267 = arith.constant 0 : index
    %c0_268 = arith.constant 0 : index
    %352 = vector.load %arg16[%c0_266, %c0_267, %c0_268] : memref<3x64x128xbf16, #tpu.memory_space<vmem>>, vector<1x64x128xbf16>
    %353 = vector.shape_cast %352 : vector<1x64x128xbf16> to vector<64x128xbf16>
    %cst_269 = arith.constant dense<0.000000e+00> : vector<2x128xf32>
    %354 = tpu.matmul %351, %353, %cst_269 {dimension_numbers = #tpu.dot_dimension_numbers<[1], [0], [0], [1], [0, 0, 1, 1], [], []>} : vector<2x64xbf16>, vector<64x128xbf16>, vector<2x128xf32> -> vector<2x128xf32>
    %355 = arith.addf %349, %354 : vector<2x128xf32>
    %c1_270 = arith.constant 1 : index
    %c0_271 = arith.constant 0 : index
    %356 = vector.load %arg28[%c1_270, %c0_271] : memref<24x128xf32, #tpu.memory_space<vmem>>, vector<2x64xf32>
    %357 = arith.truncf %356 : vector<2x64xf32> to vector<2x64xbf16>
    %c1_272 = arith.constant 1 : index
    %c0_273 = arith.constant 0 : index
    %c0_274 = arith.constant 0 : index
    %358 = vector.load %arg16[%c1_272, %c0_273, %c0_274] : memref<3x64x128xbf16, #tpu.memory_space<vmem>>, vector<1x64x128xbf16>
    %359 = vector.shape_cast %358 : vector<1x64x128xbf16> to vector<64x128xbf16>
    %cst_275 = arith.constant dense<0.000000e+00> : vector<2x128xf32>
    %360 = tpu.matmul %357, %359, %cst_275 {dimension_numbers = #tpu.dot_dimension_numbers<[1], [0], [0], [1], [0, 0, 1, 1], [], []>} : vector<2x64xbf16>, vector<64x128xbf16>, vector<2x128xf32> -> vector<2x128xf32>
    %361 = arith.addf %355, %360 : vector<2x128xf32>
    %c2_276 = arith.constant 2 : index
    %c0_277 = arith.constant 0 : index
    %362 = vector.load %arg28[%c2_276, %c0_277] : memref<24x128xf32, #tpu.memory_space<vmem>>, vector<2x64xf32>
    %363 = arith.truncf %362 : vector<2x64xf32> to vector<2x64xbf16>
    %c2_278 = arith.constant 2 : index
    %c0_279 = arith.constant 0 : index
    %c0_280 = arith.constant 0 : index
    %364 = vector.load %arg16[%c2_278, %c0_279, %c0_280] : memref<3x64x128xbf16, #tpu.memory_space<vmem>>, vector<1x64x128xbf16>
    %365 = vector.shape_cast %364 : vector<1x64x128xbf16> to vector<64x128xbf16>
    %cst_281 = arith.constant dense<0.000000e+00> : vector<2x128xf32>
    %366 = tpu.matmul %363, %365, %cst_281 {dimension_numbers = #tpu.dot_dimension_numbers<[1], [0], [0], [1], [0, 0, 1, 1], [], []>} : vector<2x64xbf16>, vector<64x128xbf16>, vector<2x128xf32> -> vector<2x128xf32>
    %367 = arith.addf %361, %366 : vector<2x128xf32>
    %c0_282 = arith.constant 0 : index
    %c0_283 = arith.constant 0 : index
    %368 = vector.load %arg17[%c0_282, %c0_283] : memref<1x128xf32, #tpu.memory_space<vmem>>, vector<1x128xf32>
    %369 = vector.broadcast %368 : vector<1x128xf32> to vector<2x128xf32>
    %370 = arith.addf %367, %369 : vector<2x128xf32>
    %cst_284 = arith.constant 0.000000e+00 : f32
    %371 = vector.broadcast %cst_284 : f32 to vector<2x128xf32>
    %372 = arith.maximumf %370, %371 : vector<2x128xf32>
    %cst_285 = arith.constant 0.000000e+00 : f32
    %373 = vector.broadcast %cst_285 : f32 to vector<1x128xf32>
    %c0_286 = arith.constant 0 : index
    %c0_287 = arith.constant 0 : index
    %374 = vector.load %arg27[%c0_286, %c0_287] : memref<24x128xf32, #tpu.memory_space<vmem>>, vector<1x128xf32>
    tpu.vector_store %arg27[%c0_286, %c0_287], %373 {strides = array<i32>} : memref<24x128xf32, #tpu.memory_space<vmem>>, vector<1x128xf32>,
    %c3_288 = arith.constant 3 : index
    %c0_289 = arith.constant 0 : index
    %375 = vector.load %arg27[%c3_288, %c0_289] : memref<24x128xf32, #tpu.memory_space<vmem>>, vector<1x128xf32>
    tpu.vector_store %arg27[%c3_288, %c0_289], %373 {strides = array<i32>} : memref<24x128xf32, #tpu.memory_space<vmem>>, vector<1x128xf32>,
    %c1_290 = arith.constant 1 : index
    %c0_291 = arith.constant 0 : index
    %376 = vector.load %arg27[%c1_290, %c0_291] : memref<24x128xf32, #tpu.memory_space<vmem>>, vector<2x128xf32>
    tpu.vector_store %arg27[%c1_290, %c0_291], %372 {strides = array<i32>} : memref<24x128xf32, #tpu.memory_space<vmem>>, vector<2x128xf32>,
    %cst_292 = arith.constant 0.000000e+00 : f32
    %377 = vector.broadcast %cst_292 : f32 to vector<2x128xf32>
    %c0_293 = arith.constant 0 : index
    %c0_294 = arith.constant 0 : index
    %378 = vector.load %arg27[%c0_293, %c0_294] : memref<24x128xf32, #tpu.memory_space<vmem>>, vector<2x128xf32>
    %379 = arith.truncf %378 : vector<2x128xf32> to vector<2x128xbf16>
    %c0_295 = arith.constant 0 : index
    %c0_296 = arith.constant 0 : index
    %c0_297 = arith.constant 0 : index
    %380 = vector.load %arg18[%c0_295, %c0_296, %c0_297] : memref<3x128x128xbf16, #tpu.memory_space<vmem>>, vector<1x128x128xbf16>
    %381 = vector.shape_cast %380 : vector<1x128x128xbf16> to vector<128x128xbf16>
    %cst_298 = arith.constant dense<0.000000e+00> : vector<2x128xf32>
    %382 = tpu.matmul %379, %381, %cst_298 {dimension_numbers = #tpu.dot_dimension_numbers<[1], [0], [0], [1], [0, 0, 1, 1], [], []>} : vector<2x128xbf16>, vector<128x128xbf16>, vector<2x128xf32> -> vector<2x128xf32>
    %383 = arith.addf %377, %382 : vector<2x128xf32>
    %c1_299 = arith.constant 1 : index
    %c0_300 = arith.constant 0 : index
    %384 = vector.load %arg27[%c1_299, %c0_300] : memref<24x128xf32, #tpu.memory_space<vmem>>, vector<2x128xf32>
    %385 = arith.truncf %384 : vector<2x128xf32> to vector<2x128xbf16>
    %c1_301 = arith.constant 1 : index
    %c0_302 = arith.constant 0 : index
    %c0_303 = arith.constant 0 : index
    %386 = vector.load %arg18[%c1_301, %c0_302, %c0_303] : memref<3x128x128xbf16, #tpu.memory_space<vmem>>, vector<1x128x128xbf16>
    %387 = vector.shape_cast %386 : vector<1x128x128xbf16> to vector<128x128xbf16>
    %cst_304 = arith.constant dense<0.000000e+00> : vector<2x128xf32>
    %388 = tpu.matmul %385, %387, %cst_304 {dimension_numbers = #tpu.dot_dimension_numbers<[1], [0], [0], [1], [0, 0, 1, 1], [], []>} : vector<2x128xbf16>, vector<128x128xbf16>, vector<2x128xf32> -> vector<2x128xf32>
    %389 = arith.addf %383, %388 : vector<2x128xf32>
    %c2_305 = arith.constant 2 : index
    %c0_306 = arith.constant 0 : index
    %390 = vector.load %arg27[%c2_305, %c0_306] : memref<24x128xf32, #tpu.memory_space<vmem>>, vector<2x128xf32>
    %391 = arith.truncf %390 : vector<2x128xf32> to vector<2x128xbf16>
    %c2_307 = arith.constant 2 : index
    %c0_308 = arith.constant 0 : index
    %c0_309 = arith.constant 0 : index
    %392 = vector.load %arg18[%c2_307, %c0_308, %c0_309] : memref<3x128x128xbf16, #tpu.memory_space<vmem>>, vector<1x128x128xbf16>
    %393 = vector.shape_cast %392 : vector<1x128x128xbf16> to vector<128x128xbf16>
    %cst_310 = arith.constant dense<0.000000e+00> : vector<2x128xf32>
    %394 = tpu.matmul %391, %393, %cst_310 {dimension_numbers = #tpu.dot_dimension_numbers<[1], [0], [0], [1], [0, 0, 1, 1], [], []>} : vector<2x128xbf16>, vector<128x128xbf16>, vector<2x128xf32> -> vector<2x128xf32>
    %395 = arith.addf %389, %394 : vector<2x128xf32>
    %c0_311 = arith.constant 0 : index
    %c0_312 = arith.constant 0 : index
    %396 = vector.load %arg19[%c0_311, %c0_312] : memref<1x128xf32, #tpu.memory_space<vmem>>, vector<1x128xf32>
    %397 = vector.broadcast %396 : vector<1x128xf32> to vector<2x128xf32>
    %398 = arith.addf %395, %397 : vector<2x128xf32>
    %cst_313 = arith.constant 0.000000e+00 : f32
    %399 = vector.broadcast %cst_313 : f32 to vector<2x128xf32>
    %400 = arith.maximumf %398, %399 : vector<2x128xf32>
    %cst_314 = arith.constant 0.000000e+00 : f32
    %401 = vector.broadcast %cst_314 : f32 to vector<1x128xf32>
    %c0_315 = arith.constant 0 : index
    %c0_316 = arith.constant 0 : index
    %402 = vector.load %arg28[%c0_315, %c0_316] : memref<24x128xf32, #tpu.memory_space<vmem>>, vector<1x128xf32>
    tpu.vector_store %arg28[%c0_315, %c0_316], %401 {strides = array<i32>} : memref<24x128xf32, #tpu.memory_space<vmem>>, vector<1x128xf32>,
    %c3_317 = arith.constant 3 : index
    %c0_318 = arith.constant 0 : index
    %403 = vector.load %arg28[%c3_317, %c0_318] : memref<24x128xf32, #tpu.memory_space<vmem>>, vector<1x128xf32>
    tpu.vector_store %arg28[%c3_317, %c0_318], %401 {strides = array<i32>} : memref<24x128xf32, #tpu.memory_space<vmem>>, vector<1x128xf32>,
    %c1_319 = arith.constant 1 : index
    %c0_320 = arith.constant 0 : index
    %404 = vector.load %arg28[%c1_319, %c0_320] : memref<24x128xf32, #tpu.memory_space<vmem>>, vector<2x128xf32>
    tpu.vector_store %arg28[%c1_319, %c0_320], %400 {strides = array<i32>} : memref<24x128xf32, #tpu.memory_space<vmem>>, vector<2x128xf32>,
    %cst_321 = arith.constant 0.000000e+00 : f32
    %405 = vector.broadcast %cst_321 : f32 to vector<2x128xf32>
    %c0_322 = arith.constant 0 : index
    %c0_323 = arith.constant 0 : index
    %406 = vector.load %arg28[%c0_322, %c0_323] : memref<24x128xf32, #tpu.memory_space<vmem>>, vector<2x128xf32>
    %407 = arith.truncf %406 : vector<2x128xf32> to vector<2x128xbf16>
    %c0_324 = arith.constant 0 : index
    %c0_325 = arith.constant 0 : index
    %c0_326 = arith.constant 0 : index
    %408 = vector.load %arg20[%c0_324, %c0_325, %c0_326] : memref<3x128x128xbf16, #tpu.memory_space<vmem>>, vector<1x128x128xbf16>
    %409 = vector.shape_cast %408 : vector<1x128x128xbf16> to vector<128x128xbf16>
    %cst_327 = arith.constant dense<0.000000e+00> : vector<2x128xf32>
    %410 = tpu.matmul %407, %409, %cst_327 {dimension_numbers = #tpu.dot_dimension_numbers<[1], [0], [0], [1], [0, 0, 1, 1], [], []>} : vector<2x128xbf16>, vector<128x128xbf16>, vector<2x128xf32> -> vector<2x128xf32>
    %411 = arith.addf %405, %410 : vector<2x128xf32>
    %c1_328 = arith.constant 1 : index
    %c0_329 = arith.constant 0 : index
    %412 = vector.load %arg28[%c1_328, %c0_329] : memref<24x128xf32, #tpu.memory_space<vmem>>, vector<2x128xf32>
    %413 = arith.truncf %412 : vector<2x128xf32> to vector<2x128xbf16>
    %c1_330 = arith.constant 1 : index
    %c0_331 = arith.constant 0 : index
    %c0_332 = arith.constant 0 : index
    %414 = vector.load %arg20[%c1_330, %c0_331, %c0_332] : memref<3x128x128xbf16, #tpu.memory_space<vmem>>, vector<1x128x128xbf16>
    %415 = vector.shape_cast %414 : vector<1x128x128xbf16> to vector<128x128xbf16>
    %cst_333 = arith.constant dense<0.000000e+00> : vector<2x128xf32>
    %416 = tpu.matmul %413, %415, %cst_333 {dimension_numbers = #tpu.dot_dimension_numbers<[1], [0], [0], [1], [0, 0, 1, 1], [], []>} : vector<2x128xbf16>, vector<128x128xbf16>, vector<2x128xf32> -> vector<2x128xf32>
    %417 = arith.addf %411, %416 : vector<2x128xf32>
    %c2_334 = arith.constant 2 : index
    %c0_335 = arith.constant 0 : index
    %418 = vector.load %arg28[%c2_334, %c0_335] : memref<24x128xf32, #tpu.memory_space<vmem>>, vector<2x128xf32>
    %419 = arith.truncf %418 : vector<2x128xf32> to vector<2x128xbf16>
    %c2_336 = arith.constant 2 : index
    %c0_337 = arith.constant 0 : index
    %c0_338 = arith.constant 0 : index
    %420 = vector.load %arg20[%c2_336, %c0_337, %c0_338] : memref<3x128x128xbf16, #tpu.memory_space<vmem>>, vector<1x128x128xbf16>
    %421 = vector.shape_cast %420 : vector<1x128x128xbf16> to vector<128x128xbf16>
    %cst_339 = arith.constant dense<0.000000e+00> : vector<2x128xf32>
    %422 = tpu.matmul %419, %421, %cst_339 {dimension_numbers = #tpu.dot_dimension_numbers<[1], [0], [0], [1], [0, 0, 1, 1], [], []>} : vector<2x128xbf16>, vector<128x128xbf16>, vector<2x128xf32> -> vector<2x128xf32>
    %423 = arith.addf %417, %422 : vector<2x128xf32>
    %c0_340 = arith.constant 0 : index
    %c0_341 = arith.constant 0 : index
    %424 = vector.load %arg21[%c0_340, %c0_341] : memref<1x128xf32, #tpu.memory_space<vmem>>, vector<1x128xf32>
    %425 = vector.broadcast %424 : vector<1x128xf32> to vector<2x128xf32>
    %426 = arith.addf %423, %425 : vector<2x128xf32>
    %cst_342 = arith.constant 0.000000e+00 : f32
    %427 = vector.broadcast %cst_342 : f32 to vector<2x128xf32>
    %428 = arith.maximumf %426, %427 : vector<2x128xf32>
    %429 = tpu.iota {dimensions = array<i32: 0>} : vector<128x64xi32>
    %430 = tpu.iota {dimensions = array<i32: 1>} : vector<128x64xi32>
    %c63_i32 = arith.constant 63 : i32
    %431 = vector.broadcast %c63_i32 : i32 to vector<128x64xi32>
    %432 = arith.andi %429, %431 : vector<128x64xi32>
    %c63_i32_343 = arith.constant 63 : i32
    %433 = vector.broadcast %c63_i32_343 : i32 to vector<128x64xi32>
    %434 = arith.andi %430, %433 : vector<128x64xi32>
    %435 = arith.cmpi eq, %432, %434 : vector<128x64xi32>
    %c6_i32 = arith.constant 6 : i32
    %436 = vector.broadcast %c6_i32 : i32 to vector<128x64xi32>
    %437 = arith.shrsi %429, %436 : vector<128x64xi32>
    %c6_i32_344 = arith.constant 6 : i32
    %438 = vector.broadcast %c6_i32_344 : i32 to vector<128x64xi32>
    %439 = arith.shrsi %430, %438 : vector<128x64xi32>
    %c2_i32_345 = arith.constant 2 : i32
    %440 = vector.broadcast %c2_i32_345 : i32 to vector<128x64xi32>
    %441 = arith.muli %440, %439 : vector<128x64xi32>
    %442 = arith.cmpi eq, %437, %441 : vector<128x64xi32>
    %443 = arith.andi %435, %442 : vector<128x64xi1>
    %cst_346 = arith.constant 1.000000e+00 : f32
    %cst_347 = arith.constant 0.000000e+00 : f32
    %444 = vector.broadcast %cst_346 : f32 to vector<128x64xf32>
    %445 = vector.broadcast %cst_347 : f32 to vector<128x64xf32>
    %446 = arith.select %443, %444, %445 : vector<128x64xi1>, vector<128x64xf32>
    %c2_i32_348 = arith.constant 2 : i32
    %447 = vector.broadcast %c2_i32_348 : i32 to vector<128x64xi32>
    %448 = arith.muli %447, %439 : vector<128x64xi32>
    %c1_i32_349 = arith.constant 1 : i32
    %449 = vector.broadcast %c1_i32_349 : i32 to vector<128x64xi32>
    %450 = arith.addi %448, %449 : vector<128x64xi32>
    %451 = arith.cmpi eq, %437, %450 : vector<128x64xi32>
    %452 = arith.andi %435, %451 : vector<128x64xi1>
    %cst_350 = arith.constant 1.000000e+00 : f32
    %cst_351 = arith.constant 0.000000e+00 : f32
    %453 = vector.broadcast %cst_350 : f32 to vector<128x64xf32>
    %454 = vector.broadcast %cst_351 : f32 to vector<128x64xf32>
    %455 = arith.select %452, %453, %454 : vector<128x64xi1>, vector<128x64xf32>
    %cst_352 = arith.constant dense<0.000000e+00> : vector<2x64xf32>
    %456 = tpu.matmul %428, %446, %cst_352 {dimension_numbers = #tpu.dot_dimension_numbers<[1], [0], [0], [1], [0, 0, 1, 1], [], []>} : vector<2x128xf32>, vector<128x64xf32>, vector<2x64xf32> -> vector<2x64xf32>
    %cst_353 = arith.constant dense<0.000000e+00> : vector<2x64xf32>
    %457 = tpu.matmul %428, %455, %cst_353 {dimension_numbers = #tpu.dot_dimension_numbers<[1], [0], [0], [1], [0, 0, 1, 1], [], []>} : vector<2x128xf32>, vector<128x64xf32>, vector<2x64xf32> -> vector<2x64xf32>
    %458 = arith.maximumf %456, %457 : vector<2x64xf32>
    %459 = tpu.iota {dimensions = array<i32: 0>} : vector<1x2xi32>
    %460 = tpu.iota {dimensions = array<i32: 1>} : vector<1x2xi32>
    %c2_i32_354 = arith.constant 2 : i32
    %461 = vector.broadcast %c2_i32_354 : i32 to vector<1x2xi32>
    %462 = arith.muli %461, %459 : vector<1x2xi32>
    %463 = arith.cmpi eq, %460, %462 : vector<1x2xi32>
    %cst_355 = arith.constant 1.000000e+00 : f32
    %cst_356 = arith.constant 0.000000e+00 : f32
    %464 = vector.broadcast %cst_355 : f32 to vector<1x2xf32>
    %465 = vector.broadcast %cst_356 : f32 to vector<1x2xf32>
    %466 = arith.select %463, %464, %465 : vector<1x2xi1>, vector<1x2xf32>
    %c2_i32_357 = arith.constant 2 : i32
    %467 = vector.broadcast %c2_i32_357 : i32 to vector<1x2xi32>
    %468 = arith.muli %467, %459 : vector<1x2xi32>
    %c1_i32_358 = arith.constant 1 : i32
    %469 = vector.broadcast %c1_i32_358 : i32 to vector<1x2xi32>
    %470 = arith.addi %468, %469 : vector<1x2xi32>
    %471 = arith.cmpi eq, %460, %470 : vector<1x2xi32>
    %cst_359 = arith.constant 1.000000e+00 : f32
    %cst_360 = arith.constant 0.000000e+00 : f32
    %472 = vector.broadcast %cst_359 : f32 to vector<1x2xf32>
    %473 = vector.broadcast %cst_360 : f32 to vector<1x2xf32>
    %474 = arith.select %471, %472, %473 : vector<1x2xi1>, vector<1x2xf32>
    %cst_361 = arith.constant dense<0.000000e+00> : vector<1x64xf32>
    %475 = tpu.matmul %466, %458, %cst_361 {dimension_numbers = #tpu.dot_dimension_numbers<[1], [0], [0], [1], [0, 0, 1, 1], [], []>} : vector<1x2xf32>, vector<2x64xf32>, vector<1x64xf32> -> vector<1x64xf32>
    %cst_362 = arith.constant dense<0.000000e+00> : vector<1x64xf32>
    %476 = tpu.matmul %474, %458, %cst_362 {dimension_numbers = #tpu.dot_dimension_numbers<[1], [0], [0], [1], [0, 0, 1, 1], [], []>} : vector<1x2xf32>, vector<2x64xf32>, vector<1x64xf32> -> vector<1x64xf32>
    %477 = arith.maximumf %475, %476 : vector<1x64xf32>
    %cst_363 = arith.constant 0.000000e+00 : f32
    %478 = vector.broadcast %cst_363 : f32 to vector<1x64xf32>
    %c0_364 = arith.constant 0 : index
    %c0_365 = arith.constant 0 : index
    %479 = vector.load %arg27[%c0_364, %c0_365] : memref<24x128xf32, #tpu.memory_space<vmem>>, vector<1x64xf32>
    tpu.vector_store %arg27[%c0_364, %c0_365], %478 {strides = array<i32>} : memref<24x128xf32, #tpu.memory_space<vmem>>, vector<1x64xf32>,
    %c2_366 = arith.constant 2 : index
    %c0_367 = arith.constant 0 : index
    %480 = vector.load %arg27[%c2_366, %c0_367] : memref<24x128xf32, #tpu.memory_space<vmem>>, vector<1x64xf32>
    tpu.vector_store %arg27[%c2_366, %c0_367], %478 {strides = array<i32>} : memref<24x128xf32, #tpu.memory_space<vmem>>, vector<1x64xf32>,
    %c1_368 = arith.constant 1 : index
    %c0_369 = arith.constant 0 : index
    %481 = vector.load %arg27[%c1_368, %c0_369] : memref<24x128xf32, #tpu.memory_space<vmem>>, vector<1x64xf32>
    tpu.vector_store %arg27[%c1_368, %c0_369], %477 {strides = array<i32>} : memref<24x128xf32, #tpu.memory_space<vmem>>, vector<1x64xf32>,
    %cst_370 = arith.constant 0.000000e+00 : f32
    %482 = vector.broadcast %cst_370 : f32 to vector<1x64xf32>
    %c0_371 = arith.constant 0 : index
    %c0_372 = arith.constant 0 : index
    %483 = vector.load %arg27[%c0_371, %c0_372] : memref<24x128xf32, #tpu.memory_space<vmem>>, vector<1x64xf32>
    %484 = arith.truncf %483 : vector<1x64xf32> to vector<1x64xbf16>
    %c0_373 = arith.constant 0 : index
    %c0_374 = arith.constant 0 : index
    %c0_375 = arith.constant 0 : index
    %485 = vector.load %arg22[%c0_373, %c0_374, %c0_375] : memref<3x64x64xbf16, #tpu.memory_space<vmem>>, vector<1x64x64xbf16>
    %486 = vector.shape_cast %485 : vector<1x64x64xbf16> to vector<64x64xbf16>
    %cst_376 = arith.constant dense<0.000000e+00> : vector<1x64xf32>
    %487 = tpu.matmul %484, %486, %cst_376 {dimension_numbers = #tpu.dot_dimension_numbers<[1], [0], [0], [1], [0, 0, 1, 1], [], []>} : vector<1x64xbf16>, vector<64x64xbf16>, vector<1x64xf32> -> vector<1x64xf32>
    %488 = arith.addf %482, %487 : vector<1x64xf32>
    %c1_377 = arith.constant 1 : index
    %c0_378 = arith.constant 0 : index
    %489 = vector.load %arg27[%c1_377, %c0_378] : memref<24x128xf32, #tpu.memory_space<vmem>>, vector<1x64xf32>
    %490 = arith.truncf %489 : vector<1x64xf32> to vector<1x64xbf16>
    %c1_379 = arith.constant 1 : index
    %c0_380 = arith.constant 0 : index
    %c0_381 = arith.constant 0 : index
    %491 = vector.load %arg22[%c1_379, %c0_380, %c0_381] : memref<3x64x64xbf16, #tpu.memory_space<vmem>>, vector<1x64x64xbf16>
    %492 = vector.shape_cast %491 : vector<1x64x64xbf16> to vector<64x64xbf16>
    %cst_382 = arith.constant dense<0.000000e+00> : vector<1x64xf32>
    %493 = tpu.matmul %490, %492, %cst_382 {dimension_numbers = #tpu.dot_dimension_numbers<[1], [0], [0], [1], [0, 0, 1, 1], [], []>} : vector<1x64xbf16>, vector<64x64xbf16>, vector<1x64xf32> -> vector<1x64xf32>
    %494 = arith.addf %488, %493 : vector<1x64xf32>
    %c2_383 = arith.constant 2 : index
    %c0_384 = arith.constant 0 : index
    %495 = vector.load %arg27[%c2_383, %c0_384] : memref<24x128xf32, #tpu.memory_space<vmem>>, vector<1x64xf32>
    %496 = arith.truncf %495 : vector<1x64xf32> to vector<1x64xbf16>
    %c2_385 = arith.constant 2 : index
    %c0_386 = arith.constant 0 : index
    %c0_387 = arith.constant 0 : index
    %497 = vector.load %arg22[%c2_385, %c0_386, %c0_387] : memref<3x64x64xbf16, #tpu.memory_space<vmem>>, vector<1x64x64xbf16>
    %498 = vector.shape_cast %497 : vector<1x64x64xbf16> to vector<64x64xbf16>
    %cst_388 = arith.constant dense<0.000000e+00> : vector<1x64xf32>
    %499 = tpu.matmul %496, %498, %cst_388 {dimension_numbers = #tpu.dot_dimension_numbers<[1], [0], [0], [1], [0, 0, 1, 1], [], []>} : vector<1x64xbf16>, vector<64x64xbf16>, vector<1x64xf32> -> vector<1x64xf32>
    %500 = arith.addf %494, %499 : vector<1x64xf32>
    %c0_389 = arith.constant 0 : index
    %c0_390 = arith.constant 0 : index
    %501 = vector.load %arg23[%c0_389, %c0_390] : memref<1x64xf32, #tpu.memory_space<vmem>>, vector<1x64xf32>
    %502 = arith.addf %500, %501 : vector<1x64xf32>
    %cst_391 = arith.constant 0.000000e+00 : f32
    %503 = vector.broadcast %cst_391 : f32 to vector<1x64xf32>
    %504 = arith.maximumf %502, %503 : vector<1x64xf32>
    %cst_392 = arith.constant 0.000000e+00 : f32
    %505 = vector.broadcast %cst_392 : f32 to vector<1x64xf32>
    %c0_393 = arith.constant 0 : index
    %c0_394 = arith.constant 0 : index
    %506 = vector.load %arg28[%c0_393, %c0_394] : memref<24x128xf32, #tpu.memory_space<vmem>>, vector<1x64xf32>
    tpu.vector_store %arg28[%c0_393, %c0_394], %505 {strides = array<i32>} : memref<24x128xf32, #tpu.memory_space<vmem>>, vector<1x64xf32>,
    %c2_395 = arith.constant 2 : index
    %c0_396 = arith.constant 0 : index
    %507 = vector.load %arg28[%c2_395, %c0_396] : memref<24x128xf32, #tpu.memory_space<vmem>>, vector<1x64xf32>
    tpu.vector_store %arg28[%c2_395, %c0_396], %505 {strides = array<i32>} : memref<24x128xf32, #tpu.memory_space<vmem>>, vector<1x64xf32>,
    %c1_397 = arith.constant 1 : index
    %c0_398 = arith.constant 0 : index
    %508 = vector.load %arg28[%c1_397, %c0_398] : memref<24x128xf32, #tpu.memory_space<vmem>>, vector<1x64xf32>
    tpu.vector_store %arg28[%c1_397, %c0_398], %504 {strides = array<i32>} : memref<24x128xf32, #tpu.memory_space<vmem>>, vector<1x64xf32>,
    %cst_399 = arith.constant 0.000000e+00 : f32
    %509 = vector.broadcast %cst_399 : f32 to vector<1x64xf32>
    %c0_400 = arith.constant 0 : index
    %c0_401 = arith.constant 0 : index
    %510 = vector.load %arg28[%c0_400, %c0_401] : memref<24x128xf32, #tpu.memory_space<vmem>>, vector<1x64xf32>
    %511 = arith.truncf %510 : vector<1x64xf32> to vector<1x64xbf16>
    %c0_402 = arith.constant 0 : index
    %c0_403 = arith.constant 0 : index
    %c0_404 = arith.constant 0 : index
    %512 = vector.load %arg24[%c0_402, %c0_403, %c0_404] : memref<3x64x64xbf16, #tpu.memory_space<vmem>>, vector<1x64x64xbf16>
    %513 = vector.shape_cast %512 : vector<1x64x64xbf16> to vector<64x64xbf16>
    %cst_405 = arith.constant dense<0.000000e+00> : vector<1x64xf32>
    %514 = tpu.matmul %511, %513, %cst_405 {dimension_numbers = #tpu.dot_dimension_numbers<[1], [0], [0], [1], [0, 0, 1, 1], [], []>} : vector<1x64xbf16>, vector<64x64xbf16>, vector<1x64xf32> -> vector<1x64xf32>
    %515 = arith.addf %509, %514 : vector<1x64xf32>
    %c1_406 = arith.constant 1 : index
    %c0_407 = arith.constant 0 : index
    %516 = vector.load %arg28[%c1_406, %c0_407] : memref<24x128xf32, #tpu.memory_space<vmem>>, vector<1x64xf32>
    %517 = arith.truncf %516 : vector<1x64xf32> to vector<1x64xbf16>
    %c1_408 = arith.constant 1 : index
    %c0_409 = arith.constant 0 : index
    %c0_410 = arith.constant 0 : index
    %518 = vector.load %arg24[%c1_408, %c0_409, %c0_410] : memref<3x64x64xbf16, #tpu.memory_space<vmem>>, vector<1x64x64xbf16>
    %519 = vector.shape_cast %518 : vector<1x64x64xbf16> to vector<64x64xbf16>
    %cst_411 = arith.constant dense<0.000000e+00> : vector<1x64xf32>
    %520 = tpu.matmul %517, %519, %cst_411 {dimension_numbers = #tpu.dot_dimension_numbers<[1], [0], [0], [1], [0, 0, 1, 1], [], []>} : vector<1x64xbf16>, vector<64x64xbf16>, vector<1x64xf32> -> vector<1x64xf32>
    %521 = arith.addf %515, %520 : vector<1x64xf32>
    %c2_412 = arith.constant 2 : index
    %c0_413 = arith.constant 0 : index
    %522 = vector.load %arg28[%c2_412, %c0_413] : memref<24x128xf32, #tpu.memory_space<vmem>>, vector<1x64xf32>
    %523 = arith.truncf %522 : vector<1x64xf32> to vector<1x64xbf16>
    %c2_414 = arith.constant 2 : index
    %c0_415 = arith.constant 0 : index
    %c0_416 = arith.constant 0 : index
    %524 = vector.load %arg24[%c2_414, %c0_415, %c0_416] : memref<3x64x64xbf16, #tpu.memory_space<vmem>>, vector<1x64x64xbf16>
    %525 = vector.shape_cast %524 : vector<1x64x64xbf16> to vector<64x64xbf16>
    %cst_417 = arith.constant dense<0.000000e+00> : vector<1x64xf32>
    %526 = tpu.matmul %523, %525, %cst_417 {dimension_numbers = #tpu.dot_dimension_numbers<[1], [0], [0], [1], [0, 0, 1, 1], [], []>} : vector<1x64xbf16>, vector<64x64xbf16>, vector<1x64xf32> -> vector<1x64xf32>
    %527 = arith.addf %521, %526 : vector<1x64xf32>
    %c0_418 = arith.constant 0 : index
    %c0_419 = arith.constant 0 : index
    %528 = vector.load %arg25[%c0_418, %c0_419] : memref<1x64xf32, #tpu.memory_space<vmem>>, vector<1x64xf32>
    %529 = arith.addf %527, %528 : vector<1x64xf32>
    %cst_420 = arith.constant 0.000000e+00 : f32
    %530 = vector.broadcast %cst_420 : f32 to vector<1x64xf32>
    %531 = arith.maximumf %529, %530 : vector<1x64xf32>
    %c0_421 = arith.constant 0 : index
    %c0_422 = arith.constant 0 : index
    %c0_423 = arith.constant 0 : index
    %532 = vector.load %arg26[%c0_421, %c0_422, %c0_423] : memref<1x1x64xf32, #tpu.memory_space<vmem>>, vector<1x1x64xf32>
    %533 = vector.shape_cast %532 : vector<1x1x64xf32> to vector<1x64xf32>
    %534 = vector.shape_cast %531 : vector<1x64xf32> to vector<1x1x64xf32>
    tpu.vector_store %arg26[%c0_421, %c0_422, %c0_423], %534 {strides = array<i32>} : memref<1x1x64xf32, #tpu.memory_space<vmem>>, vector<1x1x64xf32>,
    return
  }
  func.func @transform_0(%arg0: i32) -> (i32, i32, i32) {
    %c0_i32 = arith.constant 0 : i32
    %c0_i32_0 = arith.constant 0 : i32
    %c0_i32_1 = arith.constant 0 : i32
    return %arg0, %c0_i32, %c0_i32_0 : i32, i32, i32
  }
  func.func @transform_1(%arg0: i32) -> (i32, i32, i32) {
    %c0_i32 = arith.constant 0 : i32
    %c0_i32_0 = arith.constant 0 : i32
    %c0_i32_1 = arith.constant 0 : i32
    %c0_i32_2 = arith.constant 0 : i32
    return %c0_i32, %c0_i32_0, %c0_i32_1 : i32, i32, i32
  }
  func.func @transform_2(%arg0: i32) -> (i32, i32) {
    %c0_i32 = arith.constant 0 : i32
    %c0_i32_0 = arith.constant 0 : i32
    %c0_i32_1 = arith.constant 0 : i32
    return %c0_i32, %c0_i32_0 : i32, i32
  }
  func.func @transform_3(%arg0: i32) -> (i32, i32, i32) {
    %c0_i32 = arith.constant 0 : i32
    %c0_i32_0 = arith.constant 0 : i32
    %c0_i32_1 = arith.constant 0 : i32
    %c0_i32_2 = arith.constant 0 : i32
    return %c0_i32, %c0_i32_0, %c0_i32_1 : i32, i32, i32
  }
  func.func @transform_4(%arg0: i32) -> (i32, i32) {
    %c0_i32 = arith.constant 0 : i32
    %c0_i32_0 = arith.constant 0 : i32
    %c0_i32_1 = arith.constant 0 : i32
    return %c0_i32, %c0_i32_0 : i32, i32
  }
  func.func @transform_5(%arg0: i32) -> (i32, i32, i32) {
    %c0_i32 = arith.constant 0 : i32
    %c0_i32_0 = arith.constant 0 : i32
    %c0_i32_1 = arith.constant 0 : i32
    %c0_i32_2 = arith.constant 0 : i32
    return %c0_i32, %c0_i32_0, %c0_i32_1 : i32, i32, i32
  }
  func.func @transform_6(%arg0: i32) -> (i32, i32) {
    %c0_i32 = arith.constant 0 : i32
    %c0_i32_0 = arith.constant 0 : i32
    %c0_i32_1 = arith.constant 0 : i32
    return %c0_i32, %c0_i32_0 : i32, i32
  }
  func.func @transform_7(%arg0: i32) -> (i32, i32, i32) {
    %c0_i32 = arith.constant 0 : i32
    %c0_i32_0 = arith.constant 0 : i32
    %c0_i32_1 = arith.constant 0 : i32
    %c0_i32_2 = arith.constant 0 : i32
    return %c0_i32, %c0_i32_0, %c0_i32_1 : i32, i32, i32
  }
  func.func @transform_8(%arg0: i32) -> (i32, i32) {
    %c0_i32 = arith.constant 0 : i32
    %c0_i32_0 = arith.constant 0 : i32
    %c0_i32_1 = arith.constant 0 : i32
    return %c0_i32, %c0_i32_0 : i32, i32
  }
  func.func @transform_9(%arg0: i32) -> (i32, i32, i32) {
    %c0_i32 = arith.constant 0 : i32
    %c0_i32_0 = arith.constant 0 : i32
    %c0_i32_1 = arith.constant 0 : i32
    %c0_i32_2 = arith.constant 0 : i32
    return %c0_i32, %c0_i32_0, %c0_i32_1 : i32, i32, i32
  }
  func.func @transform_10(%arg0: i32) -> (i32, i32) {
    %c0_i32 = arith.constant 0 : i32
    %c0_i32_0 = arith.constant 0 : i32
    %c0_i32_1 = arith.constant 0 : i32
    return %c0_i32, %c0_i32_0 : i32, i32
  }
  func.func @transform_11(%arg0: i32) -> (i32, i32, i32) {
    %c0_i32 = arith.constant 0 : i32
    %c0_i32_0 = arith.constant 0 : i32
    %c0_i32_1 = arith.constant 0 : i32
    %c0_i32_2 = arith.constant 0 : i32
    return %c0_i32, %c0_i32_0, %c0_i32_1 : i32, i32, i32
  }
  func.func @transform_12(%arg0: i32) -> (i32, i32) {
    %c0_i32 = arith.constant 0 : i32
    %c0_i32_0 = arith.constant 0 : i32
    %c0_i32_1 = arith.constant 0 : i32
    return %c0_i32, %c0_i32_0 : i32, i32
  }
  func.func @transform_13(%arg0: i32) -> (i32, i32, i32) {
    %c0_i32 = arith.constant 0 : i32
    %c0_i32_0 = arith.constant 0 : i32
    %c0_i32_1 = arith.constant 0 : i32
    %c0_i32_2 = arith.constant 0 : i32
    return %c0_i32, %c0_i32_0, %c0_i32_1 : i32, i32, i32
  }
  func.func @transform_14(%arg0: i32) -> (i32, i32) {
    %c0_i32 = arith.constant 0 : i32
    %c0_i32_0 = arith.constant 0 : i32
    %c0_i32_1 = arith.constant 0 : i32
    return %c0_i32, %c0_i32_0 : i32, i32
  }
  func.func @transform_15(%arg0: i32) -> (i32, i32, i32) {
    %c0_i32 = arith.constant 0 : i32
    %c0_i32_0 = arith.constant 0 : i32
    %c0_i32_1 = arith.constant 0 : i32
    %c0_i32_2 = arith.constant 0 : i32
    return %c0_i32, %c0_i32_0, %c0_i32_1 : i32, i32, i32
  }
  func.func @transform_16(%arg0: i32) -> (i32, i32) {
    %c0_i32 = arith.constant 0 : i32
    %c0_i32_0 = arith.constant 0 : i32
    %c0_i32_1 = arith.constant 0 : i32
    return %c0_i32, %c0_i32_0 : i32, i32
  }
  func.func @transform_17(%arg0: i32) -> (i32, i32, i32) {
    %c0_i32 = arith.constant 0 : i32
    %c0_i32_0 = arith.constant 0 : i32
    %c0_i32_1 = arith.constant 0 : i32
    %c0_i32_2 = arith.constant 0 : i32
    return %c0_i32, %c0_i32_0, %c0_i32_1 : i32, i32, i32
  }
  func.func @transform_18(%arg0: i32) -> (i32, i32) {
    %c0_i32 = arith.constant 0 : i32
    %c0_i32_0 = arith.constant 0 : i32
    %c0_i32_1 = arith.constant 0 : i32
    return %c0_i32, %c0_i32_0 : i32, i32
  }
  func.func @transform_19(%arg0: i32) -> (i32, i32, i32) {
    %c0_i32 = arith.constant 0 : i32
    %c0_i32_0 = arith.constant 0 : i32
    %c0_i32_1 = arith.constant 0 : i32
    %c0_i32_2 = arith.constant 0 : i32
    return %c0_i32, %c0_i32_0, %c0_i32_1 : i32, i32, i32
  }
  func.func @transform_20(%arg0: i32) -> (i32, i32) {
    %c0_i32 = arith.constant 0 : i32
    %c0_i32_0 = arith.constant 0 : i32
    %c0_i32_1 = arith.constant 0 : i32
    return %c0_i32, %c0_i32_0 : i32, i32
  }
  func.func @transform_21(%arg0: i32) -> (i32, i32, i32) {
    %c0_i32 = arith.constant 0 : i32
    %c0_i32_0 = arith.constant 0 : i32
    %c0_i32_1 = arith.constant 0 : i32
    %c0_i32_2 = arith.constant 0 : i32
    return %c0_i32, %c0_i32_0, %c0_i32_1 : i32, i32, i32
  }
  func.func @transform_22(%arg0: i32) -> (i32, i32) {
    %c0_i32 = arith.constant 0 : i32
    %c0_i32_0 = arith.constant 0 : i32
    %c0_i32_1 = arith.constant 0 : i32
    return %c0_i32, %c0_i32_0 : i32, i32
  }
  func.func @transform_23(%arg0: i32) -> (i32, i32, i32) {
    %c0_i32 = arith.constant 0 : i32
    %c0_i32_0 = arith.constant 0 : i32
    %c0_i32_1 = arith.constant 0 : i32
    %c0_i32_2 = arith.constant 0 : i32
    return %c0_i32, %c0_i32_0, %c0_i32_1 : i32, i32, i32
  }
  func.func @transform_24(%arg0: i32) -> (i32, i32) {
    %c0_i32 = arith.constant 0 : i32
    %c0_i32_0 = arith.constant 0 : i32
    %c0_i32_1 = arith.constant 0 : i32
    return %c0_i32, %c0_i32_0 : i32, i32
  }
  func.func @transform_25(%arg0: i32) -> (i32, i32, i32) {
    %c0_i32 = arith.constant 0 : i32
    %c0_i32_0 = arith.constant 0 : i32
    %c0_i32_1 = arith.constant 0 : i32
    return %arg0, %c0_i32, %c0_i32_0 : i32, i32, i32
  }
}

</mosaic_0001>

<bundles_post_ra>
// kernel: tile.42
= control target key start
LH: loop header
LB: loop body
LE: loop exit
PB: predicated region body
PF: predicated region fallthrough
CT: control target
= control target key end

     0   :  { %s28_s0 = inlined_call_operand.vmem [shape: f32[8], index: 0, kind: input, shape index: {}]   ;;  %s29_s1 = inlined_call_operand.vmem [shape: f32[16,8], index: 1, kind: output, shape index: {}]  }
   0x1   :  { %v4_v0 = vld [vmem:[%s28_s0] ss:$0 sm:$0xff] }
   0x2   :  { %5 = vst [vmem:[%s29_s1] sm:$0xff] %v4_v0  ;;  %8 = vst [vmem:[%s29_s1 + $0x8] sm:$0xff] %v4_v0 }

// kernel: tile.58
= control target key start
LH: loop header
LB: loop body
LE: loop exit
PB: predicated region body
PF: predicated region fallthrough
CT: control target
= control target key end

     0   :  { %s22_s0 = inlined_call_operand.vmem [shape: f32[32], index: 0, kind: input, shape index: {}]   ;;  %s23_s1 = inlined_call_operand.vmem [shape: f32[4,32], index: 1, kind: output, shape index: {}]  }
   0x1   :  { %v4_v0 = vld [vmem:[%s22_s0] ss:$0 sm:$0xff] }
   0x2   :  { %5 = vst [vmem:[%s23_s1] sm:$0xf] %v4_v0 }

// kernel: tile.50
= control target key start
LH: loop header
LB: loop body
LE: loop exit
PB: predicated region body
PF: predicated region fallthrough
CT: control target
= control target key end

     0   :  { %s22_s0 = inlined_call_operand.vmem [shape: f32[16], index: 0, kind: input, shape index: {}]   ;;  %s23_s1 = inlined_call_operand.vmem [shape: f32[8,16], index: 1, kind: output, shape index: {}]  }
   0x1   :  { %v4_v0 = vld [vmem:[%s22_s0] ss:$0 sm:$0xff] }
   0x2   :  { %5 = vst [vmem:[%s23_s1] sm:$0xff] %v4_v0 }

// kernel: tile.51
= control target key start
LH: loop header
LB: loop body
LE: loop exit
PB: predicated region body
PF: predicated region fallthrough
CT: control target
= control target key end

     0   :  { %s67_s10 = smov 112   ;;  %s68_s11 = smov 80   ;;  %vm3_vm0 = vcmask 130048   ;;  %vm9_vm1 = vcmask 1048448   ;;  %vm15_vm2 = vcmask 917248   ;;  %vm21_vm3 = vcmask 786048   ;;  %s111_s0 = inlined_call_operand.vmem [shape: f32[8,16], index: 0, kind: input, shape index: {}]   ;;  %s112_s1 = inlined_call_operand.vmem [shape: f32[1,128], index: 1, kind: output, shape index: {}]  }
   0x1   :  { %v53_v0 = vld [vmem:[%s111_s0 + $0x7] sm:$0x1]   ;;  %v55_v1 = vld [vmem:[%s111_s0 + $0x5] sm:$0x1]   ;;  %v54_v2 = vld [vmem:[%s111_s0 + $0x6] sm:$0x1]  }
   0x2   :  { %7 = vrot.lane.b32.xlu0 %v53_v0, %s67_s10  ;;  %19 = vrot.lane.b32.xlu1 %v55_v1, %s68_s11  ;;  %v56_v3 = vld [vmem:[%s111_s0 + $0x4] sm:$0x1]   ;;  %v2_v4 = vld [vmem:[%s111_s0] sm:$0x1]   ;;  %s69_s18 = smov 96   ;;  %s70_s19 = smov 64  }
   0x3   :  { %4 = vst.msk [vmem:[#allocation0] sm:$0x1] %vm3_vm0, %v2_v4   ;;  %v57_v5 = vld [vmem:[%s111_s0 + $0x3] sm:$0x1]   ;;  %v58_v6 = vld [vmem:[%s111_s0 + $0x2] sm:$0x1]  }
   0x4   :  { %s71_s24 = smov 48   ;;  %s72_s25 = smov 32   ;;  %v59_v7 = vld [vmem:[%s111_s0 + $0x1] sm:$0x1]   ;;  %vm27_vm4 = vcmask 654848   ;;  %vm33_vm5 = vcmask 523648  }
   0x5   :  { %s73_s0 = smov 16   ;;  %vm39_vm6 = vcmask 392448   ;;  %vm45_vm7 = vcmask 261248  }
   0x6   :  { %13 = vrot.lane.b32.xlu0 %v54_v2, %s69_s18  ;;  %25 = vrot.lane.b32.xlu1 %v56_v3, %s70_s19 }
   0xa   :  { %31 = vrot.lane.b32.xlu0 %v57_v5, %s71_s24  ;;  %37 = vrot.lane.b32.xlu1 %v58_v6, %s72_s25 }
   0xe   :  { %43 = vrot.lane.b32.xlu0 %v59_v7, %s73_s0 }
  0x74   :  { %v8_v8 = vpop.permute.xlu0 %7   ;;  %v20_v9 = vpop.permute.xlu1 %19  }
  0x75   :  { %10 = vst.msk [vmem:[#allocation0] sm:$0x1] %vm9_vm1, %v8_v8  }
  0x78   :  { %v14_v10 = vpop.permute.xlu0 %13   ;;  %v26_v11 = vpop.permute.xlu1 %25  }
  0x79   :  { %16 = vst.msk [vmem:[#allocation0] sm:$0x1] %vm15_vm2, %v14_v10  }
  0x7a   :  { %22 = vst.msk [vmem:[#allocation0] sm:$0x1] %vm21_vm3, %v20_v9  }
  0x7b   :  { %28 = vst.msk [vmem:[#allocation0] sm:$0x1] %vm27_vm4, %v26_v11  }
  0x7c   :  { %v32_v12 = vpop.permute.xlu0 %31   ;;  %v38_v13 = vpop.permute.xlu1 %37  }
  0x7d   :  { %34 = vst.msk [vmem:[#allocation0] sm:$0x1] %vm33_vm5, %v32_v12  }
  0x7e   :  { %40 = vst.msk [vmem:[#allocation0] sm:$0x1] %vm39_vm6, %v38_v13  }
  0x80   :  { %v44_v14 = vpop.permute.xlu0 %43  }
  0x81   :  { %46 = vst.msk [vmem:[#allocation0] sm:$0x1] %vm45_vm7, %v44_v14  }
  0x88   :  { %v50_v15 = vld [vmem:[#allocation0] sm:$0x1] }
  0x89   :  { %52 = vst [vmem:[%s112_s1] sm:$0x1] %v50_v15 }

// kernel: tile.43
= control target key start
LH: loop header
LB: loop body
LE: loop exit
PB: predicated region body
PF: predicated region fallthrough
CT: control target
= control target key end

     0   :  { %s131_s10 = smov 120   ;;  %s132_s11 = smov 104   ;;  %vm3_vm0 = vcmask 64512   ;;  %vm9_vm1 = vcmask 1048512   ;;  %vm15_vm2 = vcmask 982912   ;;  %vm21_vm3 = vcmask 917312   ;;  %s207_s0 = inlined_call_operand.vmem [shape: f32[16,8], index: 0, kind: input, shape index: {}]   ;;  %s208_s1 = inlined_call_operand.vmem [shape: f32[1,128], index: 1, kind: output, shape index: {}]  }
   0x1   :  { %v101_v0 = vld [vmem:[%s207_s0 + $0xf] sm:$0x1]   ;;  %v103_v1 = vld [vmem:[%s207_s0 + $0xd] sm:$0x1]   ;;  %v102_v2 = vld [vmem:[%s207_s0 + $0xe] sm:$0x1]  }
   0x2   :  { %7 = vrot.lane.b32.xlu0 %v101_v0, %s131_s10  ;;  %19 = vrot.lane.b32.xlu1 %v103_v1, %s132_s11  ;;  %v104_v3 = vld [vmem:[%s207_s0 + $0xc] sm:$0x1]   ;;  %s133_s16 = smov 112   ;;  %s134_s17 = smov 96   ;;  %v105_v4 = vld [vmem:[%s207_s0 + $0xb] sm:$0x1]  }
   0x3   :  { %v106_v5 = vld [vmem:[%s207_s0 + $0xa] sm:$0x1]   ;;  %v2_v6 = vld [vmem:[%s207_s0] sm:$0x1]   ;;  %s135_s24 = smov 88   ;;  %s136_s25 = smov 80  }
   0x4   :  { %4 = vst.msk [vmem:[#allocation0] sm:$0x1] %vm3_vm0, %v2_v6   ;;  %v107_v7 = vld [vmem:[%s207_s0 + $0x9] sm:$0x1]   ;;  %v108_v8 = vld [vmem:[%s207_s0 + $0x8] sm:$0x1]  }
   0x5   :  { %s137_s30 = smov 72   ;;  %s138_s2 = smov 64   ;;  %v109_v9 = vld [vmem:[%s207_s0 + $0x7] sm:$0x1]   ;;  %v110_v10 = vld [vmem:[%s207_s0 + $0x6] sm:$0x1]  }
   0x6   :  { %13 = vrot.lane.b32.xlu0 %v102_v2, %s133_s16  ;;  %25 = vrot.lane.b32.xlu1 %v104_v3, %s134_s17  ;;  %s139_s7 = smov 56   ;;  %s140_s8 = smov 48   ;;  %v111_v11 = vld [vmem:[%s207_s0 + $0x5] sm:$0x1]   ;;  %v112_v12 = vld [vmem:[%s207_s0 + $0x4] sm:$0x1]  }
   0x7   :  { %s141_s13 = smov 40   ;;  %s142_s14 = smov 32   ;;  %v113_v13 = vld [vmem:[%s207_s0 + $0x3] sm:$0x1]   ;;  %v114_v14 = vld [vmem:[%s207_s0 + $0x2] sm:$0x1]  }
   0x8   :  { %s143_s19 = smov 24   ;;  %s144_s20 = smov 16   ;;  %v115_v15 = vld [vmem:[%s207_s0 + $0x1] sm:$0x1]   ;;  %vm27_vm4 = vcmask 851712   ;;  %vm33_vm5 = vcmask 786112  }
   0x9   :  { %s145_s0 = smov 8   ;;  %vm39_vm6 = vcmask 720512   ;;  %vm45_vm7 = vcmask 654912   ;;  %vm51_vm8 = vcmask 589312   ;;  %vm57_vm9 = vcmask 523712  }
   0xa   :  { %31 = vrot.lane.b32.xlu0 %v105_v4, %s135_s24  ;;  %37 = vrot.lane.b32.xlu1 %v106_v5, %s136_s25  ;;  %vm63_vm10 = vcmask 458112   ;;  %vm69_vm11 = vcmask 392512   ;;  %vm75_vm12 = vcmask 326912   ;;  %vm81_vm13 = vcmask 261312  }
   0xb   :  { %vm87_vm14 = vcmask 195712   ;;  %vm93_vm15 = vcmask 130112  }
   0xe   :  { %43 = vrot.lane.b32.xlu0 %v107_v7, %s137_s30  ;;  %49 = vrot.lane.b32.xlu1 %v108_v8, %s138_s2 }
  0x12   :  { %55 = vrot.lane.b32.xlu0 %v109_v9, %s139_s7  ;;  %61 = vrot.lane.b32.xlu1 %v110_v10, %s140_s8 }
  0x16   :  { %67 = vrot.lane.b32.xlu0 %v111_v11, %s141_s13  ;;  %73 = vrot.lane.b32.xlu1 %v112_v12, %s142_s14 }
  0x1a   :  { %79 = vrot.lane.b32.xlu0 %v113_v13, %s143_s19  ;;  %85 = vrot.lane.b32.xlu1 %v114_v14, %s144_s20 }
  0x1e   :  { %91 = vrot.lane.b32.xlu0 %v115_v15, %s145_s0 }
  0x74   :  { %v8_v16 = vpop.permute.xlu0 %7   ;;  %v20_v17 = vpop.permute.xlu1 %19  }
  0x75   :  { %10 = vst.msk [vmem:[#allocation0] sm:$0x1] %vm9_vm1, %v8_v16  }
  0x78   :  { %v14_v18 = vpop.permute.xlu0 %13   ;;  %v26_v19 = vpop.permute.xlu1 %25  }
  0x79   :  { %16 = vst.msk [vmem:[#allocation0] sm:$0x1] %vm15_vm2, %v14_v18  }
  0x7a   :  { %22 = vst.msk [vmem:[#allocation0] sm:$0x1] %vm21_vm3, %v20_v17  }
  0x7b   :  { %28 = vst.msk [vmem:[#allocation0] sm:$0x1] %vm27_vm4, %v26_v19  }
  0x7c   :  { %v32_v20 = vpop.permute.xlu0 %31   ;;  %v38_v21 = vpop.permute.xlu1 %37  }
  0x7d   :  { %34 = vst.msk [vmem:[#allocation0] sm:$0x1] %vm33_vm5, %v32_v20  }
  0x7e   :  { %40 = vst.msk [vmem:[#allocation0] sm:$0x1] %vm39_vm6, %v38_v21  }
  0x80   :  { %v44_v22 = vpop.permute.xlu0 %43   ;;  %v50_v23 = vpop.permute.xlu1 %49  }
  0x81   :  { %46 = vst.msk [vmem:[#allocation0] sm:$0x1] %vm45_vm7, %v44_v22  }
  0x82   :  { %52 = vst.msk [vmem:[#allocation0] sm:$0x1] %vm51_vm8, %v50_v23  }
  0x84   :  { %v56_v24 = vpop.permute.xlu0 %55   ;;  %v62_v25 = vpop.permute.xlu1 %61  }
  0x85   :  { %58 = vst.msk [vmem:[#allocation0] sm:$0x1] %vm57_vm9, %v56_v24  }
  0x86   :  { %64 = vst.msk [vmem:[#allocation0] sm:$0x1] %vm63_vm10, %v62_v25  }
  0x88   :  { %v68_v26 = vpop.permute.xlu0 %67   ;;  %v74_v27 = vpop.permute.xlu1 %73  }
  0x89   :  { %70 = vst.msk [vmem:[#allocation0] sm:$0x1] %vm69_vm11, %v68_v26  }
  0x8a   :  { %76 = vst.msk [vmem:[#allocation0] sm:$0x1] %vm75_vm12, %v74_v27  }
  0x8c   :  { %v80_v28 = vpop.permute.xlu0 %79   ;;  %v86_v29 = vpop.permute.xlu1 %85  }
  0x8d   :  { %82 = vst.msk [vmem:[#allocation0] sm:$0x1] %vm81_vm13, %v80_v28  }
  0x8e   :  { %88 = vst.msk [vmem:[#allocation0] sm:$0x1] %vm87_vm14, %v86_v29  }
  0x90   :  { %v92_v30 = vpop.permute.xlu0 %91  }
  0x91   :  { %94 = vst.msk [vmem:[#allocation0] sm:$0x1] %vm93_vm15, %v92_v30  }
  0x98   :  { %v98_v31 = vld [vmem:[#allocation0] sm:$0x1] }
  0x99   :  { %100 = vst [vmem:[%s208_s1] sm:$0x1] %v98_v31 }

// kernel: tile.59
= control target key start
LH: loop header
LB: loop body
LE: loop exit
PB: predicated region body
PF: predicated region fallthrough
CT: control target
= control target key end

     0   :  { %vm7_vm0 = vcmask 261120   ;;  %s37_s8 = smov 32   ;;  %s38_s9 = smov 64   ;;  %vm13_vm1 = vcmask 1048320   ;;  %vm19_vm2 = vcmask 785920   ;;  %vm25_vm3 = vcmask 523520   ;;  %s55_s0 = inlined_call_operand.vmem [shape: f32[4,32], index: 0, kind: input, shape index: {}]   ;;  %s56_s1 = inlined_call_operand.vmem [shape: f32[1,128], index: 1, kind: output, shape index: {}]  }
   0x1   :  { %v4_v0 = vld [vmem:[%s55_s0] sm:$0xf]  ;;  %s36_s0 = smov 96  }
   0x2   :  { %5 = vst [vmem:[#allocation1] sm:$0xf] %v4_v0 }
   0x9   :  { %v10_v1 = vld [vmem:[#allocation1 + $0x3] sm:$0x1]   ;;  %v22_v2 = vld [vmem:[#allocation1 + $0x1] sm:$0x1]   ;;  %v6_v3 = vld [vmem:[#allocation1] sm:$0x1]  }
   0xa   :  { %11 = vrot.lane.b32.xlu0 %v10_v1, %s36_s0  ;;  %23 = vrot.lane.b32.xlu1 %v22_v2, %s37_s8  ;;  %v16_v4 = vld [vmem:[#allocation1 + $0x2] sm:$0x1]   ;;  %8 = vst.msk [vmem:[#allocation0] sm:$0x1] %vm7_vm0, %v6_v3  }
   0xe   :  { %17 = vrot.lane.b32.xlu0 %v16_v4, %s38_s9 }
  0x7c   :  { %v12_v5 = vpop.permute.xlu0 %11   ;;  %v24_v6 = vpop.permute.xlu1 %23  }
  0x7d   :  { %14 = vst.msk [vmem:[#allocation0] sm:$0x1] %vm13_vm1, %v12_v5  }
  0x80   :  { %v18_v7 = vpop.permute.xlu0 %17  }
  0x81   :  { %20 = vst.msk [vmem:[#allocation0] sm:$0x1] %vm19_vm2, %v18_v7  }
  0x82   :  { %26 = vst.msk [vmem:[#allocation0] sm:$0x1] %vm25_vm3, %v24_v6  }
  0x89   :  { %v30_v8 = vld [vmem:[#allocation0] sm:$0x1] }
  0x8a   :  { %32 = vst [vmem:[%s56_s1] sm:$0x1] %v30_v8 }

// kernel: tile.70
= control target key start
LH: loop header
LB: loop body
LE: loop exit
PB: predicated region body
PF: predicated region fallthrough
CT: control target
= control target key end

     0   :  { %s22_s0 = inlined_call_operand.vmem [shape: f32[64], index: 0, kind: input, shape index: {}]   ;;  %s23_s1 = inlined_call_operand.vmem [shape: f32[2,64], index: 1, kind: output, shape index: {}]  }
   0x1   :  { %v4_v0 = vld [vmem:[%s22_s0] ss:$0 sm:$0xff] }
   0x2   :  { %5 = vst [vmem:[%s23_s1] sm:$0x3] %v4_v0 }

// kernel: tile.71
= control target key start
LH: loop header
LB: loop body
LE: loop exit
PB: predicated region body
PF: predicated region fallthrough
CT: control target
= control target key end

     0   :  { %vm7_vm0 = vcmask 523264   ;;  %vm13_vm1 = vcmask 1048064   ;;  %s39_s0 = inlined_call_operand.vmem [shape: f32[2,64], index: 0, kind: input, shape index: {}]   ;;  %s40_s1 = inlined_call_operand.vmem [shape: f32[1,128], index: 1, kind: output, shape index: {}]  }
   0x1   :  { %v4_v0 = vld [vmem:[%s39_s0] sm:$0x3]  ;;  %s22_s0 = smov 64  }
   0x2   :  { %5 = vst [vmem:[#allocation1] sm:$0x3] %v4_v0 }
   0x9   :  { %v10_v1 = vld [vmem:[#allocation1 + $0x1] sm:$0x1]   ;;  %v6_v2 = vld [vmem:[#allocation1] sm:$0x1]  }
   0xa   :  { %11 = vrot.lane.b32.xlu0 %v10_v1, %s22_s0  ;;  %8 = vst.msk [vmem:[#allocation0] sm:$0x1] %vm7_vm0, %v6_v2  }
  0x7c   :  { %v12_v3 = vpop.permute.xlu0 %11  }
  0x7d   :  { %14 = vst.msk [vmem:[#allocation0] sm:$0x1] %vm13_vm1, %v12_v3  }
  0x84   :  { %v18_v4 = vld [vmem:[#allocation0] sm:$0x1] }
  0x85   :  { %20 = vst [vmem:[%s40_s1] sm:$0x1] %v18_v4 }

// kernel: _lambda_.1
= control target key start
LH: loop header
LB: loop body
LE: loop exit
PB: predicated region body
PF: predicated region fallthrough
CT: control target
= control target key end

     0   :  { %s11708_s0 = inlined_call_operand.vmem [shape: f32[2,16,128], index: 0, kind: input, shape index: {}]   ;;  %s11709_s1 = inlined_call_operand.vmem [shape: bf16[3,128,128], index: 1, kind: input, shape index: {}]   ;;  %s11710_s2 = inlined_call_operand.vmem [shape: f32[1,128], index: 2, kind: input, shape index: {}]   ;;  %s11711_s3 = inlined_call_operand.vmem [shape: bf16[3,128,128], index: 3, kind: input, shape index: {}]   ;;  %s11712_s4 = inlined_call_operand.vmem [shape: f32[1,128], index: 4, kind: input, shape index: {}]   ;;  %s11713_s5 = inlined_call_operand.hbm [shape: bf16[3,64,128], index: 5, kind: input, shape index: {}]   ;;  %s11714_s6 = inlined_call_operand.vmem [shape: f32[1,128], index: 6, kind: input, shape index: {}]   ;;  %s11715_s7 = inlined_call_operand.hbm [shape: bf16[3,128,128], index: 7, kind: input, shape index: {}]   ;;  %s11716_s8 = inlined_call_operand.vmem [shape: f32[1,128], index: 8, kind: input, shape index: {}]   ;;  %s11717_s9 = inlined_call_operand.hbm [shape: bf16[3,64,128], index: 9, kind: input, shape index: {}]   ;;  %s11718_s10 = inlined_call_operand.vmem [shape: f32[1,128], index: 10, kind: input, shape index: {}]   ;;  %s11719_s11 = inlined_call_operand.hbm [shape: bf16[3,128,128], index: 11, kind: input, shape index: {}]   ;;  %s11720_s12 = inlined_call_operand.vmem [shape: f32[1,128], index: 12, kind: input, shape index: {}]   ;;  %s11721_s13 = inlined_call_operand.vmem [shape: bf16[3,128,128], index: 13, kind: input, shape index: {}]   ;;  %s11722_s14 = inlined_call_operand.vmem [shape: f32[1,128], index: 14, kind: input, shape index: {}]   ;;  %s11723_s15 = inlined_call_operand.vmem [shape: bf16[3,64,128], index: 15, kind: input, shape index: {}]   ;;  %s11724_s16 = inlined_call_operand.vmem [shape: f32[1,128], index: 16, kind: input, shape index: {}]   ;;  %s11725_s17 = inlined_call_operand.vmem [shape: bf16[3,128,128], index: 17, kind: input, shape index: {}]   ;;  %s11726_s18 = inlined_call_operand.vmem [shape: f32[1,128], index: 18, kind: input, shape index: {}]   ;;  %s11727_s19 = inlined_call_operand.vmem [shape: bf16[3,128,128], index: 19, kind: input, shape index: {}]   ;;  %s11728_s20 = inlined_call_operand.vmem [shape: f32[1,128], index: 20, kind: input, shape index: {}]   ;;  %s11729_s21 = inlined_call_operand.hbm [shape: bf16[3,64,64], index: 21, kind: input, shape index: {}]   ;;  %s11730_s22 = inlined_call_operand.vmem [shape: f32[1,64], index: 22, kind: input, shape index: {}]   ;;  %s11731_s23 = inlined_call_operand.hbm [shape: bf16[3,64,64], index: 23, kind: input, shape index: {}]   ;;  %s11732_s24 = inlined_call_operand.vmem [shape: f32[1,64], index: 24, kind: input, shape index: {}]   ;;  %s11733_s25 = inlined_call_operand.hbm [shape: f32[2,1,64], index: 25, kind: output, shape index: {}]  }
   0x1   :  { %11753 = sst [smem:[#allocation29_spill]] %s11708_s0 }
   0x2   :  { %11754 = sst [smem:[#allocation30_spill]] %s11709_s1 }
   0x3   :  { %11755 = sst [smem:[#allocation31_spill]] %s11710_s2 }
   0x4   :  { %11756 = sst [smem:[#allocation32_spill]] %s11711_s3 }
   0x5   :  { %11757 = sst [smem:[#allocation33_spill]] %s11712_s4 }
   0x6   :  { %11758 = sst [smem:[#allocation34_spill]] %s11713_s5 }
   0x7   :  { %11759 = sst [smem:[#allocation35_spill]] %s11714_s6 }
   0x8   :  { %11760 = sst [smem:[#allocation36_spill]] %s11715_s7 }
   0x9   :  { %11761 = sst [smem:[#allocation37_spill]] %s11716_s8 }
   0xa   :  { %11762 = sst [smem:[#allocation38_spill]] %s11717_s9 }
   0xb   :  { %11763 = sst [smem:[#allocation39_spill]] %s11719_s11 }
   0xc   :  { %11764 = sst [smem:[#allocation40_spill]] %s11726_s18 }
   0xd   :  { %11765 = sst [smem:[#allocation41_spill]] %s11728_s20 }
   0xe   :  { %11766 = sst [smem:[#allocation42_spill]] %s11730_s22 }
   0xf   :  { %11767 = sst [smem:[#allocation43_spill]] %s11732_s24 }
  0x10   :  { %11768 = sst [smem:[#allocation44_spill]] %s11733_s25 }
  0x11   :  { %30 = vsyncpa [#allocation5], 0 }
  0x12   :  { %31 = vsyncpa [#allocation8], 0 }
  0x13   :  { %32 = vsyncpa [#allocation11], 0 }
  0x14   :  { %33 = vsyncpa [#allocation14], 0 }
  0x15   :  { %34 = vsyncpa [#allocation6], 0 }
  0x16   :  { %36 = vsyncpa [#allocation6 + $0x1], 0  ;;  %s9215_s29 = smov 0   ;;  %s9217_s2 = smov 0  }
  0x17   :  { %s9219_s6 = smov 0   ;;  %s9221_s30 = smov 0  }
  0x18 LB: > { %11769 = sst [smem:[#allocation21_spill]] %s9058_s29  ;;  %s9236_s7 = sadd.s32 4294967295, %s9070_s30   ;;  %s9070_s30 = sphi %s9221_s30, %s12054_s30   ;;  %s9066_s6 = sphi %s9219_s6, %s12057_s6   ;;  %s9062_s2 = sphi %s9217_s2, %s12056_s2   ;;  %s9058_s29 = sphi %s9215_s29, %s12055_s29  }
  0x19   : > { %11770 = sst [smem:[#allocation22_spill]] %s9062_s2  ;;  %s6341_s3 = sadd.s32 4294967294, %s9070_s30  }
  0x1a   : > { %11771 = sst [smem:[#allocation23_spill]] %s9066_s6  ;;  %s9240_s26 = sadd.s32 1, %s9070_s30  }
  0x1b   : > { %11772 = sst [smem:[#allocation24_spill]] %s9070_s30  ;;  %s579_s1 = sadd.s32 1, %s9066_s6 }
  0x1c   : > { %11773 = sst [smem:[#allocation25_spill]] %s9240_s26  ;;  %s576_s8 = ssub.s32 %s9070_s30, %s9240_s26 }
  0x1d   : > { %p589_p0 = scmp.ne.s32.totalorder %s9066_s6, %s9062_s2  ;;  %p577_p1 = scmp.eq.s32.totalorder %s576_s8, 0 }
  0x1e   : > { %p590_p2 = scmp.eq.s32.totalorder %s9236_s7, 1  ;;  %p595_p3 = scmp.ne.s32.totalorder %s9062_s2, %s9058_s29 }
  0x1f   : > { %p596_p4 = scmp.eq.s32.totalorder %s6341_s3, 1  ;;  %p6342_p7 = scmp.ge.s32.totalorder %s9070_s30, 1 }
  0x20   : > { %s9251_s27 = scalar_select %p577_p1, %s9066_s6, %s579_s1  }
  0x21   : > { %p9253_p5 = por %p590_p2, %p589_p0  ;;  %p9257_p6 = por %p596_p4, %p595_p3 }
  0x22   : > { %11774 = sst [smem:[#allocation26_spill]] %s9251_s27  ;;  %p603_p8 = scmp.lt.s32.totalorder %s9070_s30, 3 }
  0x23   : > { %s11775_s4 = scalar_select %p9253_p5, 1, 0 }
  0x24   : > { %s11777_s28 = scalar_select %p9257_p6, 1, 0 }
  0x25   : > { %11776 = sst [smem:[#allocation27_spill]] %s11775_s4  ;;  %p11748_p9 = scmp.eq.s32.totalorder %s9236_s7, 0 }
  0x26   : > { %11778 = sst [smem:[#allocation28_spill]] %s11777_s28  ;;  %p9264_p10 = pnand %p6342_p7, %p603_p8 }
  0x27   : > { %s9072_s5 = smov [#allocation7]   ;;  %s9073_s1 = smov [#allocation10]  }
  0x28   : > { %s11779_s9 = scalar_select %p9264_p10, 1, 0 }
  0x29   : > { %p8516_p11 = pneg %p9264_p10  ;;  %s643_s0 = sshll.u32 %s9072_s5, 4  ;;  %s9270_s0 = int_to_ptr.vmem [resolvable:$true] %s643_s0 }
  0x2a   : > { %s675_s8 = sshll.u32 %s9073_s1, 4  ;;  %s9074_s27 = smov [#allocation4]   ;;  %s9278_s8 = int_to_ptr.vmem [resolvable:$true] %s675_s8 }
  0x2b   : > { %p9274_p12 = pnand %p11748_p9, %p8516_p11  ;;  %s9280_s6 = sshll.u32 %s9074_s27, 4  ;;  %s628_s6 = int_to_ptr.vmem [resolvable:$true] %s9280_s6 }
  0x2c   : > { %s11781_s29 = sld [smem:[#allocation36_spill]] }
  0x2d   : > { %p9290_p0 = pneg %p9274_p12 }
  0x32   : > { %s11782_s25 = smov %s11781_s29  ;;  %s8824_s30 = scalar_lea.hbm %s11781_s29, 3072 }
  0x33   : > { %p8825_p13 = scmp.ne.s32.totalorder %s11782_s25, %s8824_s30  ;;  %p8831_p3 = scmp.lt.u32.totalorder %s8824_s30, %s11782_s25 }
  0x35   : > { %p8827_p1 = pnand %p9290_p0, %p8825_p13 }
  0x37   : > { %p8828_p2 = pneg %p8827_p1 }
  0x39   : > { %p8833_p4 = pnand %p8831_p3, %p8828_p2 }
  0x3b   : > { %8836 = shalt.err (!%p8833_p4)
}
  0x3c   : > { %s8837_s29 = scalar_lea.vmem %s9270_s0, 3072  ;;  %p8845_p9 = scmp.lt.s32.totalorder %s9270_s0, %s9270_s0 }
  0x3d   : > { %p8838_p7 = scmp.ne.s32.totalorder %s9270_s0, %s8837_s29  ;;  %p8846_p6 = scmp.lt.s32.totalorder %s8837_s29, %s8837_s29 }
  0x3f   : > { %p8840_p8 = pnand %p8838_p7, %p9290_p0  ;;  %p8847_p13 = por %p8846_p6, %p8845_p9 }
  0x41   : > { %p8841_p11 = pneg %p8840_p8 }
  0x43   : > { %p8848_p1 = pnand %p8847_p13, %p8841_p11 }
  0x45   : > { %8851 = shalt.err (!%p8848_p1)
}
  0x46   : > { %s9075_s26 = smov 64   ;;  %s9076_s30 = smov 4  }
  0x47   : > { %8522 = dma.hbm_to_vmem [thread:$0]  (!%p9274_p12), %s11782_s25, 3072, %s9270_s0, [#allocation8], %s9075_s26, %s9075_s26, %s9076_s30  }
  0x48   : > { %s11784_s11 = sld [smem:[#allocation39_spill]] }
  0x4e   : > { %s8852_s27 = scalar_lea.hbm %s11784_s11, 3072 }
  0x4f   : > { %p8853_p6 = scmp.ne.s32.totalorder %s11784_s11, %s8852_s27  ;;  %p8859_p3 = scmp.lt.u32.totalorder %s8852_s27, %s11784_s11 }
  0x51   : > { %p8855_p9 = pnand %p8853_p6, %p9290_p0 }
  0x53   : > { %p8856_p2 = pneg %p8855_p9 }
  0x55   : > { %p8861_p4 = pnand %p8859_p3, %p8856_p2 }
  0x57   : > { %8864 = shalt.err (!%p8861_p4)
}
  0x58   : > { %s8865_s0 = scalar_lea.vmem %s9278_s8, 3072  ;;  %p8873_p13 = scmp.lt.s32.totalorder %s9278_s8, %s9278_s8 }
  0x59   : > { %p8866_p7 = scmp.ne.s32.totalorder %s9278_s8, %s8865_s0  ;;  %p8874_p1 = scmp.lt.s32.totalorder %s8865_s0, %s8865_s0 }
  0x5b   : > { %p8868_p8 = pnand %p8866_p7, %p9290_p0  ;;  %p8875_p6 = por %p8874_p1, %p8873_p13 }
  0x5d   : > { %p8869_p11 = pneg %p8868_p8 }
  0x5f   : > { %p8876_p9 = pnand %p8875_p6, %p8869_p11 }
  0x61   : > { %8879 = shalt.err (!%p8876_p9)
}
  0x62   : > { %8528 = dma.hbm_to_vmem [thread:$0]  (!%p9274_p12), %s11784_s11, 3072, %s9278_s8, [#allocation11], %s9075_s26, %s9075_s26, %s9076_s30  }
  0x63   : > { %s11785_s28 = sld [smem:[#allocation34_spill]] }
  0x69   : > { %s8880_s5 = scalar_lea.hbm %s11785_s28, 1536 }
  0x6a   : > { %p8881_p2 = scmp.ne.s32.totalorder %s11785_s28, %s8880_s5  ;;  %p8887_p7 = scmp.lt.u32.totalorder %s8880_s5, %s11785_s28 }
  0x6c   : > { %p8883_p3 = pnand %p8881_p2, %p9290_p0 }
  0x6e   : > { %p8884_p4 = pneg %p8883_p3 }
  0x70   : > { %p8889_p8 = pnand %p8887_p7, %p8884_p4 }
  0x72   : > { %8892 = shalt.err (!%p8889_p8)
}
  0x73   : > { %s8893_s20 = scalar_lea.vmem %s628_s6, 1536  ;;  %p8901_p6 = scmp.lt.s32.totalorder %s628_s6, %s628_s6 }
  0x74   : > { %p8894_p11 = scmp.ne.s32.totalorder %s628_s6, %s8893_s20  ;;  %p8902_p9 = scmp.lt.s32.totalorder %s8893_s20, %s8893_s20 }
  0x76   : > { %p8896_p13 = pnand %p8894_p11, %p9290_p0  ;;  %p8903_p5 = por %p8902_p9, %p8901_p6 }
  0x78   : > { %p8897_p1 = pneg %p8896_p13 }
  0x7a   : > { %p8904_p10 = pnand %p8903_p5, %p8897_p1 }
  0x7c   : > { %8907 = shalt.err (!%p8904_p10)
}
  0x7d   : > { %8519 = dma.hbm_to_vmem [thread:$0]  (!%p9274_p12), %s11785_s28, 1536, %s628_s6, [#allocation5], %s9075_s26, %s9075_s26, %s9076_s30  }
  0x7e   : > { %s9077_s2 = smov [#allocation9]   ;;  %s9078_s5 = smov [#allocation12]  }
  0x7f   : > { %s659_s4 = sshll.u32 %s9077_s2, 4  ;;  %s715_s1 = sshll.u32 %s9078_s5, 4  ;;  %s660_s4 = int_to_ptr.vmem [resolvable:$true] %s659_s4  ;;  %s716_s1 = int_to_ptr.vmem [resolvable:$true] %s715_s1 }
  0x80   : > { %s11786_s0 = sld [smem:[#allocation38_spill]] }
  0x86   : > { %s8908_s20 = scalar_lea.hbm %s11786_s0, 1536 }
  0x87   : > { %p8909_p5 = scmp.ne.s32.totalorder %s11786_s0, %s8908_s20  ;;  %p8915_p3 = scmp.lt.u32.totalorder %s8908_s20, %s11786_s0 }
  0x89   : > { %p8911_p10 = pnand %p8909_p5, %p9290_p0 }
  0x8b   : > { %p8912_p2 = pneg %p8911_p10 }
  0x8d   : > { %p8917_p4 = pnand %p8915_p3, %p8912_p2 }
  0x8f   : > { %8920 = shalt.err (!%p8917_p4)
}
  0x90   : > { %s8921_s6 = scalar_lea.vmem %s660_s4, 1536  ;;  %p8929_p13 = scmp.lt.s32.totalorder %s660_s4, %s660_s4 }
  0x91   : > { %p8922_p7 = scmp.ne.s32.totalorder %s660_s4, %s8921_s6  ;;  %p8930_p1 = scmp.lt.s32.totalorder %s8921_s6, %s8921_s6 }
  0x93   : > { %p8924_p8 = pnand %p8922_p7, %p9290_p0  ;;  %p8931_p6 = por %p8930_p1, %p8929_p13 }
  0x95   : > { %p8925_p11 = pneg %p8924_p8 }
  0x97   : > { %p8932_p9 = pnand %p8931_p6, %p8925_p11 }
  0x99   : > { %8935 = shalt.err (!%p8932_p9)
}
  0x9a   : > { %8525 = dma.hbm_to_vmem [thread:$0]  (!%p9274_p12), %s11786_s0, 1536, %s660_s4, [#allocation8], %s9075_s26, %s9075_s26, %s9076_s30  }
  0x9b   : > { %s8936_s2 = scalar_lea.hbm %s11729_s21, 1536 }
  0x9c   : > { %p8937_p5 = scmp.ne.s32.totalorder %s11729_s21, %s8936_s2  ;;  %p8943_p3 = scmp.lt.u32.totalorder %s8936_s2, %s11729_s21 }
  0x9e   : > { %p8939_p10 = pnand %p8937_p5, %p9290_p0 }
  0xa0   : > { %p8940_p2 = pneg %p8939_p10 }
  0xa2   : > { %p8945_p4 = pnand %p8943_p3, %p8940_p2 }
  0xa4   : > { %8948 = shalt.err (!%p8945_p4)
}
  0xa5   : > { %s8949_s8 = scalar_lea.vmem %s716_s1, 1536  ;;  %p8957_p13 = scmp.lt.s32.totalorder %s716_s1, %s716_s1 }
  0xa6   : > { %p8950_p7 = scmp.ne.s32.totalorder %s716_s1, %s8949_s8  ;;  %p8958_p1 = scmp.lt.s32.totalorder %s8949_s8, %s8949_s8 }
  0xa8   : > { %p8952_p8 = pnand %p8950_p7, %p9290_p0  ;;  %p8959_p6 = por %p8958_p1, %p8957_p13 }
  0xaa   : > { %p8953_p11 = pneg %p8952_p8 }
  0xac   : > { %p8960_p9 = pnand %p8959_p6, %p8953_p11 }
  0xae   : > { %8963 = shalt.err (!%p8960_p9)
}
  0xaf   : > { %8531 = dma.hbm_to_vmem [thread:$0]  (!%p9274_p12), %s11729_s21, 1536, %s716_s1, [#allocation11], %s9075_s26, %s9075_s26, %s9076_s30  }
  0xb0   : > { %s9079_s11 = smov [#allocation13]   ;;  %s8964_s2 = scalar_lea.hbm %s11731_s23, 1536 }
  0xb1   : > { %s731_s18 = sshll.u32 %s9079_s11, 4  ;;  %p8965_p5 = scmp.ne.s32.totalorder %s11731_s23, %s8964_s2  ;;  %s732_s18 = int_to_ptr.vmem [resolvable:$true] %s731_s18 }
  0xb2   : > { %p8971_p3 = scmp.lt.u32.totalorder %s8964_s2, %s11731_s23 }
  0xb3   : > { %p8967_p10 = pnand %p8965_p5, %p9290_p0 }
  0xb5   : > { %p8968_p2 = pneg %p8967_p10 }
  0xb7   : > { %p8973_p4 = pnand %p8971_p3, %p8968_p2 }
  0xb9   : > { %8976 = shalt.err (!%p8973_p4)
}
  0xba   : > { %s8977_s1 = scalar_lea.vmem %s732_s18, 1536  ;;  %p8985_p13 = scmp.lt.s32.totalorder %s732_s18, %s732_s18 }
  0xbb   : > { %p8978_p7 = scmp.ne.s32.totalorder %s732_s18, %s8977_s1  ;;  %p8986_p1 = scmp.lt.s32.totalorder %s8977_s1, %s8977_s1 }
  0xbd   : > { %p8980_p8 = pnand %p8978_p7, %p9290_p0  ;;  %p8987_p6 = por %p8986_p1, %p8985_p13 }
  0xbf   : > { %p8981_p11 = pneg %p8980_p8 }
  0xc1   : > { %p8988_p9 = pnand %p8987_p6, %p8981_p11 }
  0xc3   : > { %8991 = shalt.err (!%p8988_p9)
}
  0xc4   : > { %8534 = dma.hbm_to_vmem [thread:$0]  (!%p9274_p12), %s11731_s23, 1536, %s732_s18, [#allocation14], %s9075_s26, %s9075_s26, %s9076_s30  }
  0xc5   : > { %p11787_p5 = scmp.ne.s32.totalorder %s11779_s9, 0 }
  0xc6   : > { %p11788_p0 = scmp.eq.s32.totalorder (!%p11787_p5), %s9236_s7, 0 }
  0xc7   : > { %758 = sbr.rel (%p11787_p5) target bundleno = 5023 (0x139f), region = 120 }
  0xce   : > { %9037 = dma.done.wait (%p11788_p0), [#allocation5], 1536   ;;  %p11789_p10 = pmov %p11788_p0 }
  0xcf   : > { %p11790_p2 = pmov %p11788_p0 }
  0xd0   : > { %9039 = vsyncadd (%p11789_p10), [#allocation5], 4294965760 }
  0xd1   : > { %9041 = dma.done.wait (%p11790_p2), [#allocation8], 4608   ;;  %p11791_p3 = pmov %p11788_p0 }
  0xd2   : > { %p11792_p4 = pmov %p11788_p0 }
  0xd3   : > { %9043 = vsyncadd (%p11791_p3), [#allocation8], 4294962688 }
  0xd4   : > { %9045 = dma.done.wait (%p11792_p4), [#allocation11], 4608   ;;  %p11793_p12 = pmov %p11788_p0 }
  0xd5   : > { %p11794_p7 = pmov %p11788_p0 }
  0xd6   : > { %9047 = vsyncadd (%p11793_p12), [#allocation11], 4294962688 }
  0xd7   : > { %9049 = dma.done.wait (%p11794_p7), [#allocation14], 1536   ;;  %p11795_p8 = pmov %p11788_p0 }
  0xd8   : > { %v9080_v0 = vmov 0.0   ;;  %vm9081_vm0 = vmmov 0   ;;  %s11796_s3 = sld [smem:[#allocation30_spill]]  ;;  %p845_p11 = scmp.lt.s32.totalorder %s9236_s7, 1  ;;  %vm2012_vm1 = vcmask 516096  }
  0xd9   : > { %9051 = vsyncadd (%p11795_p8), [#allocation14], 4294965760  ;;  %7352 = vmatprep.subr.bf16.mxu0 %v9080_v0  ;;  %853 = vst [vmem:[#allocation2] sm:$0x1] %v9080_v0  ;;  %7372 = vmatprep.subr.bf16.mxu1 %v9080_v0  ;;  %s11797_s30 = sld [smem:[#allocation29_spill]]  ;;  %s11798_s11 = sld [smem:[#allocation32_spill]] }
  0xda   : > { %854 = vst [vmem:[#allocation2 + $0x11] sm:$0x1] %v9080_v0  ;;  %1196 = vst [vmem:[#allocation3] sm:$0x1] %v9080_v0  ;;  %7368 = vmatprep.mubr.msk.bf16.mxu0 %vm9081_vm0, %v9080_v0  ;;  %7388 = vmatprep.mubr.msk.bf16.mxu1 %vm9081_vm0, %v9080_v0  ;;  %s846_s5 = scalar_select %p845_p11, %s9236_s7, 1 }
  0xdb   : > { %1197 = vst [vmem:[#allocation3 + $0x11] sm:$0x1] %v9080_v0  ;;  %s11799_s18 = sld [smem:[#allocation31_spill]]  ;;  %s11862_s2 = sld [smem:[#allocation33_spill]] }
  0xdc   : > { %s6931_s8 = sshll.u32 %s846_s5, 4  ;;  %s11863_s29 = sld [smem:[#allocation35_spill]] }
  0xdd   : > { %s11983_s9 = sld [smem:[#allocation40_spill]]  ;;  %s12043_s22 = sld [smem:[#allocation42_spill]] }
  0xde   : > { %v8596_v1 = vld [vmem:[%s11796_s3 + $0x40] sm:$0xff]   ;;  %v8598_v3 = vld [vmem:[%s11796_s3 + $0x48] sm:$0xff]   ;;  %v8600_v5 = vld [vmem:[%s11796_s3 + $0x50] sm:$0xff]   ;;  %s12045_s20 = sld [smem:[#allocation43_spill]] }
  0xdf   : > { %v8597_v2 = vld [vmem:[%s11796_s3] sm:$0xff]   ;;  %7353 = vmatpush3.bf16.msra.mxu0 %v8596_v1  ;;  %v8599_v4 = vld [vmem:[%s11796_s3 + $0x8] sm:$0xff]   ;;  %v8601_v6 = vld [vmem:[%s11796_s3 + $0x10] sm:$0xff]   ;;  %s849_s6 = scalar_lea.vmem %s11797_s30, %s6931_s8  ;;  %s11924_s8 = sld [smem:[#allocation37_spill]] }
  0xe0   : > { %7373 = vmatpush3.bf16.msra.mxu1 %v8597_v2  ;;  %7354 = vmatprep.subr.bf16.mxu0 %v9080_v0  ;;  %v8602_v7 = vld [vmem:[%s11796_s3 + $0x58] sm:$0xff]   ;;  %v8604_v9 = vld [vmem:[%s11796_s3 + $0x60] sm:$0xff]   ;;  %v852_v12 = vld [vmem:[%s849_s6 + $0x8] sm:$0xff]  ;;  %s12046_s1 = sld [smem:[#allocation27_spill]]  ;;  %s12047_s30 = sld [smem:[#allocation44_spill]] }
  0xe1   : > { %7374 = vmatprep.subr.bf16.mxu1 %v9080_v0  ;;  %v8603_v8 = vld [vmem:[%s11796_s3 + $0x18] sm:$0xff]   ;;  %v8605_v10 = vld [vmem:[%s11796_s3 + $0x20] sm:$0xff]   ;;  %856 = vst [vmem:[#allocation2 + $0x9] sm:$0xff] %v852_v12  ;;  %v8606_v13 = vld [vmem:[%s11796_s3 + $0x68] sm:$0xff]  }
  0xe2   : > { %v851_v11 = vld [vmem:[%s849_s6] sm:$0xff]  ;;  %v8607_v14 = vld [vmem:[%s11796_s3 + $0x28] sm:$0xff]   ;;  %v8608_v15 = vld [vmem:[%s11796_s3 + $0x70] sm:$0xff]   ;;  %s12042_s6 = sld [smem:[#allocation41_spill]] }
  0xe3   : > { %7355 = vmatpush3.bf16.msra.mxu0 %v8598_v3  ;;  %855 = vst [vmem:[#allocation2 + $0x1] sm:$0xff] %v851_v11  ;;  %v8609_v16 = vld [vmem:[%s11796_s3 + $0x30] sm:$0xff]   ;;  %v8610_v20 = vld [vmem:[%s11796_s3 + $0x78] sm:$0xff]   ;;  %v8612_v22 = vld [vmem:[%s11796_s3 + $0x80] sm:$0xff]   ;;  %v878_v23 = vpack.c.bf16 %v852_v12, %v851_v11 }
  0xe4   : > { %7375 = vmatpush3.bf16.msra.mxu1 %v8599_v4  ;;  %7356 = vmatprep.subr.bf16.mxu0 %v9080_v0  ;;  %v8611_v21 = vld [vmem:[%s11796_s3 + $0x38] sm:$0xff]   ;;  %v8613_v25 = vld [vmem:[%s11796_s3 + $0x88] sm:$0xff]   ;;  %v8614_v26 = vld [vmem:[%s11796_s3 + $0x90] sm:$0xff]  }
  0xe5   : > { %7376 = vmatprep.subr.bf16.mxu1 %v9080_v0  ;;  %v8615_v27 = vld [vmem:[%s11796_s3 + $0x98] sm:$0xff]   ;;  %v8616_v28 = vld [vmem:[%s11796_s3 + $0xa0] sm:$0xff]   ;;  %v8617_v29 = vld [vmem:[%s11796_s3 + $0xa8] sm:$0xff]  }
  0xe6   : > { %v8618_v30 = vld [vmem:[%s11796_s3 + $0xb0] sm:$0xff]   ;;  %v8619_v31 = vld [vmem:[%s11796_s3 + $0xb8] sm:$0xff]   ;;  %v8620_v34 = vld [vmem:[%s11798_s11 + $0x40] sm:$0xff]   ;;  %p12049_p1 = scmp.ne.s32.totalorder %s12046_s1, 0 }
  0xe7   : > { %7357 = vmatpush3.bf16.msra.mxu0 %v8600_v5  ;;  %v8621_v35 = vld [vmem:[%s11798_s11] sm:$0xff]   ;;  %v8622_v36 = vld [vmem:[%s11798_s11 + $0x48] sm:$0xff]   ;;  %v8624_v38 = vld [vmem:[%s11798_s11 + $0x50] sm:$0xff]  }
  0xe8   : > { %7377 = vmatpush3.bf16.msra.mxu1 %v8601_v6  ;;  %7358 = vmatprep.subr.bf16.mxu0 %v9080_v0  ;;  %v1075_v32 = vld [vmem:[#allocation2 + $0xa] sm:$0xff]  ;;  %v8626_v40 = vld [vmem:[%s11798_s11 + $0x58] sm:$0xff]   ;;  %v8628_v41 = vld [vmem:[%s11798_s11 + $0x60] sm:$0xff]  }
  0xe9   : > { %7378 = vmatprep.subr.bf16.mxu1 %v9080_v0  ;;  %v8623_v37 = vld [vmem:[%s11798_s11 + $0x8] sm:$0xff]   ;;  %v8625_v39 = vld [vmem:[%s11798_s11 + $0x10] sm:$0xff]   ;;  %v8627_v43 = vld [vmem:[%s11798_s11 + $0x18] sm:$0xff]  }
  0xea   : > { %v857_v17 = vld [vmem:[#allocation2] sm:$0xff]  ;;  %v858_v18 = vld [vmem:[#allocation2 + $0x8] sm:$0xff]  ;;  %v8632_v44 = vld [vmem:[%s11798_s11 + $0x70] sm:$0xff]  }
  0xeb   : > { %7359 = vmatpush3.bf16.msra.mxu0 %v8602_v7  ;;  %v1074_v19 = vld [vmem:[#allocation2 + $0x2] sm:$0xff]  ;;  %2013 = vst.msk [vmem:[#allocation2] sm:$0x1] %vm2012_vm1, %v9080_v0  ;;  %v859_v24 = vpack.c.bf16 %v858_v18, %v857_v17  ;;  %v8634_v46 = vld [vmem:[%s11798_s11 + $0x78] sm:$0xff]   ;;  %v8633_v48 = vld [vmem:[%s11798_s11 + $0x30] sm:$0xff]  }
  0xec   : > { %7379 = vmatpush3.bf16.msra.mxu1 %v8603_v8  ;;  %7360 = vmatprep.subr.bf16.mxu0 %v9080_v0  ;;  %2014 = vst.msk [vmem:[#allocation2 + $0x9] sm:$0x1] %vm2012_vm1, %v9080_v0  ;;  %v1076_v33 = vpack.c.bf16 %v1075_v32, %v1074_v19  ;;  %v8630_v42 = vld [vmem:[%s11798_s11 + $0x68] sm:$0xff]   ;;  %v8629_v45 = vld [vmem:[%s11798_s11 + $0x20] sm:$0xff]   ;;  %v8635_v49 = vld [vmem:[%s11798_s11 + $0x38] sm:$0xff]  }
  0xed   : > { %7380 = vmatprep.subr.bf16.mxu1 %v9080_v0  ;;  %v8631_v47 = vld [vmem:[%s11798_s11 + $0x28] sm:$0xff]   ;;  %v6415_v61 = vld [vmem:[%s11799_s18] ss:$0 sm:$0xff]  ;;  %v8642_v19 = vld [vmem:[%s11798_s11 + $0xb0] sm:$0xff]   ;;  %s12048_s18 = smov %s12047_s30 }
  0xee   : > { %v8636_v8 = vld [vmem:[%s11798_s11 + $0x80] sm:$0xff]   ;;  %v8641_v18 = vld [vmem:[%s11798_s11 + $0xa8] sm:$0xff]  }
  0xef   : > { %7361 = vmatpush3.bf16.msra.mxu0 %v8604_v9  ;;  %v8640_v17 = vld [vmem:[%s11798_s11 + $0xa0] sm:$0xff]  }
  0xf0   : > { %7381 = vmatpush3.bf16.msra.mxu1 %v8605_v10  ;;  %7362 = vmatprep.subr.bf16.mxu0 %v9080_v0  ;;  %v8637_v10 = vld [vmem:[%s11798_s11 + $0x88] sm:$0xff]  }
  0xf1   : > { %7382 = vmatprep.subr.bf16.mxu1 %v9080_v0 }
  0xf3   : > { %7363 = vmatpush3.bf16.msra.mxu0 %v8606_v13 }
  0xf4   : > { %7383 = vmatpush3.bf16.msra.mxu1 %v8607_v14  ;;  %7364 = vmatprep.subr.bf16.mxu0 %v9080_v0  ;;  %v8638_v14 = vld [vmem:[%s11798_s11 + $0x90] sm:$0xff]  }
  0xf5   : > { %7384 = vmatprep.subr.bf16.mxu1 %v9080_v0 }
  0xf7   : > { %7365 = vmatpush3.bf16.msra.mxu0 %v8608_v15 }
  0xf8   : > { %7385 = vmatpush3.bf16.msra.mxu1 %v8609_v16  ;;  %7366 = vmatprep.subr.bf16.mxu0 %v9080_v0  ;;  %v8639_v16 = vld [vmem:[%s11798_s11 + $0x98] sm:$0xff]  }
  0xf9   : > { %7386 = vmatprep.subr.bf16.mxu1 %v9080_v0 }
  0xfb   : > { %7367 = vmatpush3.bf16.msra.mxu0 %v8610_v20  ;;  %v8643_v20 = vld [vmem:[%s11798_s11 + $0xb8] sm:$0xff]  }
  0xfc   : > { %7387 = vmatpush3.bf16.msra.mxu1 %v8611_v21  ;;  %7392 = vmatprep.subr.bf16.mxu0 %v9080_v0 }
  0xfd   : > { %7412 = vmatprep.subr.bf16.mxu1 %v9080_v0 }
  0xfe   : > { %7369 = vmatmul.mubr.bf16.vlgmr.msra.gmra.mrb[0].mxu0 %v878_v23  ;;  %v1539_v23 = vlaneseq }
  0xff   : > { %7389 = vmatmul.mubr.bf16.vlgmr.msra.gmra.mrb[0].mxu1 %v859_v24  ;;  %7393 = vmatpush3.bf16.msra.mxu0 %v8612_v22 }
 0x100   : > { %7394 = vmatprep.subr.bf16.mxu0 %v9080_v0  ;;  %7408 = vmatprep.mubr.msk.bf16.mxu0 %vm9081_vm0, %v9080_v0  ;;  %v9665_v24 = vand.u32 127, %v1539_v23 }
 0x101   : > { %7428 = vmatprep.mubr.msk.bf16.mxu1 %vm9081_vm0, %v9080_v0  ;;  %7413 = vmatpush3.bf16.msra.mxu1 %v8620_v34 }
 0x102   : > { %7414 = vmatprep.subr.bf16.mxu1 %v9080_v0 }
 0x103   : > { %7395 = vmatpush3.bf16.msra.mxu0 %v8613_v25  ;;  %v9667_v25 = vshrl.u32 %v1539_v23, 7 }
 0x104   : > { %7396 = vmatprep.subr.bf16.mxu0 %v9080_v0 }
 0x105   : > { %7415 = vmatpush3.bf16.msra.mxu1 %v8622_v36  ;;  %v1591_v32 = vshra.s32 %v9667_v25, 3 }
 0x106   : > { %7416 = vmatprep.subr.bf16.mxu1 %v9080_v0 }
 0x107   : > { %7397 = vmatpush3.bf16.msra.mxu0 %v8614_v26  ;;  %v1607_v26 = vshra.s32 %v9665_v24, 3 }
 0x108   : > { %7398 = vmatprep.subr.bf16.mxu0 %v9080_v0 }
 0x109   : > { %7417 = vmatpush3.bf16.msra.mxu1 %v8624_v38 }
 0x10a   : > { %7418 = vmatprep.subr.bf16.mxu1 %v9080_v0 }
 0x10b   : > { %7399 = vmatpush3.bf16.msra.mxu0 %v8615_v27  ;;  %v9671_v27 = vadd.s32 8, %v9667_v25 }
 0x10c   : > { %7400 = vmatprep.subr.bf16.mxu0 %v9080_v0 }
 0x10d   : > { %7419 = vmatpush3.bf16.msra.mxu1 %v8626_v40 }
 0x10e   : > { %7420 = vmatprep.subr.bf16.mxu1 %v9080_v0 }
 0x10f   : > { %7401 = vmatpush3.bf16.msra.mxu0 %v8616_v28  ;;  %v9673_v28 = vmul.u32 2, %v1607_v26  ;;  %v9922_v26 = vadd.s32 96, %v9667_v25 }
 0x110   : > { %7402 = vmatprep.subr.bf16.mxu0 %v9080_v0 }
 0x111   : > { %7421 = vmatpush3.bf16.msra.mxu1 %v8628_v41  ;;  %v9683_v34 = vadd.s32 1, %v9673_v28  ;;  %vm1609_vm4 = vcmp.eq.s32.totalorder %v1591_v32, %v9673_v28  ;;  %v1603_v36 = vshra.s32 %v9922_v26, 3 }
 0x112   : > { %7422 = vmatprep.subr.bf16.mxu1 %v9080_v0 }
 0x113   : > { %7403 = vmatpush3.bf16.msra.mxu0 %v8617_v29  ;;  %v1558_v29 = vand.u32 7, %v9667_v25  ;;  %vm9703_vm7 = vcmp.eq.s32.totalorder %v1591_v32, %v9683_v34 }
 0x114   : > { %7404 = vmatprep.subr.bf16.mxu0 %v9080_v0 }
 0x115   : > { %7423 = vmatpush3.bf16.msra.mxu1 %v8630_v42 }
 0x116   : > { %7424 = vmatprep.subr.bf16.mxu1 %v9080_v0 }
 0x117   : > { %7405 = vmatpush3.bf16.msra.mxu0 %v8618_v30  ;;  %v1559_v30 = vand.u32 7, %v9671_v27 }
 0x118   : > { %7406 = vmatprep.subr.bf16.mxu0 %v9080_v0 }
 0x119   : > { %7425 = vmatpush3.bf16.msra.mxu1 %v8632_v44 }
 0x11a   : > { %7426 = vmatprep.subr.bf16.mxu1 %v9080_v0 }
 0x11b   : > { %7407 = vmatpush3.bf16.msra.mxu0 %v8619_v31  ;;  %v9678_v31 = vand.u32 7, %v9665_v24 }
 0x11c   : > { %7432 = vmatprep.subr.bf16.mxu0 %v9080_v0 }
 0x11d   : > { %7427 = vmatpush3.bf16.msra.mxu1 %v8634_v46  ;;  %vm9686_vm2 = vcmp.eq.s32.totalorder %v1558_v29, %v9678_v31  ;;  %vm9691_vm3 = vcmp.eq.s32.totalorder %v1559_v30, %v9678_v31  ;;  %v9925_v29 = vadd.s32 104, %v9667_v25  ;;  %v8647_v46 = vld [vmem:[#allocation4 + $0x8] sm:$0xff]  }
 0x11e   : > { %7409 = vmatmul.mubr.bf16.vlgmr.msra.gmra.mrb[4].mxu0 %v1076_v33  ;;  %7452 = vmatprep.subr.bf16.mxu1 %v9080_v0  ;;  %v1592_v33 = vshra.s32 %v9671_v27, 3  ;;  %vm1625_vm6 = vmand %vm9686_vm2, %vm1609_vm4 }
 0x11f   : > { %7448 = vmatprep.mubr.msk.bf16.mxu0 %vm9081_vm0, %v9080_v0  ;;  %7433 = vmatpush3.bf16.msra.mxu0 %v8621_v35  ;;  %vm1674_vm11 = vmand %vm9686_vm2, %vm9703_vm7  ;;  %v1570_v35 = vand.u32 7, %v9922_v26  ;;  %v1571_v40 = vand.u32 7, %v9925_v29 }
 0x120   : > { %7434 = vmatprep.subr.bf16.mxu0 %v9080_v0  ;;  %vm1610_vm5 = vcmp.eq.s32.totalorder %v1592_v33, %v9673_v28  ;;  %vm9713_vm9 = vcmp.eq.s32.totalorder %v1592_v33, %v9683_v34 }
 0x121   : > { %vm1626_vm8 = vmand %vm9691_vm3, %vm1610_vm5 }
 0x122   : > { %vm8276_vm10 = vmpackc.low %vm1626_vm8, %vm1625_vm6 }
 0x123   : > { %7435 = vmatpush3.bf16.msra.mxu0 %v8623_v37  ;;  %v9697_v37 = vadd.s32 16, %v9667_v25  ;;  %vm1675_vm14 = vmand %vm9691_vm3, %vm9713_vm9 }
 0x124   : > { %7436 = vmatprep.subr.bf16.mxu0 %v9080_v0  ;;  %vm8308_vm4 = vmpackc.low %vm1675_vm14, %vm1674_vm11 }
 0x125   : > { %v1560_v41 = vand.u32 7, %v9697_v37  ;;  %v1593_v42 = vshra.s32 %v9697_v37, 3 }
 0x127   : > { %7437 = vmatpush3.bf16.msra.mxu0 %v8625_v39  ;;  %v9708_v39 = vadd.s32 24, %v9667_v25  ;;  %vm9727_vm12 = vcmp.eq.s32.totalorder %v1560_v41, %v9678_v31  ;;  %vm9732_vm13 = vcmp.eq.s32.totalorder %v1593_v42, %v9673_v28  ;;  %vm9765_vm5 = vcmp.eq.s32.totalorder %v1593_v42, %v9683_v34 }
 0x128   : > { %7438 = vmatprep.subr.bf16.mxu0 %v9080_v0  ;;  %vm1627_vm3 = vmand %vm9727_vm12, %vm9732_vm13  ;;  %v1604_v41 = vshra.s32 %v9925_v29, 3  ;;  %v9970_v42 = vadd.s32 112, %v9667_v25 }
 0x129   : > { %v1594_v44 = vshra.s32 %v9708_v39, 3  ;;  %vm1676_vm9 = vmand %vm9727_vm12, %vm9765_vm5 }
 0x12b   : > { %7439 = vmatpush3.bf16.msra.mxu0 %v8627_v43  ;;  %v1561_v43 = vand.u32 7, %v9708_v39  ;;  %vm9750_vm2 = vcmp.eq.s32.totalorder %v1594_v44, %v9673_v28  ;;  %vm1661_vm7 = vcmp.eq.s32.totalorder %v1594_v44, %v9683_v34  ;;  %v8646_v44 = vld [vmem:[#allocation4 + $0x28] sm:$0xff]  }
 0x12c   : > { %7440 = vmatprep.subr.bf16.mxu0 %v9080_v0 }
 0x12d   : > { %vm9745_vm15 = vcmp.eq.s32.totalorder %v1561_v43, %v9678_v31  ;;  %v9973_v43 = vadd.s32 120, %v9667_v25 }
 0x12e   : > { %vm1628_vm6 = vmand %vm9745_vm15, %vm9750_vm2 }
 0x12f   : > { %7441 = vmatpush3.bf16.msra.mxu0 %v8629_v45  ;;  %v9082_v45 = vmov 1.0|1.0   ;;  %vm8280_vm8 = vmpackc.low %vm1628_vm6, %vm1627_vm3 }
 0x130   : > { %7442 = vmatprep.subr.bf16.mxu0 %v9080_v0  ;;  %vm1677_vm13 = vmand %vm9745_vm15, %vm1661_vm7 }
 0x131   : > { %vm8312_vm2 = vmpackc.low %vm1677_vm13, %vm1676_vm9 }
 0x133   : > { %7443 = vmatpush3.bf16.msra.mxu0 %v8631_v47  ;;  %v8648_v47 = vld [vmem:[#allocation4 + $0x30] sm:$0xff]  }
 0x134   : > { %7444 = vmatprep.subr.bf16.mxu0 %v9080_v0 }
 0x137   : > { %7445 = vmatpush3.bf16.msra.mxu0 %v8633_v48  ;;  %v9737_v48 = vadd.s32 32, %v9667_v25 }
 0x138   : > { %7446 = vmatprep.subr.bf16.mxu0 %v9080_v0 }
 0x13b   : > { %7447 = vmatpush3.bf16.msra.mxu0 %v8635_v49  ;;  %v1572_v49 = vand.u32 7, %v9970_v42 }
 0x13c   : > { %8277 = vmatprep.subr.msk.bf16.mxu0 %vm8276_vm10, %v9082_v45 }
 0x1d1   : > { %v978_v50 = vpop.f32.mrb[0].mxu0 }
 0x1d2   : > { %v1067_v51 = vpop.f32.mrb[0].mxu1  ;;  %v7370_v52 = vpop.f32.mrb[1].mxu0 }
 0x1d3   : > { %v1068_v53 = vadd.f32 %v1067_v51, %v978_v50  ;;  %v7390_v54 = vpop.f32.mrb[1].mxu1  ;;  %v981_v55 = vpop.f32.mrb[2].mxu0  ;;  %v9755_v51 = vadd.s32 40, %v9667_v25  ;;  %v1562_v52 = vand.u32 7, %v9737_v48  ;;  %v1605_v50 = vshra.s32 %v9970_v42, 3 }
 0x1d4   : > { %v1070_v56 = vpop.f32.mrb[2].mxu1  ;;  %v7371_v57 = vpop.f32.mrb[3].mxu0  ;;  %v1606_v54 = vshra.s32 %v9973_v43, 3 }
 0x1d5   : > { %v1071_v58 = vadd.f32 %v1070_v56, %v981_v55  ;;  %v7391_v59 = vpop.f32.mrb[3].mxu1  ;;  %v1563_v55 = vand.u32 7, %v9755_v51  ;;  %v1596_v56 = vshra.s32 %v9755_v51, 3  ;;  %v9778_v57 = vadd.s32 48, %v9667_v25 }
 0x1d7   : > { %vm9802_vm14 = vcmp.eq.s32.totalorder %v1563_v55, %v9678_v31  ;;  %vm1614_vm12 = vcmp.eq.s32.totalorder %v1596_v56, %v9673_v28  ;;  %vm1663_vm5 = vcmp.eq.s32.totalorder %v1596_v56, %v9683_v34 }
 0x1d8   : > { %vm1630_vm3 = vmand %vm9802_vm14, %vm1614_vm12 }
 0x1f1   : > { %v1176_v60 = vpop.f32.mrb[4].mxu0 }
 0x1f2   : > { %v1183_v62 = vadd.f32 %v1176_v60, %v1068_v53  ;;  %v7410_v63 = vpop.f32.mrb[5].mxu0  ;;  %v1595_v53 = vshra.s32 %v9737_v48, 3 }
 0x1f3   : > { %v1179_v1 = vpop.f32.mrb[6].mxu0  ;;  %v1597_v63 = vshra.s32 %v9778_v57, 3 }
 0x1f4   : > { %v1192_v2 = vadd.f32 %v6415_v61, %v1183_v62  ;;  %v1184_v3 = vadd.f32 %v1179_v1, %v1071_v58  ;;  %v7411_v4 = vpop.f32.mrb[7].mxu0  ;;  %v9781_v58 = vadd.s32 56, %v9667_v25  ;;  %vm9794_vm11 = vcmp.eq.s32.totalorder %v1595_v53, %v9673_v28 }
 0x1f5   : > { %v1564_v62 = vand.u32 7, %v9778_v57  ;;  %v9826_v4 = vadd.s32 64, %v9667_v25  ;;  %vm9842_vm9 = vcmp.eq.s32.totalorder %v1597_v63, %v9673_v28 }
 0x1f6   : > { %v1194_v5 = vmax.f32 %v1192_v2, 0.0  ;;  %v1193_v6 = vadd.f32 %v6415_v61, %v1184_v3  ;;  %v1565_v2 = vand.u32 7, %v9781_v58  ;;  %v1598_v3 = vshra.s32 %v9781_v58, 3 }
 0x1f8   : > { %1198 = vst [vmem:[#allocation3 + $0x1] sm:$0xff] %v1194_v5  ;;  %v1195_v7 = vmax.f32 %v1193_v6, 0.0  ;;  %vm9850_vm13 = vcmp.eq.s32.totalorder %v1565_v2, %v9678_v31  ;;  %v6472_v6 = vld [vmem:[%s11862_s2] ss:$0 sm:$0xff]  ;;  %s12044_s2 = sld [smem:[#allocation22_spill]] }
 0x1fa   : > { %1199 = vst [vmem:[#allocation3 + $0x9] sm:$0xff] %v1195_v7  ;;  %v1221_v9 = vpack.c.bf16 %v1195_v7, %v1194_v5  ;;  %v9829_v5 = vadd.s32 72, %v9667_v25 }
 0x1fc   : > { %7429 = vmatmul.mubr.bf16.vlgmr.msra.gmra.mrb[4].mxu1 %v1221_v9  ;;  %v1566_v9 = vand.u32 7, %v9826_v4 }
 0x1fd   : > { %7453 = vmatpush3.bf16.msra.mxu1 %v8636_v8  ;;  %7468 = vmatprep.mubr.msk.bf16.mxu1 %vm9081_vm0, %v9080_v0 }
 0x1fe   : > { %7454 = vmatprep.subr.bf16.mxu1 %v9080_v0  ;;  %s843_s5 = sand.u32 1, %s12044_s2  }
 0x1ff   : > { %v1200_v11 = vld [vmem:[#allocation3] sm:$0xff]  ;;  %s844_s4 = scalar_lea.vmem [#allocation15], %s843_s5  ;;  %s6214_s25 = scalar_lea.sflag [#allocation6], %s843_s5 }
 0x200   : > { %2260 = vst [vmem:[#allocation3] sm:$0x1] %v9080_v0  ;;  %s6226_s24 = sshll.u32 %s844_s4, 4  ;;  %s11667_s24 = int_to_ptr.vmem [resolvable:$true] %s6226_s24 }
 0x201   : > { %v1417_v12 = vld [vmem:[#allocation3 + $0x2] sm:$0xff]  ;;  %7455 = vmatpush3.bf16.msra.mxu1 %v8637_v10  ;;  %v1418_v21 = vld [vmem:[#allocation3 + $0xa] sm:$0xff]  ;;  %v1599_v10 = vshra.s32 %v9826_v4, 3 }
 0x202   : > { %v1201_v13 = vld [vmem:[#allocation3 + $0x8] sm:$0xff]  ;;  %7456 = vmatprep.subr.bf16.mxu1 %v9080_v0  ;;  %v1419_v22 = vpack.c.bf16 %v1418_v21, %v1417_v12  ;;  %v1567_v12 = vand.u32 7, %v9829_v5 }
 0x203   : > { %v1202_v15 = vpack.c.bf16 %v1201_v13, %v1200_v11  ;;  %2261 = vst [vmem:[#allocation3 + $0x9] sm:$0x1] %v9080_v0  ;;  %v1600_v13 = vshra.s32 %v9829_v5, 3 }
 0x205   : > { %7449 = vmatmul.mubr.bf16.vlgmr.msra.gmra.mrb[8].mxu0 %v1202_v15  ;;  %7457 = vmatpush3.bf16.msra.mxu1 %v8638_v14  ;;  %v9874_v14 = vadd.s32 80, %v9667_v25  ;;  %v9877_v15 = vadd.s32 88, %v9667_v25 }
 0x206   : > { %7458 = vmatprep.subr.bf16.mxu1 %v9080_v0  ;;  %8279 = vmatpush3.bf16.msk.msra.mxu0 %vm8276_vm10, %v9082_v45  ;;  %vm9789_vm10 = vcmp.eq.s32.totalorder %v1562_v52, %v9678_v31  ;;  %v8651_v52 = vld [vmem:[#allocation4 + $0x18] sm:$0xff]  }
 0x207   : > { %8281 = vmatprep.subr.msk.bf16.mxu0 %vm8280_vm8, %v9082_v45  ;;  %vm1629_vm15 = vmand %vm9789_vm10, %vm9794_vm11  ;;  %v1602_v23 = vshra.s32 %v9877_v15, 3 }
 0x208   : > { %vm8284_vm6 = vmpackc.low %vm1630_vm3, %vm1629_vm15 }
 0x209   : > { %7459 = vmatpush3.bf16.msra.mxu1 %v8639_v16  ;;  %vm1679_vm11 = vmand %vm9802_vm14, %vm1663_vm5 }
 0x20a   : > { %7460 = vmatprep.subr.bf16.mxu1 %v9080_v0  ;;  %8283 = vmatpush3.bf16.msk.msra.mxu0 %vm8280_vm8, %v9082_v45  ;;  %vm9837_vm8 = vcmp.eq.s32.totalorder %v1564_v62, %v9678_v31 }
 0x20b   : > { %8285 = vmatprep.subr.msk.bf16.mxu0 %vm8284_vm6, %v9082_v45  ;;  %vm1631_vm14 = vmand %vm9837_vm8, %vm9842_vm9 }
 0x20d   : > { %7461 = vmatpush3.bf16.msra.mxu1 %v8640_v17 }
 0x20e   : > { %7462 = vmatprep.subr.bf16.mxu1 %v9080_v0  ;;  %8287 = vmatpush3.bf16.msk.msra.mxu0 %vm8284_vm6, %v9082_v45  ;;  %vm9885_vm6 = vcmp.eq.s32.totalorder %v1566_v9, %v9678_v31 }
 0x211   : > { %7463 = vmatpush3.bf16.msra.mxu1 %v8641_v18  ;;  %v9083_v18 = vmov 0.0|0.0  }
 0x212   : > { %7464 = vmatprep.subr.bf16.mxu1 %v9080_v0 }
 0x215   : > { %7465 = vmatpush3.bf16.msra.mxu1 %v8642_v19  ;;  %v1568_v19 = vand.u32 7, %v9874_v14 }
 0x216   : > { %7466 = vmatprep.subr.bf16.mxu1 %v9080_v0 }
 0x219   : > { %7467 = vmatpush3.bf16.msra.mxu1 %v8643_v20  ;;  %v1601_v20 = vshra.s32 %v9874_v14, 3 }
 0x21a   : > { %8309 = vmatprep.subr.msk.bf16.mxu1 %vm8308_vm4, %v9082_v45 }
 0x21c   : > { %7469 = vmatmul.mubr.bf16.vlgmr.msra.gmra.mrb[8].mxu1 %v1419_v22  ;;  %v1569_v22 = vand.u32 7, %v9877_v15 }
 0x21d   : > { %8311 = vmatpush3.bf16.msk.msra.mxu1 %vm8308_vm4, %v9082_v45  ;;  %vm9815_vm4 = vcmp.eq.s32.totalorder %v1595_v53, %v9683_v34  ;;  %v1573_v53 = vand.u32 7, %v9973_v43 }
 0x21e   : > { %8313 = vmatprep.subr.msk.bf16.mxu1 %vm8312_vm2, %v9082_v45  ;;  %vm1678_vm7 = vmand %vm9789_vm10, %vm9815_vm4  ;;  %vm1616_vm10 = vcmp.eq.s32.totalorder %v1598_v3, %v9673_v28  ;;  %vm1665_vm4 = vcmp.eq.s32.totalorder %v1598_v3, %v9683_v34 }
 0x21f   : > { %vm8316_vm12 = vmpackc.low %vm1679_vm11, %vm1678_vm7  ;;  %vm9890_vm7 = vcmp.eq.s32.totalorder %v1599_v10, %v9673_v28  ;;  %vm9898_vm11 = vcmp.eq.s32.totalorder %v1567_v12, %v9678_v31 }
 0x220   : > { %vm1632_vm15 = vmand %vm9850_vm13, %vm1616_vm10 }
 0x221   : > { %8315 = vmatpush3.bf16.msk.msra.mxu1 %vm8312_vm2, %v9082_v45  ;;  %vm9863_vm2 = vcmp.eq.s32.totalorder %v1597_v63, %v9683_v34  ;;  %vm8288_vm3 = vmpackc.low %vm1632_vm15, %vm1631_vm14 }
 0x222   : > { %8317 = vmatprep.subr.msk.bf16.mxu1 %vm8316_vm12, %v9082_v45  ;;  %8289 = vmatprep.subr.msk.bf16.mxu0 %vm8288_vm3, %v9082_v45  ;;  %vm1680_vm5 = vmand %vm9837_vm8, %vm9863_vm2  ;;  %vm1618_vm8 = vcmp.eq.s32.totalorder %v1600_v13, %v9673_v28  ;;  %vm1667_vm2 = vcmp.eq.s32.totalorder %v1600_v13, %v9683_v34 }
 0x223   : > { %vm1681_vm9 = vmand %vm9850_vm13, %vm1665_vm4  ;;  %8291 = vmatpush3.bf16.msk.msra.mxu0 %vm8288_vm3, %v9082_v45  ;;  %vm9933_vm3 = vcmp.eq.s32.totalorder %v1568_v19, %v9678_v31  ;;  %v1858_v19 = vmul.u32 2, %v9667_v25 }
 0x224   : > { %vm8320_vm10 = vmpackc.low %vm1681_vm9, %vm1680_vm5  ;;  %vm9938_vm5 = vcmp.eq.s32.totalorder %v1601_v20, %v9673_v28  ;;  %vm9946_vm9 = vcmp.eq.s32.totalorder %v1569_v22, %v9678_v31 }
 0x225   : > { %8319 = vmatpush3.bf16.msk.msra.mxu1 %vm8316_vm12, %v9082_v45  ;;  %vm1633_vm13 = vmand %vm9885_vm6, %vm9890_vm7  ;;  %vm9911_vm12 = vcmp.eq.s32.totalorder %v1599_v10, %v9683_v34  ;;  %v1861_v33 = vadd.s32 1, %v1858_v19 }
 0x226   : > { %8321 = vmatprep.subr.msk.bf16.mxu1 %vm8320_vm10, %v9082_v45  ;;  %vm1634_vm14 = vmand %vm9898_vm11, %vm1618_vm8 }
 0x227   : > { %vm8292_vm15 = vmpackc.low %vm1634_vm14, %vm1633_vm13 }
 0x228   : > { %8293 = vmatprep.subr.msk.bf16.mxu0 %vm8292_vm15, %v9082_v45  ;;  %vm1682_vm4 = vmand %vm9885_vm6, %vm9911_vm12  ;;  %vm1620_vm6 = vcmp.eq.s32.totalorder %v1602_v23, %v9673_v28  ;;  %vm1669_vm12 = vcmp.eq.s32.totalorder %v1602_v23, %v9683_v34 }
 0x229   : > { %8323 = vmatpush3.bf16.msk.msra.mxu1 %vm8320_vm10, %v9082_v45  ;;  %vm1683_vm7 = vmand %vm9898_vm11, %vm1667_vm2  ;;  %8295 = vmatpush3.bf16.msk.msra.mxu0 %vm8292_vm15, %v9082_v45  ;;  %vm9959_vm10 = vcmp.eq.s32.totalorder %v1601_v20, %v9683_v34  ;;  %vm9981_vm15 = vcmp.eq.s32.totalorder %v1570_v35, %v9678_v31 }
 0x22a   : > { %vm8324_vm8 = vmpackc.low %vm1683_vm7, %vm1682_vm4  ;;  %vm9986_vm4 = vcmp.eq.s32.totalorder %v1603_v36, %v9673_v28  ;;  %vm9994_vm7 = vcmp.eq.s32.totalorder %v1571_v40, %v9678_v31  ;;  %v8644_v40 = vld [vmem:[#allocation4 + $0x20] sm:$0xff]  }
 0x22b   : > { %8325 = vmatprep.subr.msk.bf16.mxu1 %vm8324_vm8, %v9082_v45  ;;  %vm1635_vm11 = vmand %vm9933_vm3, %vm9938_vm5 }
 0x22c   : > { %vm1636_vm13 = vmand %vm9946_vm9, %vm1620_vm6 }
 0x22d   : > { %8327 = vmatpush3.bf16.msk.msra.mxu1 %vm8324_vm8, %v9082_v45  ;;  %vm8296_vm14 = vmpackc.low %vm1636_vm13, %vm1635_vm11  ;;  %vm10007_vm8 = vcmp.eq.s32.totalorder %v1603_v36, %v9683_v34 }
 0x22e   : > { %8297 = vmatprep.subr.msk.bf16.mxu0 %vm8296_vm14, %v9082_v45  ;;  %vm1684_vm2 = vmand %vm9933_vm3, %vm9959_vm10  ;;  %vm1622_vm3 = vcmp.eq.s32.totalorder %v1604_v41, %v9673_v28  ;;  %vm1671_vm10 = vcmp.eq.s32.totalorder %v1604_v41, %v9683_v34  ;;  %v8645_v41 = vld [vmem:[#allocation4] sm:$0xff]  }
 0x22f   : > { %vm1685_vm5 = vmand %vm9946_vm9, %vm1669_vm12  ;;  %8299 = vmatpush3.bf16.msk.msra.mxu0 %vm8296_vm14, %v9082_v45  ;;  %vm10023_vm14 = vcmp.eq.s32.totalorder %v1572_v49, %v9678_v31  ;;  %v8649_v49 = vld [vmem:[#allocation4 + $0x10] sm:$0xff]  }
 0x230   : > { %vm8328_vm6 = vmpackc.low %vm1685_vm5, %vm1684_vm2  ;;  %vm1623_vm2 = vcmp.eq.s32.totalorder %v1605_v50, %v9673_v28  ;;  %vm10032_vm5 = vcmp.eq.s32.totalorder %v1573_v53, %v9678_v31 }
 0x231   : > { %8329 = vmatprep.subr.msk.bf16.mxu1 %vm8328_vm6, %v9082_v45  ;;  %vm1637_vm9 = vmand %vm9981_vm15, %vm9986_vm4 }
 0x232   : > { %8331 = vmatpush3.bf16.msk.msra.mxu1 %vm8328_vm6, %v9082_v45  ;;  %vm1638_vm11 = vmand %vm9994_vm7, %vm1622_vm3  ;;  %vm1624_vm3 = vcmp.eq.s32.totalorder %v1606_v54, %v9673_v28 }
 0x233   : > { %vm8300_vm13 = vmpackc.low %vm1638_vm11, %vm1637_vm9  ;;  %vm1672_vm9 = vcmp.eq.s32.totalorder %v1605_v50, %v9683_v34  ;;  %v8650_v50 = vld [vmem:[#allocation4 + $0x38] sm:$0xff]  }
 0x234   : > { %8301 = vmatprep.subr.msk.bf16.mxu0 %vm8300_vm13, %v9082_v45  ;;  %vm1686_vm12 = vmand %vm9981_vm15, %vm10007_vm8  ;;  %vm1673_vm8 = vcmp.eq.s32.totalorder %v1606_v54, %v9683_v34 }
 0x235   : > { %vm1687_vm4 = vmand %vm9994_vm7, %vm1671_vm10  ;;  %8303 = vmatpush3.bf16.msk.msra.mxu0 %vm8300_vm13, %v9082_v45 }
 0x236   : > { %vm8332_vm15 = vmpackc.low %vm1687_vm4, %vm1686_vm12  ;;  %vm1862_vm4 = vcmp.eq.s32.totalorder %v9665_v24, %v1861_v33 }
 0x237   : > { %8333 = vmatprep.subr.msk.bf16.mxu1 %vm8332_vm15, %v9082_v45  ;;  %vm1639_vm6 = vmand %vm10023_vm14, %vm1623_vm2  ;;  %vm1864_vm2 = vcmask 130048   ;;  %v10073_v38 = vsel %vm1862_vm4, 1.0, %v9080_v0 }
 0x238   : > { %8335 = vmatpush3.bf16.msk.msra.mxu1 %vm8332_vm15, %v9082_v45  ;;  %vm1640_vm7 = vmand %vm10032_vm5, %vm1624_vm3 }
 0x239   : > { %vm8304_vm11 = vmpackc.low %vm1640_vm7, %vm1639_vm6 }
 0x23a   : > { %8305 = vmatprep.subr.msk.bf16.mxu0 %vm8304_vm11, %v9082_v45  ;;  %vm1688_vm10 = vmand %vm10023_vm14, %vm1672_vm9  ;;  %vm1859_vm14 = vcmp.eq.s32.totalorder %v9665_v24, %v1858_v19  ;;  %v8668_v19 = vld [vmem:[#allocation7 + $0x70] sm:$0xff]  }
 0x23b   : > { %vm1689_vm13 = vmand %vm10032_vm5, %vm1673_vm8  ;;  %8307 = vmatpush3.bf16.msk.msra.mxu0 %vm8304_vm11, %v9082_v45  ;;  %v10065_v36 = vsel %vm1859_vm14, 1.0, %v9080_v0  ;;  %vm2015_vm5 = vcmask 523264  }
 0x23c   : > { %vm8336_vm12 = vmpackc.low %vm1689_vm13, %vm1688_vm10  ;;  %7556 = vmatprep.subr.bf16.mxu0 %v9080_v0 }
 0x23d   : > { %8337 = vmatprep.subr.msk.bf16.mxu1 %vm8336_vm12, %v9082_v45 }
 0x23e   : > { %8339 = vmatpush3.bf16.msk.msra.mxu1 %vm8336_vm12, %v9082_v45 }
 0x23f   : > { %8340 = vmatprep.subr.bf16.mxu1 %v9083_v18 }
 0x2cf   : > { %v1321_v28 = vpop.f32.mrb[4].mxu1 }
 0x2d0   : > { %v7430_v31 = vpop.f32.mrb[5].mxu1 }
 0x2d1   : > { %v1324_v34 = vpop.f32.mrb[6].mxu1  ;;  %v8652_v31 = vld [vmem:[#allocation4 + $0x40] sm:$0xff]  }
 0x2d2   : > { %v7431_v59 = vpop.f32.mrb[7].mxu1 }
 0x2d8   : > { %v1410_v60 = vpop.f32.mrb[8].mxu0 }
 0x2d9   : > { %v1411_v61 = vadd.f32 %v1410_v60, %v1321_v28  ;;  %v7450_v62 = vpop.f32.mrb[9].mxu0 }
 0x2da   : > { %v1413_v63 = vpop.f32.mrb[10].mxu0 }
 0x2db   : > { %v1414_v1 = vadd.f32 %v1413_v63, %v1324_v34  ;;  %v7451_v2 = vpop.f32.mrb[11].mxu0  ;;  %v8653_v63 = vld [vmem:[#allocation4 + $0x48] sm:$0xff]  }
 0x2dc   : > { %v8655_v2 = vld [vmem:[#allocation4 + $0x58] sm:$0xff]  }
 0x2ef   : > { %v1519_v3 = vpop.f32.mrb[8].mxu1 }
 0x2f0   : > { %v1526_v7 = vadd.f32 %v1519_v3, %v1411_v61  ;;  %v7470_v8 = vpop.f32.mrb[9].mxu1 }
 0x2f1   : > { %v1522_v9 = vpop.f32.mrb[10].mxu1  ;;  %v8660_v8 = vld [vmem:[#allocation7 + $0x50] sm:$0xff]  }
 0x2f2   : > { %v1535_v10 = vadd.f32 %v6472_v6, %v1526_v7  ;;  %v1527_v11 = vadd.f32 %v1522_v9, %v1414_v1  ;;  %v7471_v12 = vpop.f32.mrb[11].mxu1  ;;  %v8654_v1 = vld [vmem:[#allocation4 + $0x50] sm:$0xff]   ;;  %v8658_v7 = vld [vmem:[#allocation7 + $0x48] sm:$0xff]   ;;  %v8657_v9 = vld [vmem:[#allocation7] sm:$0xff]  }
 0x2f3   : > { %v8661_v12 = vld [vmem:[#allocation7 + $0x10] sm:$0xff]  }
 0x2f4   : > { %v1537_v13 = vmax.f32 %v1535_v10, 0.0  ;;  %v1536_v16 = vadd.f32 %v6472_v6, %v1527_v11  ;;  %v8656_v6 = vld [vmem:[#allocation7 + $0x40] sm:$0xff]   ;;  %v8659_v10 = vld [vmem:[#allocation7 + $0x8] sm:$0xff]   ;;  %v8662_v11 = vld [vmem:[#allocation7 + $0x58] sm:$0xff]  }
 0x2f6   : > { %v1538_v17 = vmax.f32 %v1536_v16, 0.0  ;;  %7504 = vmatprep.mubr.f32.mxu0 %v1537_v13  ;;  %7539 = vmatprep.mubr.f32.mxu1 %v1537_v13  ;;  %v8664_v13 = vld [vmem:[#allocation7 + $0x60] sm:$0xff]   ;;  %v8663_v16 = vld [vmem:[#allocation7 + $0x18] sm:$0xff]  }
 0x2f8   : > { %7505 = vmatmul.mubr.f32.vlgmr.msra.gmra.mrb[12].mxu0 %v1538_v17  ;;  %7540 = vmatmul.mubr.f32.vlgmr.msra.gmra.mrb[12].mxu1 %v1538_v17  ;;  %v8666_v17 = vld [vmem:[#allocation7 + $0x68] sm:$0xff]  }
 0x2f9   : > { %7546 = vmatprep.mubr.msk.f32.mxu1 %vm9081_vm0, %v9080_v0  ;;  %7564 = vmatprep.mubr.msk.bf16.mxu0 %vm9081_vm0, %v9080_v0 }
 0x2fa   : > { %7557 = vmatpush3.bf16.msra.mxu0 %v8644_v40 }
 0x2fb   : > { %7558 = vmatprep.subr.bf16.mxu0 %v9080_v0 }
 0x2fe   : > { %7559 = vmatpush3.bf16.msra.mxu0 %v8646_v44 }
 0x2ff   : > { %7560 = vmatprep.subr.bf16.mxu0 %v9080_v0 }
 0x302   : > { %7561 = vmatpush3.bf16.msra.mxu0 %v8648_v47 }
 0x303   : > { %7562 = vmatprep.subr.bf16.mxu0 %v9080_v0 }
 0x306   : > { %7563 = vmatpush3.bf16.msra.mxu0 %v8650_v50 }
 0x307   : > { %7580 = vmatprep.subr.bf16.mxu0 %v9080_v0 }
 0x3cb   : > { %v7506_v20 = vpop.f32.mrb[12].mxu0  ;;  %v7541_v21 = vpop.f32.mrb[12].mxu1 }
 0x3cc   : > { %v1857_v22 = vmax.f32 %v7506_v20, %v7541_v21  ;;  %v1772_v23 = vpop.f32.mrb[13].mxu0  ;;  %v1847_v30 = vpop.f32.mrb[13].mxu1  ;;  %v8665_v20 = vld [vmem:[#allocation7 + $0x20] sm:$0xff]   ;;  %v8670_v21 = vld [vmem:[#allocation7 + $0x78] sm:$0xff]  }
 0x3cd   : > { %v1856_v32 = vmax.f32 %v1772_v23, %v1847_v30  ;;  %v8669_v23 = vld [vmem:[#allocation7 + $0x30] sm:$0xff]   ;;  %v8671_v30 = vld [vmem:[#allocation7 + $0x38] sm:$0xff]  }
 0x3cf   : > { %v8341_v35 = vpack.c.bf16 %v1857_v22, %v1856_v32  ;;  %v8667_v22 = vld [vmem:[#allocation7 + $0x28] sm:$0xff]  }
 0x3d1   : > { %8342 = vmatpush3.bf16.msra.mxu1 %v8341_v35 }
 0x3d2   : > { %8343 = vmatprep.subr.bf16.mxu1 %v9083_v18 }
 0x3d4   : > { %7547 = vmatmul.mubr.msk.f32.vlgmr.msra.gmra.mrb[14].mxu1 %vm1864_vm2, %v10065_v36 }
 0x3d5   : > { %8345 = vmatpush3.bf16.msra.mxu1 %v8341_v35  ;;  %7553 = vmatprep.mubr.msk.f32.mxu1 %vm9081_vm0, %v9080_v0 }
 0x3d6   : > { %7568 = vmatprep.subr.bf16.mxu1 %v9080_v0 }
 0x3d8   : > { %7554 = vmatmul.mubr.msk.f32.vlgmr.msra.gmra.mrb[16].mxu1 %vm1864_vm2, %v10073_v38 }
 0x3d9   : > { %7576 = vmatprep.mubr.msk.bf16.mxu1 %vm9081_vm0, %v9080_v0  ;;  %7569 = vmatpush3.bf16.msra.mxu1 %v8645_v41 }
 0x3da   : > { %7570 = vmatprep.subr.bf16.mxu1 %v9080_v0 }
 0x3dd   : > { %7571 = vmatpush3.bf16.msra.mxu1 %v8647_v46 }
 0x3de   : > { %7572 = vmatprep.subr.bf16.mxu1 %v9080_v0 }
 0x3e1   : > { %7573 = vmatpush3.bf16.msra.mxu1 %v8649_v49 }
 0x3e2   : > { %7574 = vmatprep.subr.bf16.mxu1 %v9080_v0 }
 0x3e5   : > { %7575 = vmatpush3.bf16.msra.mxu1 %v8651_v52  ;;  %v6522_v52 = vld [vmem:[%s11863_s29] ss:$0 sm:$0xff] }
 0x3e6   : > { %7592 = vmatprep.subr.bf16.mxu1 %v9080_v0 }
 0x4a7   : > { %v1934_v53 = vpop.f32.mrb[14].mxu1 }
 0x4a8   : > { %v7548_v54 = vpop.f32.mrb[15].mxu1 }
 0x4ab   : > { %v2007_v55 = vpop.f32.mrb[16].mxu1 }
 0x4ac   : > { %v2011_v56 = vmax.f32 %v1934_v53, %v2007_v55  ;;  %v7555_v28 = vpop.f32.mrb[17].mxu1 }
 0x4ae   : > { %2016 = vst.msk [vmem:[#allocation2 + $0x1] sm:$0xff] %vm2015_vm5, %v2011_v56 }
 0x4b5   : > { %v2027_v34 = vld [vmem:[#allocation2 + $0x1] sm:$0xff] }
 0x4b6   : > { %v2017_v59 = vld [vmem:[#allocation2] sm:$0xff]  ;;  %v2028_v61 = vpack.c.bf16 %v2027_v34, %v2027_v34  ;;  %v8672_v34 = vld [vmem:[#allocation7 + $0x80] sm:$0xff]  }
 0x4b7   : > { %v2172_v60 = vld [vmem:[#allocation2 + $0x2] sm:$0xff]  ;;  %v2018_v62 = vpack.c.bf16 %v2017_v59, %v2017_v59  ;;  %3028 = vst.msk [vmem:[#allocation2] sm:$0x1] %vm2012_vm1, %v9080_v0 }
 0x4b8   : > { %3029 = vst.msk [vmem:[#allocation2 + $0x5] sm:$0x1] %vm2012_vm1, %v9080_v0  ;;  %7565 = vmatmul.mubr.msk.bf16.vlgmr.msra.gmra.mrb[16].mxu0 %vm2015_vm5, %v2028_v61  ;;  %v2173_v3 = vpack.c.bf16 %v2172_v60, %v2172_v60  ;;  %v8673_v60 = vld [vmem:[#allocation7 + $0x88] sm:$0xff]  }
 0x4b9   : > { %7577 = vmatmul.mubr.msk.bf16.vlgmr.msra.gmra.mrb[20].mxu1 %vm2015_vm5, %v2018_v62  ;;  %7581 = vmatpush3.bf16.msra.mxu0 %v8652_v31  ;;  %v8674_v62 = vld [vmem:[#allocation7 + $0x90] sm:$0xff]  }
 0x4ba   : > { %7588 = vmatprep.mubr.msk.bf16.mxu0 %vm9081_vm0, %v9080_v0  ;;  %7582 = vmatprep.subr.bf16.mxu0 %v9080_v0 }
 0x4bb   : > { %7608 = vmatprep.mubr.msk.bf16.mxu1 %vm9081_vm0, %v9080_v0  ;;  %7593 = vmatpush3.bf16.msra.mxu1 %v8656_v6  ;;  %v8677_v6 = vld [vmem:[#allocation7 + $0xa8] sm:$0xff]  }
 0x4bc   : > { %7594 = vmatprep.subr.bf16.mxu1 %v9080_v0 }
 0x4bd   : > { %7583 = vmatpush3.bf16.msra.mxu0 %v8653_v63 }
 0x4be   : > { %7584 = vmatprep.subr.bf16.mxu0 %v9080_v0 }
 0x4bf   : > { %7595 = vmatpush3.bf16.msra.mxu1 %v8658_v7  ;;  %v8678_v7 = vld [vmem:[#allocation7 + $0xb0] sm:$0xff]  }
 0x4c0   : > { %7596 = vmatprep.subr.bf16.mxu1 %v9080_v0 }
 0x4c1   : > { %7585 = vmatpush3.bf16.msra.mxu0 %v8654_v1 }
 0x4c2   : > { %7586 = vmatprep.subr.bf16.mxu0 %v9080_v0 }
 0x4c3   : > { %7597 = vmatpush3.bf16.msra.mxu1 %v8660_v8  ;;  %v8679_v8 = vld [vmem:[#allocation7 + $0xb8] sm:$0xff]  }
 0x4c4   : > { %7598 = vmatprep.subr.bf16.mxu1 %v9080_v0 }
 0x4c5   : > { %7587 = vmatpush3.bf16.msra.mxu0 %v8655_v2  ;;  %v8675_v2 = vld [vmem:[#allocation7 + $0x98] sm:$0xff]  }
 0x4c6   : > { %7612 = vmatprep.subr.bf16.mxu0 %v9080_v0 }
 0x4c7   : > { %7599 = vmatpush3.bf16.msra.mxu1 %v8662_v11 }
 0x4c8   : > { %7589 = vmatmul.mubr.msk.bf16.vlgmr.msra.gmra.mrb[20].mxu0 %vm2015_vm5, %v2173_v3  ;;  %7600 = vmatprep.subr.bf16.mxu1 %v9080_v0  ;;  %v8676_v3 = vld [vmem:[#allocation7 + $0xa0] sm:$0xff]  }
 0x4c9   : > { %7628 = vmatprep.mubr.msk.bf16.mxu0 %vm9081_vm0, %v9080_v0  ;;  %7613 = vmatpush3.bf16.msra.mxu0 %v8657_v9 }
 0x4ca   : > { %7614 = vmatprep.subr.bf16.mxu0 %v9080_v0 }
 0x4cb   : > { %7601 = vmatpush3.bf16.msra.mxu1 %v8664_v13  ;;  %v2594_v13 = vand.u32 15, %v9671_v27 }
 0x4cc   : > { %7602 = vmatprep.subr.bf16.mxu1 %v9080_v0 }
 0x4cd   : > { %7615 = vmatpush3.bf16.msra.mxu0 %v8659_v10  ;;  %v2642_v10 = vshra.s32 %v9665_v24, 4 }
 0x4ce   : > { %7616 = vmatprep.subr.bf16.mxu0 %v9080_v0 }
 0x4cf   : > { %7603 = vmatpush3.bf16.msra.mxu1 %v8666_v17  ;;  %v10141_v11 = vmul.u32 2, %v2642_v10  ;;  %v2626_v17 = vshra.s32 %v9667_v25, 4 }
 0x4d0   : > { %7604 = vmatprep.subr.bf16.mxu1 %v9080_v0 }
 0x4d1   : > { %7617 = vmatpush3.bf16.msra.mxu0 %v8661_v12  ;;  %v2593_v12 = vand.u32 15, %v9667_v25  ;;  %vm2644_vm6 = vcmp.eq.s32.totalorder %v2626_v17, %v10141_v11 }
 0x4d2   : > { %7618 = vmatprep.subr.bf16.mxu0 %v9080_v0 }
 0x4d3   : > { %7605 = vmatpush3.bf16.msra.mxu1 %v8668_v19  ;;  %v2627_v19 = vshra.s32 %v9671_v27, 4 }
 0x4d4   : > { %7606 = vmatprep.subr.bf16.mxu1 %v9080_v0 }
 0x4d5   : > { %7619 = vmatpush3.bf16.msra.mxu0 %v8663_v16  ;;  %v10146_v16 = vand.u32 15, %v9665_v24  ;;  %vm2645_vm9 = vcmp.eq.s32.totalorder %v2627_v19, %v10141_v11 }
 0x4d6   : > { %7620 = vmatprep.subr.bf16.mxu0 %v9080_v0 }
 0x4d7   : > { %7607 = vmatpush3.bf16.msra.mxu1 %v8670_v21  ;;  %vm10154_vm3 = vcmp.eq.s32.totalorder %v2593_v12, %v10146_v16  ;;  %vm10159_vm15 = vcmp.eq.s32.totalorder %v2594_v13, %v10146_v16  ;;  %v2603_v12 = vand.u32 15, %v9874_v14  ;;  %v2636_v13 = vshra.s32 %v9874_v14, 4 }
 0x4d8   : > { %7632 = vmatprep.subr.bf16.mxu1 %v9080_v0  ;;  %vm2660_vm7 = vmand %vm10154_vm3, %vm2644_vm6  ;;  %v2637_v21 = vshra.s32 %v9877_v15, 4 }
 0x4d9   : > { %7621 = vmatpush3.bf16.msra.mxu0 %v8665_v20  ;;  %v10151_v20 = vadd.s32 1, %v10141_v11  ;;  %vm2661_vm10 = vmand %vm10159_vm15, %vm2645_vm9 }
 0x4da   : > { %7622 = vmatprep.subr.bf16.mxu0 %v9080_v0  ;;  %vm8347_vm13 = vmpackc.low %vm2661_vm10, %vm2660_vm7 }
 0x4db   : > { %vm10168_vm8 = vcmp.eq.s32.totalorder %v2626_v17, %v10151_v20  ;;  %vm10173_vm11 = vcmp.eq.s32.totalorder %v2627_v19, %v10151_v20  ;;  %v2604_v19 = vand.u32 15, %v9877_v15 }
 0x4dc   : > { %vm2709_vm12 = vmand %vm10154_vm3, %vm10168_vm8 }
 0x4dd   : > { %7623 = vmatpush3.bf16.msra.mxu0 %v8667_v22  ;;  %vm2710_vm4 = vmand %vm10159_vm15, %vm10173_vm11  ;;  %v8682_v22 = vld [vmem:[#allocation9 + $0x28] sm:$0xff]  }
 0x4de   : > { %7624 = vmatprep.subr.bf16.mxu0 %v9080_v0  ;;  %vm8371_vm9 = vmpackc.low %vm2710_vm4, %vm2709_vm12 }
 0x4e1   : > { %7625 = vmatpush3.bf16.msra.mxu0 %v8669_v23  ;;  %v8683_v23 = vld [vmem:[#allocation9 + $0x8] sm:$0xff]  }
 0x4e2   : > { %7626 = vmatprep.subr.bf16.mxu0 %v9080_v0 }
 0x4e5   : > { %7627 = vmatpush3.bf16.msra.mxu0 %v8671_v30  ;;  %v8684_v30 = vld [vmem:[#allocation9 + $0x30] sm:$0xff]  }
 0x4e6   : > { %8346 = vmatprep.subr.bf16.mxu0 %v9083_v18 }
 0x58b   : > { %v2099_v32 = vpop.f32.mrb[16].mxu0 }
 0x58c   : > { %v2166_v33 = vpop.f32.mrb[20].mxu1  ;;  %v7566_v40 = vpop.f32.mrb[17].mxu0 }
 0x58d   : > { %v2167_v35 = vadd.f32 %v2166_v33, %v2099_v32  ;;  %v7578_v41 = vpop.f32.mrb[21].mxu1  ;;  %v2102_v44 = vpop.f32.mrb[18].mxu0  ;;  %v2595_v32 = vand.u32 15, %v9697_v37  ;;  %v2596_v33 = vand.u32 15, %v9708_v39  ;;  %v2629_v40 = vshra.s32 %v9708_v39, 4 }
 0x58e   : > { %v2169_v46 = vpop.f32.mrb[22].mxu1  ;;  %v7567_v47 = vpop.f32.mrb[19].mxu0  ;;  %v2639_v41 = vshra.s32 %v9925_v29, 4 }
 0x58f   : > { %v7579_v49 = vpop.f32.mrb[23].mxu1  ;;  %vm10189_vm14 = vcmp.eq.s32.totalorder %v2595_v32, %v10146_v16  ;;  %vm10204_vm6 = vcmp.eq.s32.totalorder %v2596_v33, %v10146_v16  ;;  %vm2647_vm3 = vcmp.eq.s32.totalorder %v2629_v40, %v10141_v11  ;;  %v2597_v47 = vand.u32 15, %v9737_v48 }
 0x590   : > { %v2630_v49 = vshra.s32 %v9737_v48, 4  ;;  %vm2663_vm8 = vmand %vm10204_vm6, %vm2647_vm3  ;;  %vm2696_vm11 = vcmp.eq.s32.totalorder %v2629_v40, %v10151_v20  ;;  %v2605_v32 = vand.u32 15, %v9922_v26  ;;  %v2638_v33 = vshra.s32 %v9922_v26, 4 }
 0x591   : > { %vm10233_vm12 = vcmp.eq.s32.totalorder %v2597_v47, %v10146_v16  ;;  %vm2712_vm4 = vmand %vm10204_vm6, %vm2696_vm11  ;;  %v2606_v40 = vand.u32 15, %v9925_v29 }
 0x59b   : > { %v2244_v50 = vpop.f32.mrb[20].mxu0 }
 0x59c   : > { %v2250_v53 = vadd.f32 %v2244_v50, %v2167_v35  ;;  %v7590_v54 = vpop.f32.mrb[21].mxu0  ;;  %v2628_v35 = vshra.s32 %v9697_v37, 4  ;;  %v2640_v50 = vshra.s32 %v9970_v42, 4 }
 0x59d   : > { %v2247_v55 = vpop.f32.mrb[22].mxu0  ;;  %v2641_v54 = vshra.s32 %v9973_v43, 4 }
 0x59e   : > { %v2258_v56 = vadd.f32 %v6522_v52, %v2250_v53  ;;  %v7591_v28 = vpop.f32.mrb[23].mxu0  ;;  %vm10194_vm2 = vcmp.eq.s32.totalorder %v2628_v35, %v10141_v11  ;;  %vm10217_vm7 = vcmp.eq.s32.totalorder %v2628_v35, %v10151_v20  ;;  %v2598_v52 = vand.u32 15, %v9755_v51  ;;  %v8687_v35 = vld [vmem:[#allocation9 + $0x18] sm:$0xff]  }
 0x59f   : > { %vm2662_vm15 = vmand %vm10189_vm14, %vm10194_vm2  ;;  %v2631_v53 = vshra.s32 %v9755_v51, 4  ;;  %vm10238_vm2 = vcmp.eq.s32.totalorder %v2630_v49, %v10141_v11  ;;  %v2599_v28 = vand.u32 15, %v9778_v57 }
 0x5a0   : > { %v2259_v31 = vmax.f32 %v2258_v56, 0.0  ;;  %vm8350_vm10 = vmpackc.low %vm2663_vm8, %vm2662_vm15  ;;  %vm10246_vm3 = vcmp.eq.s32.totalorder %v2598_v52, %v10146_v16  ;;  %vm10259_vm15 = vcmp.eq.s32.totalorder %v2630_v49, %v10151_v20  ;;  %v2607_v49 = vand.u32 15, %v9970_v42  ;;  %v8689_v56 = vld [vmem:[#allocation9 + $0x48] sm:$0xff]  }
 0x5a1   : > { %vm2664_vm6 = vmand %vm10233_vm12, %vm10238_vm2  ;;  %vm2698_vm8 = vcmp.eq.s32.totalorder %v2631_v53, %v10151_v20 }
 0x5a2   : > { %2262 = vst [vmem:[#allocation3 + $0x1] sm:$0xff] %v2259_v31  ;;  %v2282_v59 = vpack.c.bf16 %v2259_v31, %v2259_v31  ;;  %v2632_v31 = vshra.s32 %v9778_v57, 4 }
 0x5a4   : > { %7609 = vmatmul.mubr.bf16.vlgmr.msra.gmra.mrb[24].mxu1 %v2282_v59  ;;  %v2600_v59 = vand.u32 15, %v9781_v58  ;;  %vm10280_vm2 = vcmp.eq.s32.totalorder %v2632_v31, %v10141_v11 }
 0x5a5   : > { %7633 = vmatpush3.bf16.msra.mxu1 %v8672_v34  ;;  %7648 = vmatprep.mubr.msk.bf16.mxu1 %vm9081_vm0, %v9080_v0 }
 0x5a6   : > { %7634 = vmatprep.subr.bf16.mxu1 %v9080_v0 }
 0x5a9   : > { %v2263_v61 = vld [vmem:[#allocation3] sm:$0xff]  ;;  %7635 = vmatpush3.bf16.msra.mxu1 %v8673_v60  ;;  %v2633_v60 = vshra.s32 %v9781_v58, 4 }
 0x5aa   : > { %v2476_v63 = vld [vmem:[#allocation3 + $0x2] sm:$0xff]  ;;  %v2264_v1 = vpack.c.bf16 %v2263_v61, %v2263_v61  ;;  %3275 = vst [vmem:[#allocation3] sm:$0x1] %v9080_v0  ;;  %7636 = vmatprep.subr.bf16.mxu1 %v9080_v0 }
 0x5ab   : > { %3276 = vst [vmem:[#allocation3 + $0x5] sm:$0x1] %v9080_v0  ;;  %v2477_v9 = vpack.c.bf16 %v2476_v63, %v2476_v63  ;;  %v6547_v63 = vld [vmem:[%s11924_s8] ss:$0 sm:$0xff]  ;;  %s6928_s8 = sshll.u32 %s9236_s7, 4  ;;  %s9084_s7 = smov [#allocation15]  }
 0x5ac   : > { %7629 = vmatmul.mubr.bf16.vlgmr.msra.gmra.mrb[24].mxu0 %v2264_v1  ;;  %v2601_v1 = vand.u32 15, %v9826_v4  ;;  %s8996_s2 = sshll.u32 %s9084_s7, 4  ;;  %s8997_s2 = int_to_ptr.vmem [resolvable:$false] %s8996_s2 }
 0x5ad   : > { %7637 = vmatpush3.bf16.msra.mxu1 %v8674_v62  ;;  %7684 = vmatprep.mubr.msk.f32.mxu0 %vm9081_vm0, %v9080_v0  ;;  %s8998_s27 = scalar_lea.vmem %s8997_s2, 32  ;;  %p8999_p5 = scmp.lt.s32.totalorder %s11667_s24, %s8997_s2 }
 0x5ae   : > { %7638 = vmatprep.subr.bf16.mxu1 %v9080_v0  ;;  %8348 = vmatpush3.bf16.msk.msra.mxu0 %vm8347_vm13, %v9082_v45  ;;  %vm2711_vm13 = vmand %vm10189_vm14, %vm10217_vm7  ;;  %vm2649_vm14 = vcmp.eq.s32.totalorder %v2631_v53, %v10141_v11  ;;  %v2608_v53 = vand.u32 15, %v9973_v43 }
 0x5af   : > { %8349 = vmatprep.subr.bf16.mxu0 %v9083_v18  ;;  %vm2665_vm7 = vmand %vm10246_vm3, %vm2649_vm14  ;;  %vm10288_vm14 = vcmp.eq.s32.totalorder %v2600_v59, %v10146_v16 }
 0x5b0   : > { %vm8353_vm11 = vmpackc.low %vm2665_vm7, %vm2664_vm6  ;;  %vm10301_vm6 = vcmp.eq.s32.totalorder %v2632_v31, %v10151_v20  ;;  %vm2700_vm7 = vcmp.eq.s32.totalorder %v2633_v60, %v10151_v20 }
 0x5b1   : > { %7639 = vmatpush3.bf16.msra.mxu1 %v8675_v2  ;;  %v2634_v2 = vshra.s32 %v9826_v4, 4 }
 0x5b2   : > { %7640 = vmatprep.subr.bf16.mxu1 %v9080_v0  ;;  %8351 = vmatpush3.bf16.msk.msra.mxu0 %vm8350_vm10, %v9082_v45  ;;  %vm2713_vm10 = vmand %vm10233_vm12, %vm10259_vm15  ;;  %vm2651_vm12 = vcmp.eq.s32.totalorder %v2633_v60, %v10141_v11 }
 0x5b3   : > { %8352 = vmatprep.subr.bf16.mxu0 %v9083_v18  ;;  %vm2667_vm15 = vmand %vm10288_vm14, %vm2651_vm12 }
 0x5b5   : > { %7641 = vmatpush3.bf16.msra.mxu1 %v8676_v3 }
 0x5b6   : > { %7642 = vmatprep.subr.bf16.mxu1 %v9080_v0  ;;  %8354 = vmatpush3.bf16.msk.msra.mxu0 %vm8353_vm11, %v9082_v45 }
 0x5b7   : > { %8355 = vmatprep.subr.bf16.mxu0 %v9083_v18 }
 0x5b9   : > { %7643 = vmatpush3.bf16.msra.mxu1 %v8677_v6  ;;  %v2602_v6 = vand.u32 15, %v9829_v5 }
 0x5ba   : > { %7644 = vmatprep.subr.bf16.mxu1 %v9080_v0 }
 0x5bb   : > { %vm10330_vm12 = vcmp.eq.s32.totalorder %v2602_v6, %v10146_v16 }
 0x5bd   : > { %7645 = vmatpush3.bf16.msra.mxu1 %v8678_v7  ;;  %v2635_v7 = vshra.s32 %v9829_v5, 4 }
 0x5be   : > { %7646 = vmatprep.subr.bf16.mxu1 %v9080_v0 }
 0x5c1   : > { %7647 = vmatpush3.bf16.msra.mxu1 %v8679_v8 }
 0x5c2   : > { %8370 = vmatprep.subr.bf16.mxu1 %v9083_v18 }
 0x5c4   : > { %7649 = vmatmul.mubr.bf16.vlgmr.msra.gmra.mrb[28].mxu1 %v2477_v9 }
 0x5c5   : > { %7719 = vmatprep.mubr.msk.f32.mxu1 %vm9081_vm0, %v9080_v0  ;;  %8372 = vmatpush3.bf16.msk.msra.mxu1 %vm8371_vm9, %v9082_v45  ;;  %vm8374_vm9 = vmpackc.low %vm2712_vm4, %vm2711_vm13  ;;  %vm10275_vm13 = vcmp.eq.s32.totalorder %v2599_v28, %v10146_v16 }
 0x5c6   : > { %8373 = vmatprep.subr.bf16.mxu1 %v9083_v18  ;;  %vm2714_vm4 = vmand %vm10246_vm3, %vm2698_vm8 }
 0x5c7   : > { %vm2666_vm3 = vmand %vm10275_vm13, %vm10280_vm2  ;;  %vm10322_vm2 = vcmp.eq.s32.totalorder %v2634_v2, %v10141_v11 }
 0x5c8   : > { %vm8356_vm8 = vmpackc.low %vm2667_vm15, %vm2666_vm3  ;;  %vm10343_vm3 = vcmp.eq.s32.totalorder %v2634_v2, %v10151_v20  ;;  %vm2702_vm15 = vcmp.eq.s32.totalorder %v2635_v7, %v10151_v20 }
 0x5c9   : > { %8375 = vmatpush3.bf16.msk.msra.mxu1 %vm8374_vm9, %v9082_v45  ;;  %vm8377_vm9 = vmpackc.low %vm2714_vm4, %vm2713_vm10  ;;  %8357 = vmatpush3.bf16.msk.msra.mxu0 %vm8356_vm8, %v9082_v45  ;;  %vm10317_vm10 = vcmp.eq.s32.totalorder %v2601_v1, %v10146_v16 }
 0x5ca   : > { %8376 = vmatprep.subr.bf16.mxu1 %v9083_v18  ;;  %vm2715_vm11 = vmand %vm10275_vm13, %vm10301_vm6  ;;  %8358 = vmatprep.subr.bf16.mxu0 %v9083_v18  ;;  %vm2653_vm13 = vcmp.eq.s32.totalorder %v2635_v7, %v10141_v11 }
 0x5cb   : > { %vm2716_vm4 = vmand %vm10288_vm14, %vm2700_vm7 }
 0x5cc   : > { %vm2668_vm14 = vmand %vm10317_vm10, %vm10322_vm2  ;;  %vm10364_vm2 = vcmp.eq.s32.totalorder %v2636_v13, %v10141_v11 }
 0x5cd   : > { %8378 = vmatpush3.bf16.msk.msra.mxu1 %vm8377_vm9, %v9082_v45  ;;  %vm8380_vm9 = vmpackc.low %vm2716_vm4, %vm2715_vm11  ;;  %vm10359_vm11 = vcmp.eq.s32.totalorder %v2603_v12, %v10146_v16 }
 0x5ce   : > { %8379 = vmatprep.subr.bf16.mxu1 %v9083_v18  ;;  %vm2669_vm6 = vmand %vm10330_vm12, %vm2653_vm13  ;;  %vm10372_vm13 = vcmp.eq.s32.totalorder %v2604_v19, %v10146_v16  ;;  %v8680_v19 = vld [vmem:[#allocation9 + $0x20] sm:$0xff]  }
 0x5cf   : > { %vm8359_vm7 = vmpackc.low %vm2669_vm6, %vm2668_vm14  ;;  %vm10385_vm14 = vcmp.eq.s32.totalorder %v2636_v13, %v10151_v20  ;;  %vm2704_vm6 = vcmp.eq.s32.totalorder %v2637_v21, %v10151_v20 }
 0x5d0   : > { %8360 = vmatpush3.bf16.msk.msra.mxu0 %vm8359_vm7, %v9082_v45  ;;  %vm2717_vm8 = vmand %vm10317_vm10, %vm10343_vm3  ;;  %vm2655_vm10 = vcmp.eq.s32.totalorder %v2637_v21, %v10141_v11  ;;  %v8681_v21 = vld [vmem:[#allocation9] sm:$0xff]  }
 0x5d1   : > { %8381 = vmatpush3.bf16.msk.msra.mxu1 %vm8380_vm9, %v9082_v45  ;;  %vm2718_vm4 = vmand %vm10330_vm12, %vm2702_vm15  ;;  %8361 = vmatprep.subr.bf16.mxu0 %v9083_v18 }
 0x5d2   : > { %8382 = vmatprep.subr.bf16.mxu1 %v9083_v18  ;;  %vm8383_vm9 = vmpackc.low %vm2718_vm4, %vm2717_vm8  ;;  %vm10401_vm8 = vcmp.eq.s32.totalorder %v2605_v32, %v10146_v16  ;;  %v8685_v32 = vld [vmem:[#allocation9 + $0x10] sm:$0xff]  }
 0x5d3   : > { %vm2670_vm12 = vmand %vm10359_vm11, %vm10364_vm2  ;;  %vm10406_vm2 = vcmp.eq.s32.totalorder %v2638_v33, %v10141_v11 }
 0x5d4   : > { %vm2671_vm3 = vmand %vm10372_vm13, %vm2655_vm10  ;;  %vm10414_vm10 = vcmp.eq.s32.totalorder %v2606_v40, %v10146_v16 }
 0x5d5   : > { %8384 = vmatpush3.bf16.msk.msra.mxu1 %vm8383_vm9, %v9082_v45  ;;  %vm8362_vm15 = vmpackc.low %vm2671_vm3, %vm2670_vm12  ;;  %vm10427_vm12 = vcmp.eq.s32.totalorder %v2638_v33, %v10151_v20  ;;  %vm2706_vm3 = vcmp.eq.s32.totalorder %v2639_v41, %v10151_v20  ;;  %v8686_v33 = vld [vmem:[#allocation9 + $0x38] sm:$0xff]  }
 0x5d6   : > { %8385 = vmatprep.subr.bf16.mxu1 %v9083_v18  ;;  %8363 = vmatpush3.bf16.msk.msra.mxu0 %vm8362_vm15, %v9082_v45  ;;  %vm2719_vm7 = vmand %vm10359_vm11, %vm10385_vm14  ;;  %vm2657_vm11 = vcmp.eq.s32.totalorder %v2639_v41, %v10141_v11 }
 0x5d7   : > { %vm2720_vm4 = vmand %vm10372_vm13, %vm2704_vm6  ;;  %8364 = vmatprep.subr.bf16.mxu0 %v9083_v18 }
 0x5d8   : > { %vm8386_vm9 = vmpackc.low %vm2720_vm4, %vm2719_vm7  ;;  %vm10443_vm7 = vcmp.eq.s32.totalorder %v2607_v49, %v10146_v16  ;;  %v8688_v49 = vld [vmem:[#allocation9 + $0x40] sm:$0xff]  }
 0x5d9   : > { %8387 = vmatpush3.bf16.msk.msra.mxu1 %vm8386_vm9, %v9082_v45  ;;  %vm2672_vm13 = vmand %vm10401_vm8, %vm10406_vm2  ;;  %vm2658_vm2 = vcmp.eq.s32.totalorder %v2640_v50, %v10141_v11  ;;  %vm2659_vm9 = vcmp.eq.s32.totalorder %v2641_v54, %v10141_v11 }
 0x5da   : > { %8388 = vmatprep.subr.bf16.mxu1 %v9083_v18  ;;  %vm2673_vm14 = vmand %vm10414_vm10, %vm2657_vm11  ;;  %vm10452_vm11 = vcmp.eq.s32.totalorder %v2608_v53, %v10146_v16 }
 0x5db   : > { %vm8365_vm6 = vmpackc.low %vm2673_vm14, %vm2672_vm13  ;;  %vm2708_vm14 = vcmp.eq.s32.totalorder %v2641_v54, %v10151_v20 }
 0x5dc   : > { %8366 = vmatpush3.bf16.msk.msra.mxu0 %vm8365_vm6, %v9082_v45  ;;  %vm2721_vm15 = vmand %vm10401_vm8, %vm10427_vm12  ;;  %vm2707_vm12 = vcmp.eq.s32.totalorder %v2640_v50, %v10151_v20 }
 0x5dd   : > { %vm2722_vm4 = vmand %vm10414_vm10, %vm2706_vm3  ;;  %8367 = vmatprep.subr.bf16.mxu0 %v9083_v18 }
 0x5de   : > { %vm8389_vm8 = vmpackc.low %vm2722_vm4, %vm2721_vm15  ;;  %vm3030_vm4 = vcmask 519168  }
 0x5df   : > { %8390 = vmatpush3.bf16.msk.msra.mxu1 %vm8389_vm8, %v9082_v45  ;;  %vm2674_vm13 = vmand %vm10443_vm7, %vm2658_vm2 }
 0x5e0   : > { %8391 = vmatprep.subr.bf16.mxu1 %v9083_v18  ;;  %vm2675_vm10 = vmand %vm10452_vm11, %vm2659_vm9 }
 0x5e1   : > { %vm8368_vm3 = vmpackc.low %vm2675_vm10, %vm2674_vm13 }
 0x5e2   : > { %8369 = vmatpush3.bf16.msk.msra.mxu0 %vm8368_vm3, %v9082_v45  ;;  %vm2723_vm6 = vmand %vm10443_vm7, %vm2707_vm12  ;;  %vm2882_vm7 = vcmask 64512  }
 0x5e3   : > { %vm2724_vm15 = vmand %vm10452_vm11, %vm2708_vm14  ;;  %7722 = vmatprep.subr.mxu0 %v9080_v0 }
 0x5e4   : > { %vm8392_vm2 = vmpackc.low %vm2724_vm15, %vm2723_vm6 }
 0x5e5   : > { %8393 = vmatpush3.bf16.msk.msra.mxu1 %vm8392_vm2, %v9082_v45 }
 0x5e6   : > { %7744 = vmatprep.subr.bf16.mxu1 %v9080_v0 }
 0x677   : > { %v2382_v11 = vpop.f32.mrb[24].mxu1 }
 0x678   : > { %v7610_v16 = vpop.f32.mrb[25].mxu1 }
 0x679   : > { %v2385_v28 = vpop.f32.mrb[26].mxu1  ;;  %v8691_v16 = vld [vmem:[#allocation9 + $0x58] sm:$0xff]  }
 0x67a   : > { %v7611_v20 = vpop.f32.mrb[27].mxu1 }
 0x67b   : > { %v8692_v20 = vld [vmem:[#allocation10 + $0x40] sm:$0xff]  }
 0x67f   : > { %v2470_v31 = vpop.f32.mrb[24].mxu0 }
 0x680   : > { %v2471_v34 = vadd.f32 %v2470_v31, %v2382_v11  ;;  %v7630_v59 = vpop.f32.mrb[25].mxu0  ;;  %v8690_v11 = vld [vmem:[#allocation9 + $0x50] sm:$0xff]   ;;  %v8693_v31 = vld [vmem:[#allocation10] sm:$0xff]  }
 0x681   : > { %v2473_v60 = vpop.f32.mrb[26].mxu0  ;;  %v8695_v59 = vld [vmem:[#allocation10 + $0x8] sm:$0xff]  }
 0x682   : > { %v7631_v61 = vpop.f32.mrb[27].mxu0  ;;  %v8696_v60 = vld [vmem:[#allocation10 + $0x50] sm:$0xff]  }
 0x683   : > { %v8697_v61 = vld [vmem:[#allocation10 + $0x10] sm:$0xff]  }
 0x697   : > { %v2577_v62 = vpop.f32.mrb[28].mxu1 }
 0x698   : > { %v2583_v1 = vadd.f32 %v2577_v62, %v2471_v34  ;;  %v7650_v2 = vpop.f32.mrb[29].mxu1  ;;  %v8694_v34 = vld [vmem:[#allocation10 + $0x48] sm:$0xff]   ;;  %v8698_v62 = vld [vmem:[#allocation10 + $0x58] sm:$0xff]  }
 0x699   : > { %v2580_v3 = vpop.f32.mrb[30].mxu1  ;;  %v8701_v2 = vld [vmem:[#allocation10 + $0x20] sm:$0xff]  }
 0x69a   : > { %v2591_v6 = vadd.f32 %v6547_v63, %v2583_v1  ;;  %v7651_v7 = vpop.f32.mrb[31].mxu1  ;;  %v8699_v63 = vld [vmem:[#allocation10 + $0x18] sm:$0xff]   ;;  %v8700_v1 = vld [vmem:[#allocation10 + $0x60] sm:$0xff]   ;;  %v8702_v3 = vld [vmem:[#allocation10 + $0x68] sm:$0xff]  }
 0x69b   : > { %v8704_v7 = vld [vmem:[#allocation10 + $0x70] sm:$0xff]  }
 0x69c   : > { %v2592_v8 = vmax.f32 %v2591_v6, 0.0  ;;  %v8703_v6 = vld [vmem:[#allocation10 + $0x28] sm:$0xff]  }
 0x69e   : > { %7685 = vmatmul.mubr.f32.vlgmr.msra.gmra.mrb[14].mxu0 %v2592_v8  ;;  %7720 = vmatmul.mubr.f32.vlgmr.msra.gmra.mrb[18].mxu1 %v2592_v8  ;;  %v8705_v8 = vld [vmem:[#allocation10 + $0x30] sm:$0xff]  }
 0x69f   : > { %7724 = vmatprep.mubr.msk.f32.mxu0 %vm9081_vm0, %v9080_v0  ;;  %7752 = vmatprep.mubr.msk.bf16.mxu1 %vm9081_vm0, %v9080_v0 }
 0x6a0   : > { %7745 = vmatpush3.bf16.msra.mxu1 %v8681_v21 }
 0x6a1   : > { %7746 = vmatprep.subr.bf16.mxu1 %v9080_v0 }
 0x6a4   : > { %7747 = vmatpush3.bf16.msra.mxu1 %v8683_v23 }
 0x6a5   : > { %7748 = vmatprep.subr.bf16.mxu1 %v9080_v0 }
 0x6a8   : > { %7749 = vmatpush3.bf16.msra.mxu1 %v8685_v32 }
 0x6a9   : > { %7750 = vmatprep.subr.bf16.mxu1 %v9080_v0 }
 0x6ac   : > { %7751 = vmatpush3.bf16.msra.mxu1 %v8687_v35  ;;  %v6597_v35 = vld [vmem:[%s11718_s10] ss:$0 sm:$0xff] }
 0x6ad   : > { %7768 = vmatprep.subr.bf16.mxu1 %v9080_v0 }
 0x771   : > { %v2807_v9 = vpop.f32.mrb[14].mxu0  ;;  %v2877_v10 = vpop.f32.mrb[18].mxu1 }
 0x772   : > { %v2881_v12 = vmax.f32 %v2807_v9, %v2877_v10  ;;  %v7686_v13 = vpop.f32.mrb[15].mxu0  ;;  %v7721_v17 = vpop.f32.mrb[19].mxu1  ;;  %v8706_v9 = vld [vmem:[#allocation10 + $0x78] sm:$0xff]  }
 0x773   : > { %v8707_v10 = vld [vmem:[#allocation10 + $0x38] sm:$0xff]  }
 0x774   : > { %7723 = vmatpush3.msra.mxu0 %v2881_v12 }
 0x775   : > { %7725 = vmatmul.mubr.msk.f32.vlgmr.msra.gmra.mrb[28].mxu0 %vm2882_vm7, %v10065_v36  ;;  %7727 = vmatprep.subr.mxu0 %v9080_v0 }
 0x776   : > { %7728 = vmatpush3.msra.mxu0 %v2881_v12  ;;  %7729 = vmatprep.mubr.msk.f32.mxu0 %vm9081_vm0, %v9080_v0 }
 0x777   : > { %7732 = vmatprep.subr.bf16.mxu0 %v9080_v0 }
 0x779   : > { %7730 = vmatmul.mubr.msk.f32.vlgmr.msra.gmra.mrb[30].mxu0 %vm2882_vm7, %v10073_v38 }
 0x77a   : > { %7740 = vmatprep.mubr.msk.bf16.mxu0 %vm9081_vm0, %v9080_v0  ;;  %7733 = vmatpush3.bf16.msra.mxu0 %v8680_v19 }
 0x77b   : > { %7734 = vmatprep.subr.bf16.mxu0 %v9080_v0 }
 0x77e   : > { %7735 = vmatpush3.bf16.msra.mxu0 %v8682_v22 }
 0x77f   : > { %7736 = vmatprep.subr.bf16.mxu0 %v9080_v0 }
 0x782   : > { %7737 = vmatpush3.bf16.msra.mxu0 %v8684_v30 }
 0x783   : > { %7738 = vmatprep.subr.bf16.mxu0 %v9080_v0 }
 0x786   : > { %7739 = vmatpush3.bf16.msra.mxu0 %v8686_v33 }
 0x787   : > { %7756 = vmatprep.subr.bf16.mxu0 %v9080_v0 }
 0x848   : > { %v2951_v40 = vpop.f32.mrb[28].mxu0 }
 0x849   : > { %v7726_v41 = vpop.f32.mrb[29].mxu0 }
 0x84c   : > { %v3023_v44 = vpop.f32.mrb[30].mxu0 }
 0x84d   : > { %v3027_v46 = vmax.f32 %v2951_v40, %v3023_v44  ;;  %v7731_v47 = vpop.f32.mrb[31].mxu0 }
 0x84f   : > { %3031 = vst.msk [vmem:[#allocation2 + $0x1] sm:$0xf] %vm3030_vm4, %v3027_v46 }
 0x856   : > { %v3042_v50 = vld [vmem:[#allocation2 + $0x1] sm:$0xf] }
 0x857   : > { %v3032_v52 = vld [vmem:[#allocation2] sm:$0xf]  ;;  %v3043_v54 = vpack.c.bf16 %v3042_v50, %v3042_v50  ;;  %v8708_v50 = vld [vmem:[#allocation10 + $0x80] sm:$0xff]  }
 0x858   : > { %v3187_v53 = vld [vmem:[#allocation2 + $0x2] sm:$0xf]  ;;  %v3033_v55 = vpack.c.bf16 %v3032_v52, %v3032_v52  ;;  %3608 = vst [vmem:[#allocation2] sm:$0x1] %v9080_v0 }
 0x859   : > { %3609 = vst [vmem:[#allocation2 + $0x5] sm:$0x1] %v9080_v0  ;;  %7741 = vmatmul.mubr.msk.bf16.vlgmr.msra.gmra.mrb[32].mxu0 %vm2015_vm5, %v3043_v54  ;;  %v3188_v28 = vpack.c.bf16 %v3187_v53, %v3187_v53 }
 0x85a   : > { %7753 = vmatmul.mubr.msk.bf16.vlgmr.msra.gmra.mrb[32].mxu1 %vm2015_vm5, %v3033_v55  ;;  %7757 = vmatpush3.bf16.msra.mxu0 %v8688_v49 }
 0x85b   : > { %7764 = vmatprep.mubr.msk.bf16.mxu0 %vm9081_vm0, %v9080_v0  ;;  %7758 = vmatprep.subr.bf16.mxu0 %v9080_v0 }
 0x85c   : > { %7784 = vmatprep.mubr.msk.bf16.mxu1 %vm9081_vm0, %v9080_v0  ;;  %7769 = vmatpush3.bf16.msra.mxu1 %v8692_v20  ;;  %v8712_v20 = vld [vmem:[#allocation10 + $0xa0] sm:$0xff]  }
 0x85d   : > { %7770 = vmatprep.subr.bf16.mxu1 %v9080_v0 }
 0x85e   : > { %7759 = vmatpush3.bf16.msra.mxu0 %v8689_v56 }
 0x85f   : > { %7760 = vmatprep.subr.bf16.mxu0 %v9080_v0 }
 0x860   : > { %7771 = vmatpush3.bf16.msra.mxu1 %v8694_v34  ;;  %v8714_v34 = vld [vmem:[#allocation10 + $0xb0] sm:$0xff]  }
 0x861   : > { %7772 = vmatprep.subr.bf16.mxu1 %v9080_v0 }
 0x862   : > { %7761 = vmatpush3.bf16.msra.mxu0 %v8690_v11  ;;  %v8709_v11 = vld [vmem:[#allocation10 + $0x88] sm:$0xff]  }
 0x863   : > { %7762 = vmatprep.subr.bf16.mxu0 %v9080_v0 }
 0x864   : > { %7773 = vmatpush3.bf16.msra.mxu1 %v8696_v60 }
 0x865   : > { %7774 = vmatprep.subr.bf16.mxu1 %v9080_v0 }
 0x866   : > { %7763 = vmatpush3.bf16.msra.mxu0 %v8691_v16  ;;  %v8710_v16 = vld [vmem:[#allocation10 + $0x90] sm:$0xff]  }
 0x867   : > { %7788 = vmatprep.subr.bf16.mxu0 %v9080_v0 }
 0x868   : > { %7775 = vmatpush3.bf16.msra.mxu1 %v8698_v62  ;;  %v8717_v62 = vld [vmem:[%s11721_s13] sm:$0xff]  }
 0x869   : > { %7765 = vmatmul.mubr.msk.bf16.vlgmr.msra.gmra.mrb[36].mxu0 %vm2015_vm5, %v3188_v28  ;;  %7776 = vmatprep.subr.bf16.mxu1 %v9080_v0  ;;  %v8711_v28 = vld [vmem:[#allocation10 + $0x98] sm:$0xff]  }
 0x86a   : > { %7804 = vmatprep.mubr.msk.bf16.mxu0 %vm9081_vm0, %v9080_v0  ;;  %7789 = vmatpush3.bf16.msra.mxu0 %v8693_v31  ;;  %v8713_v31 = vld [vmem:[#allocation10 + $0xa8] sm:$0xff]  }
 0x86b   : > { %7790 = vmatprep.subr.bf16.mxu0 %v9080_v0 }
 0x86c   : > { %7777 = vmatpush3.bf16.msra.mxu1 %v8700_v1  ;;  %v8719_v1 = vld [vmem:[%s11721_s13 + $0x8] sm:$0xff]  }
 0x86d   : > { %7778 = vmatprep.subr.bf16.mxu1 %v9080_v0 }
 0x86e   : > { %7791 = vmatpush3.bf16.msra.mxu0 %v8695_v59  ;;  %v8715_v59 = vld [vmem:[#allocation10 + $0xb8] sm:$0xff]  }
 0x86f   : > { %7792 = vmatprep.subr.bf16.mxu0 %v9080_v0 }
 0x870   : > { %7779 = vmatpush3.bf16.msra.mxu1 %v8702_v3  ;;  %v8721_v3 = vld [vmem:[%s11721_s13 + $0x10] sm:$0xff]  }
 0x871   : > { %7780 = vmatprep.subr.bf16.mxu1 %v9080_v0 }
 0x872   : > { %7793 = vmatpush3.bf16.msra.mxu0 %v8697_v61  ;;  %v8716_v61 = vld [vmem:[%s11721_s13 + $0x40] sm:$0xff]  }
 0x873   : > { %7794 = vmatprep.subr.bf16.mxu0 %v9080_v0 }
 0x874   : > { %7781 = vmatpush3.bf16.msra.mxu1 %v8704_v7  ;;  %v8723_v7 = vld [vmem:[%s11721_s13 + $0x18] sm:$0xff]  }
 0x875   : > { %7782 = vmatprep.subr.bf16.mxu1 %v9080_v0 }
 0x876   : > { %7795 = vmatpush3.bf16.msra.mxu0 %v8699_v63  ;;  %v8718_v63 = vld [vmem:[%s11721_s13 + $0x48] sm:$0xff]  }
 0x877   : > { %7796 = vmatprep.subr.bf16.mxu0 %v9080_v0 }
 0x878   : > { %7783 = vmatpush3.bf16.msra.mxu1 %v8706_v9  ;;  %v8725_v9 = vld [vmem:[%s11721_s13 + $0x20] sm:$0xff]  }
 0x879   : > { %7808 = vmatprep.subr.bf16.mxu1 %v9080_v0 }
 0x87a   : > { %7797 = vmatpush3.bf16.msra.mxu0 %v8701_v2  ;;  %v8720_v2 = vld [vmem:[%s11721_s13 + $0x50] sm:$0xff]  }
 0x87b   : > { %7798 = vmatprep.subr.bf16.mxu0 %v9080_v0 }
 0x87e   : > { %7799 = vmatpush3.bf16.msra.mxu0 %v8703_v6  ;;  %v8722_v6 = vld [vmem:[%s11721_s13 + $0x58] sm:$0xff]  }
 0x87f   : > { %7800 = vmatprep.subr.bf16.mxu0 %v9080_v0 }
 0x882   : > { %7801 = vmatpush3.bf16.msra.mxu0 %v8705_v8  ;;  %v8724_v8 = vld [vmem:[%s11721_s13 + $0x60] sm:$0xff]  }
 0x883   : > { %7802 = vmatprep.subr.bf16.mxu0 %v9080_v0 }
 0x886   : > { %7803 = vmatpush3.bf16.msra.mxu0 %v8707_v10  ;;  %v8726_v10 = vld [vmem:[%s11721_s13 + $0x68] sm:$0xff]  }
 0x887   : > { %7828 = vmatprep.subr.bf16.mxu0 %v9080_v0 }
 0x92c   : > { %v3114_v12 = vpop.f32.mrb[32].mxu0 }
 0x92d   : > { %v3181_v13 = vpop.f32.mrb[32].mxu1  ;;  %v7742_v19 = vpop.f32.mrb[33].mxu0 }
 0x92e   : > { %v3182_v17 = vadd.f32 %v3181_v13, %v3114_v12  ;;  %v7754_v21 = vpop.f32.mrb[33].mxu1  ;;  %v3117_v22 = vpop.f32.mrb[34].mxu0  ;;  %v8727_v12 = vld [vmem:[%s11721_s13 + $0x28] sm:$0xff]   ;;  %v8728_v13 = vld [vmem:[%s11721_s13 + $0x70] sm:$0xff]   ;;  %v8730_v19 = vld [vmem:[%s11721_s13 + $0x78] sm:$0xff]  }
 0x92f   : > { %v3184_v23 = vpop.f32.mrb[34].mxu1  ;;  %v7743_v30 = vpop.f32.mrb[35].mxu0  ;;  %v8731_v21 = vld [vmem:[%s11721_s13 + $0x38] sm:$0xff]  }
 0x930   : > { %v7755_v32 = vpop.f32.mrb[35].mxu1 }
 0x93c   : > { %v3259_v33 = vpop.f32.mrb[36].mxu0 }
 0x93d   : > { %v3265_v40 = vadd.f32 %v3259_v33, %v3182_v17  ;;  %v7766_v41 = vpop.f32.mrb[37].mxu0  ;;  %v8729_v17 = vld [vmem:[%s11721_s13 + $0x30] sm:$0xff]  }
 0x93e   : > { %v3262_v44 = vpop.f32.mrb[38].mxu0 }
 0x93f   : > { %v3273_v46 = vadd.f32 %v6597_v35, %v3265_v40  ;;  %v7767_v47 = vpop.f32.mrb[39].mxu0 }
 0x940   : > { %v6622_v47 = vld [vmem:[%s11720_s12] ss:$0 sm:$0xff] }
 0x941   : > { %v3274_v49 = vmax.f32 %v3273_v46, 0.0 }
 0x943   : > { %3277 = vst [vmem:[#allocation3 + $0x1] sm:$0xf] %v3274_v49 }
 0x94a   : > { %v3296_v52 = vld [vmem:[#allocation3 + $0x1] sm:$0xf] }
 0x94b   : > { %v3278_v53 = vld [vmem:[#allocation3] sm:$0xf]  ;;  %v3297_v55 = vpack.c.bf16 %v3296_v52, %v3296_v52 }
 0x94c   : > { %v3491_v54 = vld [vmem:[#allocation3 + $0x2] sm:$0xf]  ;;  %v3279_v56 = vpack.c.bf16 %v3278_v53, %v3278_v53  ;;  %4380 = vst.msk [vmem:[#allocation3] sm:$0x1] %vm2012_vm1, %v9080_v0 }
 0x94d   : > { %4381 = vst.msk [vmem:[#allocation3 + $0x3] sm:$0x1] %vm2012_vm1, %v9080_v0  ;;  %7785 = vmatmul.mubr.bf16.vlgmr.msra.gmra.mrb[36].mxu1 %v3297_v55  ;;  %v3492_v60 = vpack.c.bf16 %v3491_v54, %v3491_v54 }
 0x94e   : > { %7805 = vmatmul.mubr.bf16.vlgmr.msra.gmra.mrb[40].mxu0 %v3279_v56  ;;  %7809 = vmatpush3.bf16.msra.mxu1 %v8708_v50  ;;  %v8732_v56 = vld [vmem:[%s11721_s13 + $0x80] sm:$0xff]  }
 0x94f   : > { %7824 = vmatprep.mubr.msk.bf16.mxu1 %vm9081_vm0, %v9080_v0  ;;  %7810 = vmatprep.subr.bf16.mxu1 %v9080_v0 }
 0x950   : > { %7844 = vmatprep.mubr.msk.bf16.mxu0 %vm9081_vm0, %v9080_v0  ;;  %7829 = vmatpush3.bf16.msra.mxu0 %v8716_v61  ;;  %v8736_v61 = vld [vmem:[%s11721_s13 + $0xa0] sm:$0xff]  }
 0x951   : > { %7830 = vmatprep.subr.bf16.mxu0 %v9080_v0 }
 0x952   : > { %7811 = vmatpush3.bf16.msra.mxu1 %v8709_v11 }
 0x953   : > { %7812 = vmatprep.subr.bf16.mxu1 %v9080_v0 }
 0x954   : > { %7831 = vmatpush3.bf16.msra.mxu0 %v8718_v63  ;;  %v8738_v63 = vld [vmem:[%s11721_s13 + $0xb0] sm:$0xff]  }
 0x955   : > { %7832 = vmatprep.subr.bf16.mxu0 %v9080_v0 }
 0x956   : > { %7813 = vmatpush3.bf16.msra.mxu1 %v8710_v16 }
 0x957   : > { %7814 = vmatprep.subr.bf16.mxu1 %v9080_v0 }
 0x958   : > { %7833 = vmatpush3.bf16.msra.mxu0 %v8720_v2 }
 0x959   : > { %7834 = vmatprep.subr.bf16.mxu0 %v9080_v0 }
 0x95a   : > { %7815 = vmatpush3.bf16.msra.mxu1 %v8711_v28 }
 0x95b   : > { %7816 = vmatprep.subr.bf16.mxu1 %v9080_v0 }
 0x95c   : > { %7835 = vmatpush3.bf16.msra.mxu0 %v8722_v6 }
 0x95d   : > { %7836 = vmatprep.subr.bf16.mxu0 %v9080_v0 }
 0x95e   : > { %7817 = vmatpush3.bf16.msra.mxu1 %v8712_v20 }
 0x95f   : > { %7818 = vmatprep.subr.bf16.mxu1 %v9080_v0 }
 0x960   : > { %7837 = vmatpush3.bf16.msra.mxu0 %v8724_v8  ;;  %v3942_v8 = vand.u32 31, %v9671_v27 }
 0x961   : > { %7838 = vmatprep.subr.bf16.mxu0 %v9080_v0 }
 0x962   : > { %7819 = vmatpush3.bf16.msra.mxu1 %v8713_v31 }
 0x963   : > { %7820 = vmatprep.subr.bf16.mxu1 %v9080_v0 }
 0x964   : > { %7839 = vmatpush3.bf16.msra.mxu0 %v8726_v10  ;;  %v3974_v10 = vshra.s32 %v9667_v25, 5 }
 0x965   : > { %7840 = vmatprep.subr.bf16.mxu0 %v9080_v0 }
 0x966   : > { %7821 = vmatpush3.bf16.msra.mxu1 %v8714_v34  ;;  %v8733_v34 = vld [vmem:[%s11721_s13 + $0x88] sm:$0xff]  }
 0x967   : > { %7822 = vmatprep.subr.bf16.mxu1 %v9080_v0 }
 0x968   : > { %7841 = vmatpush3.bf16.msra.mxu0 %v8728_v13 }
 0x969   : > { %7842 = vmatprep.subr.bf16.mxu0 %v9080_v0 }
 0x96a   : > { %7823 = vmatpush3.bf16.msra.mxu1 %v8715_v59  ;;  %v8734_v59 = vld [vmem:[%s11721_s13 + $0x90] sm:$0xff]  }
 0x96b   : > { %7848 = vmatprep.subr.bf16.mxu1 %v9080_v0 }
 0x96c   : > { %7843 = vmatpush3.bf16.msra.mxu0 %v8730_v19  ;;  %v8743_v19 = vld [vmem:[%s11723_s15 + $0x8] sm:$0xff]  }
 0x96d   : > { %7825 = vmatmul.mubr.bf16.vlgmr.msra.gmra.mrb[40].mxu1 %v3492_v60  ;;  %7868 = vmatprep.subr.bf16.mxu0 %v9080_v0  ;;  %v8735_v60 = vld [vmem:[%s11721_s13 + $0x98] sm:$0xff]  }
 0x96e   : > { %7864 = vmatprep.mubr.msk.bf16.mxu1 %vm9081_vm0, %v9080_v0  ;;  %7849 = vmatpush3.bf16.msra.mxu1 %v8717_v62  ;;  %v8737_v62 = vld [vmem:[%s11721_s13 + $0xa8] sm:$0xff]  }
 0x96f   : > { %7850 = vmatprep.subr.bf16.mxu1 %v9080_v0 }
 0x972   : > { %7851 = vmatpush3.bf16.msra.mxu1 %v8719_v1  ;;  %v8739_v1 = vld [vmem:[%s11721_s13 + $0xb8] sm:$0xff]  }
 0x973   : > { %7852 = vmatprep.subr.bf16.mxu1 %v9080_v0 }
 0x976   : > { %7853 = vmatpush3.bf16.msra.mxu1 %v8721_v3  ;;  %v3990_v3 = vshra.s32 %v9665_v24, 5 }
 0x977   : > { %7854 = vmatprep.subr.bf16.mxu1 %v9080_v0 }
 0x978   : > { %v10656_v6 = vmul.u32 2, %v3990_v3  ;;  %v3951_v3 = vand.u32 31, %v9874_v14 }
 0x97a   : > { %7855 = vmatpush3.bf16.msra.mxu1 %v8723_v7  ;;  %v3941_v7 = vand.u32 31, %v9667_v25  ;;  %v10666_v13 = vadd.s32 1, %v10656_v6  ;;  %vm3992_vm8 = vcmp.eq.s32.totalorder %v3974_v10, %v10656_v6 }
 0x97b   : > { %7856 = vmatprep.subr.bf16.mxu1 %v9080_v0 }
 0x97c   : > { %vm10685_vm10 = vcmp.eq.s32.totalorder %v3974_v10, %v10666_v13  ;;  %v3952_v10 = vand.u32 31, %v9877_v15 }
 0x97e   : > { %7857 = vmatpush3.bf16.msra.mxu1 %v8725_v9  ;;  %v10661_v9 = vand.u32 31, %v9665_v24 }
 0x97f   : > { %7858 = vmatprep.subr.bf16.mxu1 %v9080_v0 }
 0x980   : > { %vm10670_vm11 = vcmp.eq.s32.totalorder %v3941_v7, %v10661_v9  ;;  %vm10675_vm9 = vcmp.eq.s32.totalorder %v3942_v8, %v10661_v9  ;;  %v3984_v7 = vshra.s32 %v9874_v14, 5 }
 0x981   : > { %vm4008_vm12 = vmand %vm10670_vm11, %vm3992_vm8 }
 0x982   : > { %7859 = vmatpush3.bf16.msra.mxu1 %v8727_v12  ;;  %v3975_v12 = vshra.s32 %v9671_v27, 5  ;;  %vm4057_vm15 = vmand %vm10670_vm11, %vm10685_vm10 }
 0x983   : > { %7860 = vmatprep.subr.bf16.mxu1 %v9080_v0 }
 0x984   : > { %vm3993_vm13 = vcmp.eq.s32.totalorder %v3975_v12, %v10656_v6  ;;  %vm4042_vm3 = vcmp.eq.s32.totalorder %v3975_v12, %v10666_v13  ;;  %v3985_v12 = vshra.s32 %v9877_v15, 5 }
 0x985   : > { %vm4009_vm14 = vmand %vm10675_vm9, %vm3993_vm13 }
 0x986   : > { %7861 = vmatpush3.bf16.msra.mxu1 %v8729_v17  ;;  %v3943_v17 = vand.u32 31, %v9697_v37  ;;  %vm8395_vm6 = vmpackc.low %vm4009_vm14, %vm4008_vm12 }
 0x987   : > { %7862 = vmatprep.subr.bf16.mxu1 %v9080_v0  ;;  %vm4058_vm4 = vmand %vm10675_vm9, %vm4042_vm3 }
 0x988   : > { %vm10700_vm2 = vcmp.eq.s32.totalorder %v3943_v17, %v10661_v9  ;;  %vm8419_vm13 = vmpackc.low %vm4058_vm4, %vm4057_vm15  ;;  %v8742_v17 = vld [vmem:[%s11723_s15 + $0x28] sm:$0xff]  }
 0x98a   : > { %7863 = vmatpush3.bf16.msra.mxu1 %v8731_v21  ;;  %v8744_v21 = vld [vmem:[%s11723_s15 + $0x30] sm:$0xff]  }
 0x98b   : > { %8394 = vmatprep.subr.bf16.mxu1 %v9083_v18 }
 0xa20   : > { %v3397_v22 = vpop.f32.mrb[36].mxu1 }
 0xa21   : > { %v3485_v23 = vpop.f32.mrb[40].mxu0  ;;  %v7786_v32 = vpop.f32.mrb[37].mxu1 }
 0xa22   : > { %v3486_v30 = vadd.f32 %v3485_v23, %v3397_v22  ;;  %v7806_v33 = vpop.f32.mrb[41].mxu0  ;;  %v3400_v35 = vpop.f32.mrb[38].mxu1  ;;  %v3976_v22 = vshra.s32 %v9697_v37, 5  ;;  %v3977_v32 = vshra.s32 %v9708_v39, 5  ;;  %v3986_v23 = vshra.s32 %v9922_v26, 5 }
 0xa23   : > { %v3488_v40 = vpop.f32.mrb[42].mxu0  ;;  %v7787_v41 = vpop.f32.mrb[39].mxu1  ;;  %v3987_v33 = vshra.s32 %v9925_v29, 5 }
 0xa24   : > { %v7807_v44 = vpop.f32.mrb[43].mxu0  ;;  %vm10705_vm7 = vcmp.eq.s32.totalorder %v3976_v22, %v10656_v6  ;;  %vm3995_vm11 = vcmp.eq.s32.totalorder %v3977_v32, %v10656_v6  ;;  %v3945_v41 = vand.u32 31, %v9737_v48  ;;  %vm10726_vm12 = vcmp.eq.s32.totalorder %v3976_v22, %v10666_v13 }
 0xa25   : > { %v3978_v44 = vshra.s32 %v9737_v48, 5  ;;  %vm4010_vm9 = vmand %vm10700_vm2, %vm10705_vm7  ;;  %vm4044_vm14 = vcmp.eq.s32.totalorder %v3977_v32, %v10666_v13  ;;  %v3953_v22 = vand.u32 31, %v9922_v26  ;;  %v3954_v32 = vand.u32 31, %v9925_v29 }
 0xa26   : > { %vm10742_vm15 = vcmp.eq.s32.totalorder %v3945_v41, %v10661_v9 }
 0xa27   : > { %vm10747_vm7 = vcmp.eq.s32.totalorder %v3978_v44, %v10656_v6 }
 0xa40   : > { %v3592_v46 = vpop.f32.mrb[40].mxu1 }
 0xa41   : > { %v3598_v49 = vadd.f32 %v3592_v46, %v3486_v30  ;;  %v7826_v50 = vpop.f32.mrb[41].mxu1  ;;  %v3944_v30 = vand.u32 31, %v9708_v39  ;;  %v3988_v46 = vshra.s32 %v9970_v42, 5 }
 0xa42   : > { %v3595_v52 = vpop.f32.mrb[42].mxu1  ;;  %v3989_v50 = vshra.s32 %v9973_v43, 5 }
 0xa43   : > { %v3606_v53 = vadd.f32 %v6622_v47, %v3598_v49  ;;  %v7827_v54 = vpop.f32.mrb[43].mxu1  ;;  %vm10713_vm8 = vcmp.eq.s32.totalorder %v3944_v30, %v10661_v9  ;;  %v3946_v47 = vand.u32 31, %v9755_v51  ;;  %v3979_v49 = vshra.s32 %v9755_v51, 5  ;;  %v8747_v30 = vld [vmem:[%s11723_s15 + $0x18] sm:$0xff]  }
 0xa44   : > { %vm4011_vm10 = vmand %vm10713_vm8, %vm3995_vm11  ;;  %v3947_v54 = vand.u32 31, %v9778_v57 }
 0xa45   : > { %v3607_v55 = vmax.f32 %v3606_v53, 0.0  ;;  %vm8398_vm3 = vmpackc.low %vm4011_vm10, %vm4010_vm9  ;;  %vm10755_vm11 = vcmp.eq.s32.totalorder %v3946_v47, %v10661_v9  ;;  %vm10768_vm9 = vcmp.eq.s32.totalorder %v3978_v44, %v10666_v13  ;;  %vm4046_vm10 = vcmp.eq.s32.totalorder %v3979_v49, %v10666_v13  ;;  %v8749_v53 = vld [vmem:[%s11723_s15 + $0x48] sm:$0xff]  }
 0xa46   : > { %vm4060_vm4 = vmand %vm10713_vm8, %vm4044_vm14  ;;  %v3955_v44 = vand.u32 31, %v9970_v42 }
 0xa47   : > { %3610 = vst [vmem:[#allocation2 + $0x1] sm:$0xf] %v3607_v55  ;;  %v3980_v55 = vshra.s32 %v9778_v57, 5  ;;  %vm4012_vm8 = vmand %vm10742_vm15, %vm10747_vm7 }
 0xa49   : > { %vm10789_vm7 = vcmp.eq.s32.totalorder %v3980_v55, %v10656_v6 }
 0xa4e   : > { %v3629_v11 = vld [vmem:[#allocation2 + $0x1] sm:$0xf] }
 0xa4f   : > { %v3611_v16 = vld [vmem:[#allocation2] sm:$0xf]  ;;  %v3630_v20 = vpack.c.bf16 %v3629_v11, %v3629_v11  ;;  %v3948_v11 = vand.u32 31, %v9781_v58 }
 0xa50   : > { %v3824_v28 = vld [vmem:[#allocation2 + $0x2] sm:$0xf]  ;;  %v3612_v31 = vpack.c.bf16 %v3611_v16, %v3611_v16  ;;  %4627 = vst [vmem:[#allocation2] sm:$0x1] %v9080_v0  ;;  %v3981_v16 = vshra.s32 %v9781_v58, 5 }
 0xa51   : > { %4628 = vst [vmem:[#allocation2 + $0x3] sm:$0x1] %v9080_v0  ;;  %7845 = vmatmul.mubr.bf16.vlgmr.msra.gmra.mrb[44].mxu0 %v3630_v20  ;;  %v3825_v2 = vpack.c.bf16 %v3824_v28, %v3824_v28 }
 0xa52   : > { %7865 = vmatmul.mubr.bf16.vlgmr.msra.gmra.mrb[44].mxu1 %v3612_v31  ;;  %7869 = vmatpush3.bf16.msra.mxu0 %v8732_v56  ;;  %v6679_v31 = vld [vmem:[%s11722_s14] ss:$0 sm:$0xff] }
 0xa53   : > { %7884 = vmatprep.mubr.msk.bf16.mxu0 %vm9081_vm0, %v9080_v0  ;;  %7870 = vmatprep.subr.bf16.mxu0 %v9080_v0 }
 0xa54   : > { %7920 = vmatprep.mubr.msk.f32.mxu1 %vm9081_vm0, %v9080_v0  ;;  %8396 = vmatpush3.bf16.msk.msra.mxu1 %vm8395_vm6, %v9082_v45  ;;  %vm4059_vm6 = vmand %vm10700_vm2, %vm10726_vm12  ;;  %vm3997_vm2 = vcmp.eq.s32.totalorder %v3979_v49, %v10656_v6  ;;  %v3956_v49 = vand.u32 31, %v9973_v43 }
 0xa55   : > { %8397 = vmatprep.subr.bf16.mxu1 %v9083_v18  ;;  %vm4013_vm12 = vmand %vm10755_vm11, %vm3997_vm2  ;;  %vm10797_vm2 = vcmp.eq.s32.totalorder %v3948_v11, %v10661_v9 }
 0xa56   : > { %7871 = vmatpush3.bf16.msra.mxu0 %v8733_v34  ;;  %vm8401_vm14 = vmpackc.low %vm4013_vm12, %vm4012_vm8  ;;  %v3949_v34 = vand.u32 31, %v9826_v4  ;;  %vm10810_vm8 = vcmp.eq.s32.totalorder %v3980_v55, %v10666_v13  ;;  %vm4048_vm12 = vcmp.eq.s32.totalorder %v3981_v16, %v10666_v13 }
 0xa57   : > { %7872 = vmatprep.subr.bf16.mxu0 %v9080_v0 }
 0xa58   : > { %8399 = vmatpush3.bf16.msk.msra.mxu1 %vm8398_vm3, %v9082_v45  ;;  %vm4061_vm3 = vmand %vm10742_vm15, %vm10768_vm9  ;;  %vm3999_vm15 = vcmp.eq.s32.totalorder %v3981_v16, %v10656_v6 }
 0xa59   : > { %8400 = vmatprep.subr.bf16.mxu1 %v9083_v18  ;;  %vm4015_vm9 = vmand %vm10797_vm2, %vm3999_vm15 }
 0xa5a   : > { %7873 = vmatpush3.bf16.msra.mxu0 %v8734_v59  ;;  %v3982_v59 = vshra.s32 %v9826_v4, 5 }
 0xa5b   : > { %7874 = vmatprep.subr.bf16.mxu0 %v9080_v0 }
 0xa5c   : > { %8402 = vmatpush3.bf16.msk.msra.mxu1 %vm8401_vm14, %v9082_v45 }
 0xa5d   : > { %8403 = vmatprep.subr.bf16.mxu1 %v9083_v18 }
 0xa5e   : > { %7875 = vmatpush3.bf16.msra.mxu0 %v8735_v60 }
 0xa5f   : > { %7876 = vmatprep.subr.bf16.mxu0 %v9080_v0 }
 0xa62   : > { %7877 = vmatpush3.bf16.msra.mxu0 %v8736_v61  ;;  %v3950_v61 = vand.u32 31, %v9829_v5 }
 0xa63   : > { %7878 = vmatprep.subr.bf16.mxu0 %v9080_v0 }
 0xa64   : > { %vm10839_vm15 = vcmp.eq.s32.totalorder %v3950_v61, %v10661_v9 }
 0xa66   : > { %7879 = vmatpush3.bf16.msra.mxu0 %v8737_v62  ;;  %v3983_v62 = vshra.s32 %v9829_v5, 5 }
 0xa67   : > { %7880 = vmatprep.subr.bf16.mxu0 %v9080_v0 }
 0xa6a   : > { %7881 = vmatpush3.bf16.msra.mxu0 %v8738_v63 }
 0xa6b   : > { %7882 = vmatprep.subr.bf16.mxu0 %v9080_v0 }
 0xa6e   : > { %7883 = vmatpush3.bf16.msra.mxu0 %v8739_v1 }
 0xa6f   : > { %8418 = vmatprep.subr.bf16.mxu0 %v9083_v18 }
 0xa71   : > { %7885 = vmatmul.mubr.bf16.vlgmr.msra.gmra.mrb[48].mxu0 %v3825_v2 }
 0xa72   : > { %7955 = vmatprep.mubr.msk.f32.mxu0 %vm9081_vm0, %v9080_v0  ;;  %8420 = vmatpush3.bf16.msk.msra.mxu0 %vm8419_vm13, %v9082_v45  ;;  %vm8422_vm13 = vmpackc.low %vm4060_vm4, %vm4059_vm6  ;;  %vm10784_vm6 = vcmp.eq.s32.totalorder %v3947_v54, %v10661_v9 }
 0xa73   : > { %8421 = vmatprep.subr.bf16.mxu0 %v9083_v18  ;;  %vm4062_vm4 = vmand %vm10755_vm11, %vm4046_vm10 }
 0xa74   : > { %vm4014_vm11 = vmand %vm10784_vm6, %vm10789_vm7  ;;  %vm10831_vm7 = vcmp.eq.s32.totalorder %v3982_v59, %v10656_v6 }
 0xa75   : > { %vm8404_vm10 = vmpackc.low %vm4015_vm9, %vm4014_vm11  ;;  %vm10852_vm11 = vcmp.eq.s32.totalorder %v3982_v59, %v10666_v13  ;;  %vm4050_vm9 = vcmp.eq.s32.totalorder %v3983_v62, %v10666_v13 }
 0xa76   : > { %8423 = vmatpush3.bf16.msk.msra.mxu0 %vm8422_vm13, %v9082_v45  ;;  %vm8425_vm13 = vmpackc.low %vm4062_vm4, %vm4061_vm3  ;;  %8405 = vmatpush3.bf16.msk.msra.mxu1 %vm8404_vm10, %v9082_v45  ;;  %vm10826_vm3 = vcmp.eq.s32.totalorder %v3949_v34, %v10661_v9 }
 0xa77   : > { %8424 = vmatprep.subr.bf16.mxu0 %v9083_v18  ;;  %vm4063_vm14 = vmand %vm10784_vm6, %vm10810_vm8  ;;  %8406 = vmatprep.subr.bf16.mxu1 %v9083_v18  ;;  %vm4001_vm6 = vcmp.eq.s32.totalorder %v3983_v62, %v10656_v6 }
 0xa78   : > { %vm4064_vm4 = vmand %vm10797_vm2, %vm4048_vm12 }
 0xa79   : > { %vm4016_vm2 = vmand %vm10826_vm3, %vm10831_vm7  ;;  %vm10873_vm7 = vcmp.eq.s32.totalorder %v3984_v7, %v10656_v6 }
 0xa7a   : > { %8426 = vmatpush3.bf16.msk.msra.mxu0 %vm8425_vm13, %v9082_v45  ;;  %vm8428_vm13 = vmpackc.low %vm4064_vm4, %vm4063_vm14  ;;  %vm10868_vm14 = vcmp.eq.s32.totalorder %v3951_v3, %v10661_v9 }
 0xa7b   : > { %8427 = vmatprep.subr.bf16.mxu0 %v9083_v18  ;;  %vm4017_vm8 = vmand %vm10839_vm15, %vm4001_vm6  ;;  %vm10881_vm6 = vcmp.eq.s32.totalorder %v3952_v10, %v10661_v9  ;;  %v8740_v10 = vld [vmem:[%s11723_s15 + $0x20] sm:$0xff]  }
 0xa7c   : > { %vm8407_vm12 = vmpackc.low %vm4017_vm8, %vm4016_vm2  ;;  %vm10894_vm2 = vcmp.eq.s32.totalorder %v3984_v7, %v10666_v13  ;;  %vm4052_vm8 = vcmp.eq.s32.totalorder %v3985_v12, %v10666_v13 }
 0xa7d   : > { %8408 = vmatpush3.bf16.msk.msra.mxu1 %vm8407_vm12, %v9082_v45  ;;  %vm4065_vm10 = vmand %vm10826_vm3, %vm10852_vm11  ;;  %vm4003_vm3 = vcmp.eq.s32.totalorder %v3985_v12, %v10656_v6  ;;  %v8741_v12 = vld [vmem:[%s11723_s15] sm:$0xff]  }
 0xa7e   : > { %8429 = vmatpush3.bf16.msk.msra.mxu0 %vm8428_vm13, %v9082_v45  ;;  %vm4066_vm4 = vmand %vm10839_vm15, %vm4050_vm9  ;;  %8409 = vmatprep.subr.bf16.mxu1 %v9083_v18 }
 0xa7f   : > { %8430 = vmatprep.subr.bf16.mxu0 %v9083_v18  ;;  %vm8431_vm13 = vmpackc.low %vm4066_vm4, %vm4065_vm10  ;;  %vm10910_vm10 = vcmp.eq.s32.totalorder %v3953_v22, %v10661_v9  ;;  %v8745_v22 = vld [vmem:[%s11723_s15 + $0x10] sm:$0xff]  }
 0xa80   : > { %vm4018_vm15 = vmand %vm10868_vm14, %vm10873_vm7  ;;  %vm10915_vm7 = vcmp.eq.s32.totalorder %v3986_v23, %v10656_v6 }
 0xa81   : > { %vm4019_vm11 = vmand %vm10881_vm6, %vm4003_vm3  ;;  %vm10923_vm3 = vcmp.eq.s32.totalorder %v3954_v32, %v10661_v9 }
 0xa82   : > { %8432 = vmatpush3.bf16.msk.msra.mxu0 %vm8431_vm13, %v9082_v45  ;;  %vm8410_vm9 = vmpackc.low %vm4019_vm11, %vm4018_vm15  ;;  %vm10936_vm15 = vcmp.eq.s32.totalorder %v3986_v23, %v10666_v13  ;;  %vm4054_vm11 = vcmp.eq.s32.totalorder %v3987_v33, %v10666_v13  ;;  %v8746_v23 = vld [vmem:[%s11723_s15 + $0x38] sm:$0xff]  }
 0xa83   : > { %8433 = vmatprep.subr.bf16.mxu0 %v9083_v18  ;;  %8411 = vmatpush3.bf16.msk.msra.mxu1 %vm8410_vm9, %v9082_v45  ;;  %vm4067_vm12 = vmand %vm10868_vm14, %vm10894_vm2  ;;  %vm4005_vm14 = vcmp.eq.s32.totalorder %v3987_v33, %v10656_v6 }
 0xa84   : > { %vm4068_vm4 = vmand %vm10881_vm6, %vm4052_vm8  ;;  %8412 = vmatprep.subr.bf16.mxu1 %v9083_v18 }
 0xa85   : > { %vm8434_vm13 = vmpackc.low %vm4068_vm4, %vm4067_vm12  ;;  %vm10952_vm12 = vcmp.eq.s32.totalorder %v3955_v44, %v10661_v9  ;;  %v8748_v44 = vld [vmem:[%s11723_s15 + $0x40] sm:$0xff]  }
 0xa86   : > { %8435 = vmatpush3.bf16.msk.msra.mxu0 %vm8434_vm13, %v9082_v45  ;;  %vm4020_vm6 = vmand %vm10910_vm10, %vm10915_vm7  ;;  %vm4006_vm7 = vcmp.eq.s32.totalorder %v3988_v46, %v10656_v6  ;;  %vm4007_vm13 = vcmp.eq.s32.totalorder %v3989_v50, %v10656_v6 }
 0xa87   : > { %8436 = vmatprep.subr.bf16.mxu0 %v9083_v18  ;;  %vm4021_vm2 = vmand %vm10923_vm3, %vm4005_vm14  ;;  %vm10961_vm14 = vcmp.eq.s32.totalorder %v3956_v49, %v10661_v9 }
 0xa88   : > { %vm8413_vm8 = vmpackc.low %vm4021_vm2, %vm4020_vm6  ;;  %vm4056_vm2 = vcmp.eq.s32.totalorder %v3989_v50, %v10666_v13 }
 0xa89   : > { %8414 = vmatpush3.bf16.msk.msra.mxu1 %vm8413_vm8, %v9082_v45  ;;  %vm4069_vm9 = vmand %vm10910_vm10, %vm10936_vm15  ;;  %vm4055_vm15 = vcmp.eq.s32.totalorder %v3988_v46, %v10666_v13 }
 0xa8a   : > { %vm4070_vm4 = vmand %vm10923_vm3, %vm4054_vm11  ;;  %8415 = vmatprep.subr.bf16.mxu1 %v9083_v18 }
 0xa8b   : > { %vm8437_vm10 = vmpackc.low %vm4070_vm4, %vm4069_vm9  ;;  %vm4230_vm4 = vcmask 31744  }
 0xa8c   : > { %8438 = vmatpush3.bf16.msk.msra.mxu0 %vm8437_vm10, %v9082_v45  ;;  %vm4022_vm6 = vmand %vm10952_vm12, %vm4006_vm7 }
 0xa8d   : > { %8439 = vmatprep.subr.bf16.mxu0 %v9083_v18  ;;  %vm4023_vm3 = vmand %vm10961_vm14, %vm4007_vm13 }
 0xa8e   : > { %vm8416_vm11 = vmpackc.low %vm4023_vm3, %vm4022_vm6 }
 0xa8f   : > { %8417 = vmatpush3.bf16.msk.msra.mxu1 %vm8416_vm11, %v9082_v45  ;;  %vm4071_vm8 = vmand %vm10952_vm12, %vm4055_vm15  ;;  %vm4233_vm12 = vcmask 1043456  }
 0xa90   : > { %vm4072_vm9 = vmand %vm10961_vm14, %vm4056_vm2  ;;  %7958 = vmatprep.subr.mxu1 %v9080_v0  ;;  %vm4382_vm14 = vcmask 517120  }
 0xa91   : > { %vm8440_vm7 = vmpackc.low %vm4072_vm9, %vm4071_vm8 }
 0xa92   : > { %8441 = vmatpush3.bf16.msk.msra.mxu0 %vm8440_vm7, %v9082_v45 }
 0xa93   : > { %7968 = vmatprep.subr.bf16.mxu0 %v9080_v0 }
 0xb24   : > { %v3730_v6 = vpop.f32.mrb[44].mxu0 }
 0xb25   : > { %v3818_v9 = vpop.f32.mrb[44].mxu1  ;;  %v7846_v13 = vpop.f32.mrb[45].mxu0 }
 0xb26   : > { %v3819_v54 = vadd.f32 %v3818_v9, %v3730_v6  ;;  %v7866_v55 = vpop.f32.mrb[45].mxu1  ;;  %v3733_v56 = vpop.f32.mrb[46].mxu0  ;;  %v8750_v6 = vld [vmem:[%s11723_s15 + $0x50] sm:$0xff]   ;;  %v8751_v9 = vld [vmem:[%s11723_s15 + $0x58] sm:$0xff]   ;;  %v8752_v13 = vld [vmem:[%s11725_s17 + $0x40] sm:$0xff]  }
 0xb27   : > { %v3821_v11 = vpop.f32.mrb[46].mxu1  ;;  %v7847_v16 = vpop.f32.mrb[47].mxu0  ;;  %v8753_v55 = vld [vmem:[%s11725_s17] sm:$0xff]   ;;  %v8754_v56 = vld [vmem:[%s11725_s17 + $0x48] sm:$0xff]  }
 0xb28   : > { %v7867_v28 = vpop.f32.mrb[47].mxu1  ;;  %v8755_v11 = vld [vmem:[%s11725_s17 + $0x8] sm:$0xff]   ;;  %v8756_v16 = vld [vmem:[%s11725_s17 + $0x50] sm:$0xff]  }
 0xb29   : > { %v8757_v28 = vld [vmem:[%s11725_s17 + $0x10] sm:$0xff]  }
 0xb44   : > { %v3925_v20 = vpop.f32.mrb[48].mxu0 }
 0xb45   : > { %v3931_v34 = vadd.f32 %v3925_v20, %v3819_v54  ;;  %v7886_v59 = vpop.f32.mrb[49].mxu0  ;;  %v8758_v20 = vld [vmem:[%s11725_s17 + $0x58] sm:$0xff]  }
 0xb46   : > { %v3928_v60 = vpop.f32.mrb[50].mxu0  ;;  %v8761_v59 = vld [vmem:[%s11725_s17 + $0x20] sm:$0xff]  }
 0xb47   : > { %v3939_v61 = vadd.f32 %v6679_v31, %v3931_v34  ;;  %v7887_v62 = vpop.f32.mrb[51].mxu0  ;;  %v8759_v31 = vld [vmem:[%s11725_s17 + $0x18] sm:$0xff]   ;;  %v8760_v34 = vld [vmem:[%s11725_s17 + $0x60] sm:$0xff]   ;;  %v8762_v60 = vld [vmem:[%s11725_s17 + $0x68] sm:$0xff]  }
 0xb48   : > { %v8764_v62 = vld [vmem:[%s11725_s17 + $0x70] sm:$0xff]  }
 0xb49   : > { %v3940_v63 = vmax.f32 %v3939_v61, 0.0  ;;  %v8763_v61 = vld [vmem:[%s11725_s17 + $0x28] sm:$0xff]  }
 0xb4b   : > { %7921 = vmatmul.mubr.f32.vlgmr.msra.gmra.mrb[48].mxu1 %v3940_v63  ;;  %7956 = vmatmul.mubr.f32.vlgmr.msra.gmra.mrb[52].mxu0 %v3940_v63  ;;  %v8765_v63 = vld [vmem:[%s11725_s17 + $0x30] sm:$0xff]  }
 0xb4c   : > { %7960 = vmatprep.mubr.msk.f32.mxu1 %vm9081_vm0, %v9080_v0  ;;  %7976 = vmatprep.mubr.msk.bf16.mxu0 %vm9081_vm0, %v9080_v0 }
 0xb4d   : > { %7969 = vmatpush3.bf16.msra.mxu0 %v8740_v10 }
 0xb4e   : > { %7970 = vmatprep.subr.bf16.mxu0 %v9080_v0 }
 0xb51   : > { %7971 = vmatpush3.bf16.msra.mxu0 %v8742_v17 }
 0xb52   : > { %7972 = vmatprep.subr.bf16.mxu0 %v9080_v0 }
 0xb55   : > { %7973 = vmatpush3.bf16.msra.mxu0 %v8744_v21 }
 0xb56   : > { %7974 = vmatprep.subr.bf16.mxu0 %v9080_v0 }
 0xb59   : > { %7975 = vmatpush3.bf16.msra.mxu0 %v8746_v23 }
 0xb5a   : > { %7992 = vmatprep.subr.bf16.mxu0 %v9080_v0 }
 0xc1e   : > { %v4155_v1 = vpop.f32.mrb[48].mxu1  ;;  %v4225_v2 = vpop.f32.mrb[52].mxu0 }
 0xc1f   : > { %v4229_v3 = vmax.f32 %v4155_v1, %v4225_v2  ;;  %v7922_v7 = vpop.f32.mrb[49].mxu1  ;;  %v7957_v8 = vpop.f32.mrb[53].mxu0  ;;  %v8766_v1 = vld [vmem:[%s11725_s17 + $0x78] sm:$0xff]  }
 0xc20   : > { %v8767_v2 = vld [vmem:[%s11725_s17 + $0x38] sm:$0xff]  }
 0xc21   : > { %7959 = vmatpush3.msk.msra.mxu1 %vm4233_vm12, %v4229_v3 }
 0xc22   : > { %7961 = vmatmul.mubr.msk.f32.vlgmr.msra.gmra.mrb[50].mxu1 %vm4230_vm4, %v10065_v36  ;;  %7963 = vmatprep.subr.mxu1 %v9080_v0 }
 0xc23   : > { %7964 = vmatpush3.msk.msra.mxu1 %vm4233_vm12, %v4229_v3  ;;  %7965 = vmatprep.mubr.msk.f32.mxu1 %vm9081_vm0, %v9080_v0 }
 0xc24   : > { %7980 = vmatprep.subr.bf16.mxu1 %v9080_v0 }
 0xc26   : > { %7966 = vmatmul.mubr.msk.f32.vlgmr.msra.gmra.mrb[52].mxu1 %vm4230_vm4, %v10073_v38 }
 0xc27   : > { %7988 = vmatprep.mubr.msk.bf16.mxu1 %vm9081_vm0, %v9080_v0  ;;  %7981 = vmatpush3.bf16.msra.mxu1 %v8741_v12 }
 0xc28   : > { %7982 = vmatprep.subr.bf16.mxu1 %v9080_v0 }
 0xc2b   : > { %7983 = vmatpush3.bf16.msra.mxu1 %v8743_v19 }
 0xc2c   : > { %7984 = vmatprep.subr.bf16.mxu1 %v9080_v0 }
 0xc2f   : > { %7985 = vmatpush3.bf16.msra.mxu1 %v8745_v22 }
 0xc30   : > { %7986 = vmatprep.subr.bf16.mxu1 %v9080_v0 }
 0xc33   : > { %7987 = vmatpush3.bf16.msra.mxu1 %v8747_v30  ;;  %v6747_v30 = vld [vmem:[%s11724_s16] ss:$0 sm:$0xff] }
 0xc34   : > { %8004 = vmatprep.subr.bf16.mxu1 %v9080_v0 }
 0xcf5   : > { %v4303_v32 = vpop.f32.mrb[50].mxu1 }
 0xcf6   : > { %v7962_v33 = vpop.f32.mrb[51].mxu1 }
 0xcf9   : > { %v4375_v35 = vpop.f32.mrb[52].mxu1 }
 0xcfa   : > { %v4379_v40 = vmax.f32 %v4303_v32, %v4375_v35  ;;  %v7967_v41 = vpop.f32.mrb[53].mxu1 }
 0xcfc   : > { %4383 = vst.msk [vmem:[#allocation3 + $0x1] sm:$0x3] %vm4382_vm14, %v4379_v40 }
 0xd03   : > { %v4394_v46 = vld [vmem:[#allocation3 + $0x1] sm:$0x3] }
 0xd04   : > { %v4384_v47 = vld [vmem:[#allocation3] sm:$0x3]  ;;  %v4539_v49 = vld [vmem:[#allocation3 + $0x2] sm:$0x3]  ;;  %v4395_v50 = vpack.c.bf16 %v4394_v46, %v4394_v46  ;;  %v8768_v46 = vld [vmem:[%s11725_s17 + $0x80] sm:$0xff]  }
 0xd05   : > { %v4385_v52 = vpack.c.bf16 %v4384_v47, %v4384_v47  ;;  %4960 = vst [vmem:[#allocation3] sm:$0x1] %v9080_v0  ;;  %4961 = vst [vmem:[#allocation3 + $0x3] sm:$0x1] %v9080_v0  ;;  %v4540_v54 = vpack.c.bf16 %v4539_v49, %v4539_v49 }
 0xd06   : > { %7977 = vmatmul.mubr.msk.bf16.vlgmr.msra.gmra.mrb[56].mxu0 %vm2015_vm5, %v4395_v50 }
 0xd07   : > { %7989 = vmatmul.mubr.msk.bf16.vlgmr.msra.gmra.mrb[56].mxu1 %vm2015_vm5, %v4385_v52  ;;  %7993 = vmatpush3.bf16.msra.mxu0 %v8748_v44 }
 0xd08   : > { %8000 = vmatprep.mubr.msk.bf16.mxu0 %vm9081_vm0, %v9080_v0  ;;  %7994 = vmatprep.subr.bf16.mxu0 %v9080_v0 }
 0xd09   : > { %8020 = vmatprep.mubr.msk.bf16.mxu1 %vm9081_vm0, %v9080_v0  ;;  %8005 = vmatpush3.bf16.msra.mxu1 %v8752_v13  ;;  %v8772_v13 = vld [vmem:[%s11725_s17 + $0xa0] sm:$0xff]  }
 0xd0a   : > { %8006 = vmatprep.subr.bf16.mxu1 %v9080_v0 }
 0xd0b   : > { %7995 = vmatpush3.bf16.msra.mxu0 %v8749_v53 }
 0xd0c   : > { %7996 = vmatprep.subr.bf16.mxu0 %v9080_v0 }
 0xd0d   : > { %8007 = vmatpush3.bf16.msra.mxu1 %v8754_v56  ;;  %v8774_v56 = vld [vmem:[%s11725_s17 + $0xb0] sm:$0xff]  }
 0xd0e   : > { %8008 = vmatprep.subr.bf16.mxu1 %v9080_v0 }
 0xd0f   : > { %7997 = vmatpush3.bf16.msra.mxu0 %v8750_v6  ;;  %v8769_v6 = vld [vmem:[%s11725_s17 + $0x88] sm:$0xff]  }
 0xd10   : > { %7998 = vmatprep.subr.bf16.mxu0 %v9080_v0 }
 0xd11   : > { %8009 = vmatpush3.bf16.msra.mxu1 %v8756_v16 }
 0xd12   : > { %8010 = vmatprep.subr.bf16.mxu1 %v9080_v0 }
 0xd13   : > { %7999 = vmatpush3.bf16.msra.mxu0 %v8751_v9  ;;  %v8770_v9 = vld [vmem:[%s11725_s17 + $0x90] sm:$0xff]  }
 0xd14   : > { %8024 = vmatprep.subr.bf16.mxu0 %v9080_v0 }
 0xd15   : > { %8011 = vmatpush3.bf16.msra.mxu1 %v8758_v20  ;;  %v8777_v20 = vld [vmem:[%s11727_s19] sm:$0xff]  }
 0xd16   : > { %8001 = vmatmul.mubr.msk.bf16.vlgmr.msra.gmra.mrb[60].mxu0 %vm2015_vm5, %v4540_v54  ;;  %8012 = vmatprep.subr.bf16.mxu1 %v9080_v0  ;;  %v8771_v54 = vld [vmem:[%s11725_s17 + $0x98] sm:$0xff]  }
 0xd17   : > { %8040 = vmatprep.mubr.msk.bf16.mxu0 %vm9081_vm0, %v9080_v0  ;;  %8025 = vmatpush3.bf16.msra.mxu0 %v8753_v55  ;;  %v8773_v55 = vld [vmem:[%s11725_s17 + $0xa8] sm:$0xff]  }
 0xd18   : > { %8026 = vmatprep.subr.bf16.mxu0 %v9080_v0 }
 0xd19   : > { %8013 = vmatpush3.bf16.msra.mxu1 %v8760_v34  ;;  %v8779_v34 = vld [vmem:[%s11727_s19 + $0x8] sm:$0xff]  }
 0xd1a   : > { %8014 = vmatprep.subr.bf16.mxu1 %v9080_v0 }
 0xd1b   : > { %8027 = vmatpush3.bf16.msra.mxu0 %v8755_v11  ;;  %v8775_v11 = vld [vmem:[%s11725_s17 + $0xb8] sm:$0xff]  }
 0xd1c   : > { %8028 = vmatprep.subr.bf16.mxu0 %v9080_v0 }
 0xd1d   : > { %8015 = vmatpush3.bf16.msra.mxu1 %v8762_v60  ;;  %v8781_v60 = vld [vmem:[%s11727_s19 + $0x10] sm:$0xff]  }
 0xd1e   : > { %8016 = vmatprep.subr.bf16.mxu1 %v9080_v0 }
 0xd1f   : > { %8029 = vmatpush3.bf16.msra.mxu0 %v8757_v28  ;;  %v8776_v28 = vld [vmem:[%s11727_s19 + $0x40] sm:$0xff]  }
 0xd20   : > { %8030 = vmatprep.subr.bf16.mxu0 %v9080_v0 }
 0xd21   : > { %8017 = vmatpush3.bf16.msra.mxu1 %v8764_v62  ;;  %v8783_v62 = vld [vmem:[%s11727_s19 + $0x18] sm:$0xff]  }
 0xd22   : > { %8018 = vmatprep.subr.bf16.mxu1 %v9080_v0 }
 0xd23   : > { %8031 = vmatpush3.bf16.msra.mxu0 %v8759_v31  ;;  %v8778_v31 = vld [vmem:[%s11727_s19 + $0x48] sm:$0xff]  }
 0xd24   : > { %8032 = vmatprep.subr.bf16.mxu0 %v9080_v0 }
 0xd25   : > { %8019 = vmatpush3.bf16.msra.mxu1 %v8766_v1  ;;  %v8785_v1 = vld [vmem:[%s11727_s19 + $0x20] sm:$0xff]  }
 0xd26   : > { %8044 = vmatprep.subr.bf16.mxu1 %v9080_v0 }
 0xd27   : > { %8033 = vmatpush3.bf16.msra.mxu0 %v8761_v59  ;;  %v8780_v59 = vld [vmem:[%s11727_s19 + $0x50] sm:$0xff]  }
 0xd28   : > { %8034 = vmatprep.subr.bf16.mxu0 %v9080_v0 }
 0xd2b   : > { %8035 = vmatpush3.bf16.msra.mxu0 %v8763_v61  ;;  %v8782_v61 = vld [vmem:[%s11727_s19 + $0x58] sm:$0xff]  }
 0xd2c   : > { %8036 = vmatprep.subr.bf16.mxu0 %v9080_v0 }
 0xd2f   : > { %8037 = vmatpush3.bf16.msra.mxu0 %v8765_v63  ;;  %v8784_v63 = vld [vmem:[%s11727_s19 + $0x60] sm:$0xff]  }
 0xd30   : > { %8038 = vmatprep.subr.bf16.mxu0 %v9080_v0 }
 0xd33   : > { %8039 = vmatpush3.bf16.msra.mxu0 %v8767_v2  ;;  %v8786_v2 = vld [vmem:[%s11727_s19 + $0x68] sm:$0xff]  }
 0xd34   : > { %8064 = vmatprep.subr.bf16.mxu0 %v9080_v0 }
 0xdd9   : > { %v4466_v3 = vpop.f32.mrb[56].mxu0 }
 0xdda   : > { %v4533_v7 = vpop.f32.mrb[56].mxu1  ;;  %v7978_v10 = vpop.f32.mrb[57].mxu0 }
 0xddb   : > { %v4534_v8 = vadd.f32 %v4533_v7, %v4466_v3  ;;  %v7990_v12 = vpop.f32.mrb[57].mxu1  ;;  %v4469_v17 = vpop.f32.mrb[58].mxu0  ;;  %v8787_v3 = vld [vmem:[%s11727_s19 + $0x28] sm:$0xff]   ;;  %v8788_v7 = vld [vmem:[%s11727_s19 + $0x70] sm:$0xff]   ;;  %v8790_v10 = vld [vmem:[%s11727_s19 + $0x78] sm:$0xff]  }
 0xddc   : > { %v4536_v19 = vpop.f32.mrb[58].mxu1  ;;  %v7979_v21 = vpop.f32.mrb[59].mxu0  ;;  %v8791_v12 = vld [vmem:[%s11727_s19 + $0x38] sm:$0xff]  }
 0xddd   : > { %v7991_v22 = vpop.f32.mrb[59].mxu1 }
 0xde9   : > { %v4611_v23 = vpop.f32.mrb[60].mxu0 }
 0xdea   : > { %v4617_v32 = vadd.f32 %v4611_v23, %v4534_v8  ;;  %v8002_v33 = vpop.f32.mrb[61].mxu0  ;;  %v8789_v8 = vld [vmem:[%s11727_s19 + $0x30] sm:$0xff]  }
 0xdeb   : > { %v4614_v35 = vpop.f32.mrb[62].mxu0 }
 0xdec   : > { %v4625_v40 = vadd.f32 %v6747_v30, %v4617_v32  ;;  %v8003_v41 = vpop.f32.mrb[63].mxu0 }
 0xded   : > { %v6804_v41 = vld [vmem:[%s11983_s9] ss:$0 sm:$0xff] }
 0xdee   : > { %v4626_v44 = vmax.f32 %v4625_v40, 0.0 }
 0xdf0   : > { %4629 = vst [vmem:[#allocation2 + $0x1] sm:$0x3] %v4626_v44 }
 0xdf7   : > { %v4648_v47 = vld [vmem:[#allocation2 + $0x1] sm:$0x3] }
 0xdf8   : > { %v4630_v49 = vld [vmem:[#allocation2] sm:$0x3]  ;;  %v4843_v50 = vld [vmem:[#allocation2 + $0x2] sm:$0x3]  ;;  %v4649_v52 = vpack.c.bf16 %v4648_v47, %v4648_v47 }
 0xdf9   : > { %v4631_v53 = vpack.c.bf16 %v4630_v49, %v4630_v49  ;;  %5732 = vst.msk [vmem:[#allocation2] sm:$0x1] %vm2012_vm1, %v9080_v0  ;;  %5733 = vst.msk [vmem:[#allocation2 + $0x2] sm:$0x1] %vm2012_vm1, %v9080_v0  ;;  %v4844_v16 = vpack.c.bf16 %v4843_v50, %v4843_v50 }
 0xdfa   : > { %8021 = vmatmul.mubr.bf16.vlgmr.msra.gmra.mrb[60].mxu1 %v4649_v52 }
 0xdfb   : > { %8041 = vmatmul.mubr.bf16.vlgmr.msra.gmra.mrb[64].mxu0 %v4631_v53  ;;  %8045 = vmatpush3.bf16.msra.mxu1 %v8768_v46  ;;  %v8792_v53 = vld [vmem:[%s11727_s19 + $0x80] sm:$0xff]  }
 0xdfc   : > { %8060 = vmatprep.mubr.msk.bf16.mxu1 %vm9081_vm0, %v9080_v0  ;;  %8046 = vmatprep.subr.bf16.mxu1 %v9080_v0 }
 0xdfd   : > { %8080 = vmatprep.mubr.msk.bf16.mxu0 %vm9081_vm0, %v9080_v0  ;;  %8065 = vmatpush3.bf16.msra.mxu0 %v8776_v28  ;;  %v8796_v28 = vld [vmem:[%s11727_s19 + $0xa0] sm:$0xff]  }
 0xdfe   : > { %8066 = vmatprep.subr.bf16.mxu0 %v9080_v0 }
 0xdff   : > { %8047 = vmatpush3.bf16.msra.mxu1 %v8769_v6 }
 0xe00   : > { %8048 = vmatprep.subr.bf16.mxu1 %v9080_v0 }
 0xe01   : > { %8067 = vmatpush3.bf16.msra.mxu0 %v8778_v31  ;;  %v8798_v31 = vld [vmem:[%s11727_s19 + $0xb0] sm:$0xff]  }
 0xe02   : > { %8068 = vmatprep.subr.bf16.mxu0 %v9080_v0 }
 0xe03   : > { %8049 = vmatpush3.bf16.msra.mxu1 %v8770_v9 }
 0xe04   : > { %8050 = vmatprep.subr.bf16.mxu1 %v9080_v0 }
 0xe05   : > { %8069 = vmatpush3.bf16.msra.mxu0 %v8780_v59 }
 0xe06   : > { %8070 = vmatprep.subr.bf16.mxu0 %v9080_v0 }
 0xe07   : > { %8051 = vmatpush3.bf16.msra.mxu1 %v8771_v54 }
 0xe08   : > { %8052 = vmatprep.subr.bf16.mxu1 %v9080_v0 }
 0xe09   : > { %8071 = vmatpush3.bf16.msra.mxu0 %v8782_v61 }
 0xe0a   : > { %8072 = vmatprep.subr.bf16.mxu0 %v9080_v0 }
 0xe0b   : > { %8053 = vmatpush3.bf16.msra.mxu1 %v8772_v13 }
 0xe0c   : > { %8054 = vmatprep.subr.bf16.mxu1 %v9080_v0 }
 0xe0d   : > { %8073 = vmatpush3.bf16.msra.mxu0 %v8784_v63  ;;  %v5294_v63 = vand.u32 63, %v9671_v27 }
 0xe0e   : > { %8074 = vmatprep.subr.bf16.mxu0 %v9080_v0 }
 0xe0f   : > { %8055 = vmatpush3.bf16.msra.mxu1 %v8773_v55 }
 0xe10   : > { %8056 = vmatprep.subr.bf16.mxu1 %v9080_v0 }
 0xe11   : > { %8075 = vmatpush3.bf16.msra.mxu0 %v8786_v2  ;;  %v5326_v2 = vshra.s32 %v9667_v25, 6 }
 0xe12   : > { %8076 = vmatprep.subr.bf16.mxu0 %v9080_v0 }
 0xe13   : > { %8057 = vmatpush3.bf16.msra.mxu1 %v8774_v56  ;;  %v8793_v56 = vld [vmem:[%s11727_s19 + $0x88] sm:$0xff]  }
 0xe14   : > { %8058 = vmatprep.subr.bf16.mxu1 %v9080_v0 }
 0xe15   : > { %8077 = vmatpush3.bf16.msra.mxu0 %v8788_v7 }
 0xe16   : > { %8078 = vmatprep.subr.bf16.mxu0 %v9080_v0 }
 0xe17   : > { %8059 = vmatpush3.bf16.msra.mxu1 %v8775_v11  ;;  %v8794_v11 = vld [vmem:[%s11727_s19 + $0x90] sm:$0xff]  }
 0xe18   : > { %8084 = vmatprep.subr.bf16.mxu1 %v9080_v0 }
 0xe19   : > { %8079 = vmatpush3.bf16.msra.mxu0 %v8790_v10 }
 0xe1a   : > { %8061 = vmatmul.mubr.bf16.vlgmr.msra.gmra.mrb[64].mxu1 %v4844_v16  ;;  %8104 = vmatprep.subr.bf16.mxu0 %v9080_v0  ;;  %v8795_v16 = vld [vmem:[%s11727_s19 + $0x98] sm:$0xff]  }
 0xe1b   : > { %8100 = vmatprep.mubr.msk.bf16.mxu1 %vm9081_vm0, %v9080_v0  ;;  %8085 = vmatpush3.bf16.msra.mxu1 %v8777_v20  ;;  %v8797_v20 = vld [vmem:[%s11727_s19 + $0xa8] sm:$0xff]  }
 0xe1c   : > { %8086 = vmatprep.subr.bf16.mxu1 %v9080_v0 }
 0xe1f   : > { %8087 = vmatpush3.bf16.msra.mxu1 %v8779_v34  ;;  %v8799_v34 = vld [vmem:[%s11727_s19 + $0xb8] sm:$0xff]  }
 0xe20   : > { %8088 = vmatprep.subr.bf16.mxu1 %v9080_v0 }
 0xe23   : > { %8089 = vmatpush3.bf16.msra.mxu1 %v8781_v60  ;;  %v5342_v60 = vshra.s32 %v9665_v24, 6 }
 0xe24   : > { %8090 = vmatprep.subr.bf16.mxu1 %v9080_v0 }
 0xe25   : > { %v11275_v61 = vmul.u32 2, %v5342_v60  ;;  %v8818_v60 = vld [vmem:[#allocation13 + $0x38] sm:$0xff]  }
 0xe27   : > { %8091 = vmatpush3.bf16.msra.mxu1 %v8783_v62  ;;  %v5293_v62 = vand.u32 63, %v9667_v25  ;;  %v11285_v7 = vadd.s32 1, %v11275_v61  ;;  %vm5344_vm6 = vcmp.eq.s32.totalorder %v5326_v2, %v11275_v61 }
 0xe28   : > { %8092 = vmatprep.subr.bf16.mxu1 %v9080_v0 }
 0xe29   : > { %vm11304_vm2 = vcmp.eq.s32.totalorder %v5326_v2, %v11285_v7 }
 0xe2b   : > { %8093 = vmatpush3.bf16.msra.mxu1 %v8785_v1  ;;  %v11280_v1 = vand.u32 63, %v9665_v24  ;;  %v5328_v24 = vshra.s32 %v9697_v37, 6 }
 0xe2c   : > { %8094 = vmatprep.subr.bf16.mxu1 %v9080_v0 }
 0xe2d   : > { %vm11289_vm13 = vcmp.eq.s32.totalorder %v5293_v62, %v11280_v1  ;;  %vm11294_vm10 = vcmp.eq.s32.totalorder %v5294_v63, %v11280_v1  ;;  %vm11324_vm4 = vcmp.eq.s32.totalorder %v5328_v24, %v11275_v61  ;;  %v5307_v62 = vand.u32 63, %v9970_v42 }
 0xe2e   : > { %vm5360_vm3 = vmand %vm11289_vm13, %vm5344_vm6  ;;  %v5340_v63 = vshra.s32 %v9970_v42, 6 }
 0xe2f   : > { %8095 = vmatpush3.bf16.msra.mxu1 %v8787_v3  ;;  %v5327_v3 = vshra.s32 %v9671_v27, 6  ;;  %v5296_v27 = vand.u32 63, %v9708_v39  ;;  %vm5409_vm7 = vmand %vm11289_vm13, %vm11304_vm2 }
 0xe30   : > { %8096 = vmatprep.subr.bf16.mxu1 %v9080_v0 }
 0xe31   : > { %vm5345_vm15 = vcmp.eq.s32.totalorder %v5327_v3, %v11275_v61  ;;  %vm5394_vm8 = vcmp.eq.s32.totalorder %v5327_v3, %v11285_v7  ;;  %vm11332_vm6 = vcmp.eq.s32.totalorder %v5296_v27, %v11280_v1  ;;  %v5308_v3 = vand.u32 63, %v9973_v43 }
 0xe32   : > { %vm5361_vm11 = vmand %vm11294_vm10, %vm5345_vm15 }
 0xe33   : > { %8097 = vmatpush3.bf16.msra.mxu1 %v8789_v8  ;;  %v5295_v8 = vand.u32 63, %v9697_v37  ;;  %vm8443_vm9 = vmpackc.low %vm5361_vm11, %vm5360_vm3  ;;  %vm11345_vm3 = vcmp.eq.s32.totalorder %v5328_v24, %v11285_v7  ;;  %v6861_v37 = vld [vmem:[%s12042_s6] ss:$0 sm:$0xff]  ;;  %s11665_s6 = scalar_lea.hbm %s12047_s30, %s6928_s8 }
 0xe34   : > { %8098 = vmatprep.subr.bf16.mxu1 %v9080_v0  ;;  %vm5410_vm14 = vmand %vm11294_vm10, %vm5394_vm8 }
 0xe35   : > { %vm11319_vm12 = vcmp.eq.s32.totalorder %v5295_v8, %v11280_v1  ;;  %vm8467_vm15 = vmpackc.low %vm5410_vm14, %vm5409_vm7  ;;  %v5341_v8 = vshra.s32 %v9973_v43, 6 }
 0xe36   : > { %vm5362_vm10 = vmand %vm11319_vm12, %vm11324_vm4 }
 0xe37   : > { %8099 = vmatpush3.bf16.msra.mxu1 %v8791_v12 }
 0xe38   : > { %8442 = vmatprep.subr.bf16.mxu1 %v9083_v18 }
 0xecd   : > { %v4749_v17 = vpop.f32.mrb[60].mxu1 }
 0xece   : > { %v4837_v19 = vpop.f32.mrb[64].mxu0  ;;  %v8022_v22 = vpop.f32.mrb[61].mxu1 }
 0xecf   : > { %v4838_v21 = vadd.f32 %v4837_v19, %v4749_v17  ;;  %v8042_v23 = vpop.f32.mrb[65].mxu0  ;;  %v4752_v30 = vpop.f32.mrb[62].mxu1  ;;  %v5329_v17 = vshra.s32 %v9708_v39, 6  ;;  %v5330_v22 = vshra.s32 %v9737_v48, 6 }
 0xed0   : > { %v4840_v32 = vpop.f32.mrb[66].mxu0  ;;  %v8023_v33 = vpop.f32.mrb[63].mxu1  ;;  %v5298_v30 = vand.u32 63, %v9755_v51 }
 0xed1   : > { %v8043_v35 = vpop.f32.mrb[67].mxu0  ;;  %vm5347_vm13 = vcmp.eq.s32.totalorder %v5329_v17, %v11275_v61  ;;  %v5331_v32 = vshra.s32 %v9755_v51, 6  ;;  %vm5396_vm11 = vcmp.eq.s32.totalorder %v5329_v17, %v11285_v7  ;;  %vm11366_vm4 = vcmp.eq.s32.totalorder %v5330_v22, %v11275_v61 }
 0xed2   : > { %vm5363_vm2 = vmand %vm11332_vm6, %vm5347_vm13  ;;  %vm11374_vm13 = vcmp.eq.s32.totalorder %v5298_v30, %v11280_v1  ;;  %v5299_v35 = vand.u32 63, %v9778_v57 }
 0xed3   : > { %vm8446_vm8 = vmpackc.low %vm5363_vm2, %vm5362_vm10  ;;  %vm11387_vm10 = vcmp.eq.s32.totalorder %v5330_v22, %v11285_v7  ;;  %vm5398_vm2 = vcmp.eq.s32.totalorder %v5331_v32, %v11285_v7 }
 0xed4   : > { %vm5412_vm14 = vmand %vm11332_vm6, %vm5396_vm11 }
 0xeed   : > { %v4944_v40 = vpop.f32.mrb[64].mxu1 }
 0xeee   : > { %v4950_v44 = vadd.f32 %v4944_v40, %v4838_v21  ;;  %v8062_v46 = vpop.f32.mrb[65].mxu1  ;;  %v5297_v21 = vand.u32 63, %v9737_v48  ;;  %v5332_v40 = vshra.s32 %v9778_v57, 6  ;;  %v8807_v57 = vld [vmem:[#allocation12 + $0x18] sm:$0xff]  }
 0xeef   : > { %v4947_v47 = vpop.f32.mrb[66].mxu1  ;;  %v5333_v46 = vshra.s32 %v9781_v58, 6 }
 0xef0   : > { %v4958_v49 = vadd.f32 %v6804_v41, %v4950_v44  ;;  %v8063_v50 = vpop.f32.mrb[67].mxu1  ;;  %vm11361_vm7 = vcmp.eq.s32.totalorder %v5297_v21, %v11280_v1  ;;  %v5300_v44 = vand.u32 63, %v9781_v58  ;;  %v8803_v41 = vld [vmem:[#allocation12 + $0x8] sm:$0xff]   ;;  %v5735_v58 = vld [vmem:[#allocation2] sm:$0x1] }
 0xef1   : > { %vm5364_vm6 = vmand %vm11361_vm7, %vm11366_vm4  ;;  %vm11408_vm4 = vcmp.eq.s32.totalorder %v5332_v40, %v11275_v61  ;;  %v5334_v50 = vshra.s32 %v9826_v4, 6  ;;  %v5736_v47 = vpack.c.bf16 %v5735_v58, %v5735_v58 }
 0xef2   : > { %v4959_v52 = vmax.f32 %v4958_v49, 0.0  ;;  %v5301_v49 = vand.u32 63, %v9826_v4 }
 0xef4   : > { %4962 = vst [vmem:[#allocation3 + $0x1] sm:$0x3] %v4959_v52 }
 0xefb   : > { %v4981_v6 = vld [vmem:[#allocation3 + $0x1] sm:$0x3] }
 0xefc   : > { %v4963_v9 = vld [vmem:[#allocation3] sm:$0x3]  ;;  %v5176_v54 = vld [vmem:[#allocation3 + $0x2] sm:$0x3]  ;;  %v4982_v13 = vpack.c.bf16 %v4981_v6, %v4981_v6  ;;  %v5335_v6 = vshra.s32 %v9829_v5, 6 }
 0xefd   : > { %v4964_v55 = vpack.c.bf16 %v4963_v9, %v4963_v9  ;;  %5972 = vst.msk [vmem:[#allocation3] sm:$0x1] %vm2012_vm1, %v9080_v0  ;;  %5973 = vst.msk [vmem:[#allocation3 + $0x2] sm:$0x1] %vm2012_vm1, %v9080_v0  ;;  %v5177_v59 = vpack.c.bf16 %v5176_v54, %v5176_v54  ;;  %v5303_v54 = vand.u32 63, %v9874_v14 }
 0xefe   : > { %8081 = vmatmul.mubr.bf16.vlgmr.msra.gmra.mrb[68].mxu0 %v4982_v13  ;;  %v5336_v13 = vshra.s32 %v9874_v14, 6 }
 0xeff   : > { %8101 = vmatmul.mubr.bf16.vlgmr.msra.gmra.mrb[68].mxu1 %v4964_v55  ;;  %8105 = vmatpush3.bf16.msra.mxu0 %v8792_v53  ;;  %v5302_v53 = vand.u32 63, %v9829_v5  ;;  %v8808_v5 = vld [vmem:[#allocation12 + $0x40] sm:$0xff]   ;;  %v8811_v55 = vld [vmem:[#allocation12 + $0x58] sm:$0xff]  }
 0xf00   : > { %8120 = vmatprep.mubr.msk.bf16.mxu0 %vm9081_vm0, %v9080_v0  ;;  %8106 = vmatprep.subr.bf16.mxu0 %v9080_v0 }
 0xf01   : > { %8156 = vmatprep.mubr.msk.f32.mxu1 %vm9081_vm0, %v9080_v0  ;;  %8444 = vmatpush3.bf16.msk.msra.mxu1 %vm8443_vm9, %v9082_v45  ;;  %vm5411_vm9 = vmand %vm11319_vm12, %vm11345_vm3  ;;  %vm5349_vm12 = vcmp.eq.s32.totalorder %v5331_v32, %v11275_v61 }
 0xf02   : > { %8445 = vmatprep.subr.bf16.mxu1 %v9083_v18  ;;  %vm5365_vm3 = vmand %vm11374_vm13, %vm5349_vm12  ;;  %vm11416_vm12 = vcmp.eq.s32.totalorder %v5300_v44, %v11280_v1  ;;  %v8804_v44 = vld [vmem:[#allocation12 + $0x30] sm:$0xff]  }
 0xf03   : > { %8107 = vmatpush3.bf16.msra.mxu0 %v8793_v56  ;;  %vm8449_vm11 = vmpackc.low %vm5365_vm3, %vm5364_vm6  ;;  %vm11429_vm6 = vcmp.eq.s32.totalorder %v5332_v40, %v11285_v7  ;;  %vm5400_vm3 = vcmp.eq.s32.totalorder %v5333_v46, %v11285_v7  ;;  %v5304_v56 = vand.u32 63, %v9877_v15  ;;  %v8801_v40 = vld [vmem:[#allocation12] sm:$0xff]  }
 0xf04   : > { %8108 = vmatprep.subr.bf16.mxu0 %v9080_v0 }
 0xf05   : > { %8447 = vmatpush3.bf16.msk.msra.mxu1 %vm8446_vm8, %v9082_v45  ;;  %vm5413_vm8 = vmand %vm11361_vm7, %vm11387_vm10  ;;  %vm5351_vm7 = vcmp.eq.s32.totalorder %v5333_v46, %v11275_v61  ;;  %v8806_v46 = vld [vmem:[#allocation12 + $0x38] sm:$0xff]  }
 0xf06   : > { %8448 = vmatprep.subr.bf16.mxu1 %v9083_v18  ;;  %vm5367_vm10 = vmand %vm11416_vm12, %vm5351_vm7  ;;  %vm11458_vm7 = vcmp.eq.s32.totalorder %v5302_v53, %v11280_v1 }
 0xf07   : > { %8109 = vmatpush3.bf16.msra.mxu0 %v8794_v11  ;;  %v5337_v11 = vshra.s32 %v9877_v15, 6 }
 0xf08   : > { %8110 = vmatprep.subr.bf16.mxu0 %v9080_v0 }
 0xf09   : > { %8450 = vmatpush3.bf16.msk.msra.mxu1 %vm8449_vm11, %v9082_v45 }
 0xf0a   : > { %8451 = vmatprep.subr.bf16.mxu1 %v9083_v18 }
 0xf0b   : > { %8111 = vmatpush3.bf16.msra.mxu0 %v8795_v16 }
 0xf0c   : > { %8112 = vmatprep.subr.bf16.mxu0 %v9080_v0 }
 0xf0f   : > { %8113 = vmatpush3.bf16.msra.mxu0 %v8796_v28  ;;  %v5305_v28 = vand.u32 63, %v9922_v26 }
 0xf10   : > { %8114 = vmatprep.subr.bf16.mxu0 %v9080_v0 }
 0xf13   : > { %8115 = vmatpush3.bf16.msra.mxu0 %v8797_v20  ;;  %v5338_v20 = vshra.s32 %v9922_v26, 6  ;;  %v8816_v26 = vld [vmem:[#allocation13 + $0x30] sm:$0xff]  }
 0xf14   : > { %8116 = vmatprep.subr.bf16.mxu0 %v9080_v0 }
 0xf17   : > { %8117 = vmatpush3.bf16.msra.mxu0 %v8798_v31  ;;  %v8813_v31 = vld [vmem:[#allocation13] sm:$0xff]  }
 0xf18   : > { %8118 = vmatprep.subr.bf16.mxu0 %v9080_v0 }
 0xf1b   : > { %8119 = vmatpush3.bf16.msra.mxu0 %v8799_v34  ;;  %v5306_v34 = vand.u32 63, %v9925_v29 }
 0xf1c   : > { %8466 = vmatprep.subr.bf16.mxu0 %v9083_v18 }
 0xf1e   : > { %8121 = vmatmul.mubr.bf16.vlgmr.msra.gmra.mrb[72].mxu0 %v5177_v59  ;;  %v5339_v59 = vshra.s32 %v9925_v29, 6  ;;  %v8817_v29 = vld [vmem:[#allocation13 + $0x10] sm:$0xff]  }
 0xf1f   : > { %8191 = vmatprep.mubr.msk.f32.mxu0 %vm9081_vm0, %v9080_v0  ;;  %8468 = vmatpush3.bf16.msk.msra.mxu0 %vm8467_vm15, %v9082_v45  ;;  %vm8470_vm15 = vmpackc.low %vm5412_vm14, %vm5411_vm9  ;;  %vm11403_vm9 = vcmp.eq.s32.totalorder %v5299_v35, %v11280_v1  ;;  %v8800_v35 = vld [vmem:[#allocation12 + $0x20] sm:$0xff]  }
 0xf20   : > { %8469 = vmatprep.subr.bf16.mxu0 %v9083_v18  ;;  %vm5414_vm14 = vmand %vm11374_vm13, %vm5398_vm2 }
 0xf21   : > { %vm5366_vm13 = vmand %vm11403_vm9, %vm11408_vm4  ;;  %vm11450_vm4 = vcmp.eq.s32.totalorder %v5334_v50, %v11275_v61 }
 0xf22   : > { %vm8452_vm2 = vmpackc.low %vm5367_vm10, %vm5366_vm13  ;;  %vm11471_vm13 = vcmp.eq.s32.totalorder %v5334_v50, %v11285_v7  ;;  %vm5402_vm10 = vcmp.eq.s32.totalorder %v5335_v6, %v11285_v7 }
 0xf23   : > { %8471 = vmatpush3.bf16.msk.msra.mxu0 %vm8470_vm15, %v9082_v45  ;;  %vm8473_vm15 = vmpackc.low %vm5414_vm14, %vm5413_vm8  ;;  %8453 = vmatpush3.bf16.msk.msra.mxu1 %vm8452_vm2, %v9082_v45  ;;  %vm11445_vm8 = vcmp.eq.s32.totalorder %v5301_v49, %v11280_v1 }
 0xf24   : > { %8472 = vmatprep.subr.bf16.mxu0 %v9083_v18  ;;  %vm5415_vm11 = vmand %vm11403_vm9, %vm11429_vm6  ;;  %8454 = vmatprep.subr.bf16.mxu1 %v9083_v18  ;;  %vm5353_vm9 = vcmp.eq.s32.totalorder %v5335_v6, %v11275_v61 }
 0xf25   : > { %vm5416_vm14 = vmand %vm11416_vm12, %vm5400_vm3 }
 0xf26   : > { %vm5368_vm12 = vmand %vm11445_vm8, %vm11450_vm4  ;;  %vm11492_vm4 = vcmp.eq.s32.totalorder %v5336_v13, %v11275_v61 }
 0xf27   : > { %8474 = vmatpush3.bf16.msk.msra.mxu0 %vm8473_vm15, %v9082_v45  ;;  %vm8476_vm15 = vmpackc.low %vm5416_vm14, %vm5415_vm11  ;;  %vm11487_vm11 = vcmp.eq.s32.totalorder %v5303_v54, %v11280_v1  ;;  %v8809_v54 = vld [vmem:[#allocation12 + $0x48] sm:$0xff]  }
 0xf28   : > { %8475 = vmatprep.subr.bf16.mxu0 %v9083_v18  ;;  %vm5369_vm6 = vmand %vm11458_vm7, %vm5353_vm9  ;;  %vm11500_vm9 = vcmp.eq.s32.totalorder %v5304_v56, %v11280_v1  ;;  %v5890_v56 = vld [vmem:[#allocation2 + $0x2] sm:$0x1] }
 0xf29   : > { %vm8455_vm3 = vmpackc.low %vm5369_vm6, %vm5368_vm12  ;;  %vm11513_vm12 = vcmp.eq.s32.totalorder %v5336_v13, %v11285_v7  ;;  %vm5404_vm6 = vcmp.eq.s32.totalorder %v5337_v11, %v11285_v7  ;;  %v8810_v13 = vld [vmem:[#allocation12 + $0x50] sm:$0xff]  }
 0xf2a   : > { %8456 = vmatpush3.bf16.msk.msra.mxu1 %vm8455_vm3, %v9082_v45  ;;  %vm5417_vm2 = vmand %vm11445_vm8, %vm11471_vm13  ;;  %vm5355_vm8 = vcmp.eq.s32.totalorder %v5337_v11, %v11275_v61  ;;  %v5891_v11 = vpack.c.bf16 %v5890_v56, %v5890_v56 }
 0xf2b   : > { %8477 = vmatpush3.bf16.msk.msra.mxu0 %vm8476_vm15, %v9082_v45  ;;  %vm5418_vm14 = vmand %vm11458_vm7, %vm5402_vm10  ;;  %8457 = vmatprep.subr.bf16.mxu1 %v9083_v18 }
 0xf2c   : > { %8478 = vmatprep.subr.bf16.mxu0 %v9083_v18  ;;  %vm8479_vm15 = vmpackc.low %vm5418_vm14, %vm5417_vm2  ;;  %vm11529_vm2 = vcmp.eq.s32.totalorder %v5305_v28, %v11280_v1 }
 0xf2d   : > { %vm5370_vm7 = vmand %vm11487_vm11, %vm11492_vm4  ;;  %vm11534_vm4 = vcmp.eq.s32.totalorder %v5338_v20, %v11275_v61 }
 0xf2e   : > { %vm5371_vm13 = vmand %vm11500_vm9, %vm5355_vm8  ;;  %vm11542_vm8 = vcmp.eq.s32.totalorder %v5306_v34, %v11280_v1  ;;  %v8814_v34 = vld [vmem:[#allocation13 + $0x28] sm:$0xff]  }
 0xf2f   : > { %8480 = vmatpush3.bf16.msk.msra.mxu0 %vm8479_vm15, %v9082_v45  ;;  %vm8458_vm10 = vmpackc.low %vm5371_vm13, %vm5370_vm7  ;;  %vm11555_vm7 = vcmp.eq.s32.totalorder %v5338_v20, %v11285_v7  ;;  %vm5406_vm13 = vcmp.eq.s32.totalorder %v5339_v59, %v11285_v7  ;;  %v8812_v20 = vld [vmem:[#allocation13 + $0x20] sm:$0xff]  }
 0xf30   : > { %8481 = vmatprep.subr.bf16.mxu0 %v9083_v18  ;;  %8459 = vmatpush3.bf16.msk.msra.mxu1 %vm8458_vm10, %v9082_v45  ;;  %vm5419_vm3 = vmand %vm11487_vm11, %vm11513_vm12  ;;  %vm5357_vm11 = vcmp.eq.s32.totalorder %v5339_v59, %v11275_v61  ;;  %v8815_v59 = vld [vmem:[#allocation13 + $0x8] sm:$0xff]  }
 0xf31   : > { %vm5420_vm14 = vmand %vm11500_vm9, %vm5404_vm6  ;;  %8460 = vmatprep.subr.bf16.mxu1 %v9083_v18 }
 0xf32   : > { %vm8482_vm15 = vmpackc.low %vm5420_vm14, %vm5419_vm3  ;;  %vm11571_vm3 = vcmp.eq.s32.totalorder %v5307_v62, %v11280_v1  ;;  %v8819_v62 = vld [vmem:[#allocation13 + $0x18] sm:$0xff]  }
 0xf33   : > { %8483 = vmatpush3.bf16.msk.msra.mxu0 %vm8482_vm15, %v9082_v45  ;;  %vm5372_vm9 = vmand %vm11529_vm2, %vm11534_vm4  ;;  %vm5358_vm4 = vcmp.eq.s32.totalorder %v5340_v63, %v11275_v61  ;;  %vm5359_vm15 = vcmp.eq.s32.totalorder %v5341_v8, %v11275_v61 }
 0xf34   : > { %8484 = vmatprep.subr.bf16.mxu0 %v9083_v18  ;;  %vm5373_vm12 = vmand %vm11542_vm8, %vm5357_vm11  ;;  %vm11580_vm11 = vcmp.eq.s32.totalorder %v5308_v3, %v11280_v1 }
 0xf35   : > { %vm8461_vm6 = vmpackc.low %vm5373_vm12, %vm5372_vm9  ;;  %vm5408_vm12 = vcmp.eq.s32.totalorder %v5341_v8, %v11285_v7 }
 0xf36   : > { %8462 = vmatpush3.bf16.msk.msra.mxu1 %vm8461_vm6, %v9082_v45  ;;  %vm5421_vm10 = vmand %vm11529_vm2, %vm11555_vm7  ;;  %vm5407_vm7 = vcmp.eq.s32.totalorder %v5340_v63, %v11285_v7  ;;  %v5975_v63 = vld [vmem:[#allocation3] sm:$0x1] }
 0xf37   : > { %vm5422_vm14 = vmand %vm11542_vm8, %vm5406_vm13  ;;  %8463 = vmatprep.subr.bf16.mxu1 %v9083_v18  ;;  %v5976_v2 = vpack.c.bf16 %v5975_v63, %v5975_v63 }
 0xf38   : > { %vm8485_vm2 = vmpackc.low %vm5422_vm14, %vm5421_vm10  ;;  %vm5582_vm14 = vcmask 15360  }
 0xf39   : > { %8486 = vmatpush3.bf16.msk.msra.mxu0 %vm8485_vm2, %v9082_v45  ;;  %vm5374_vm9 = vmand %vm11571_vm3, %vm5358_vm4 }
 0xf3a   : > { %8487 = vmatprep.subr.bf16.mxu0 %v9083_v18  ;;  %vm5375_vm8 = vmand %vm11580_vm11, %vm5359_vm15 }
 0xf3b   : > { %vm8464_vm13 = vmpackc.low %vm5375_vm8, %vm5374_vm9 }
 0xf3c   : > { %8465 = vmatpush3.bf16.msk.msra.mxu1 %vm8464_vm13, %v9082_v45  ;;  %vm5423_vm6 = vmand %vm11571_vm3, %vm5407_vm7  ;;  %vm5585_vm3 = vcmask 1041408  }
 0xf3d   : > { %vm5424_vm10 = vmand %vm11580_vm11, %vm5408_vm12  ;;  %8194 = vmatprep.subr.mxu1 %v9080_v0 }
 0xf3e   : > { %vm8488_vm4 = vmpackc.low %vm5424_vm10, %vm5423_vm6 }
 0xf3f   : > { %8489 = vmatpush3.bf16.msk.msra.mxu0 %vm8488_vm4, %v9082_v45 }
 0xf40   : > { %8216 = vmatprep.subr.bf16.mxu0 %v9080_v0 }
 0xfd1   : > { %v5082_v18 = vpop.f32.mrb[68].mxu0 }
 0xfd2   : > { %v5170_v61 = vpop.f32.mrb[68].mxu1  ;;  %v8082_v7 = vpop.f32.mrb[69].mxu0 }
 0xfd3   : > { %v5171_v1 = vadd.f32 %v5170_v61, %v5082_v18  ;;  %v8102_v10 = vpop.f32.mrb[69].mxu1  ;;  %v5085_v12 = vpop.f32.mrb[70].mxu0 }
 0xfd4   : > { %v5173_v24 = vpop.f32.mrb[70].mxu1  ;;  %v8083_v25 = vpop.f32.mrb[71].mxu0 }
 0xfd5   : > { %v8103_v27 = vpop.f32.mrb[71].mxu1 }
 0xff1   : > { %v5277_v17 = vpop.f32.mrb[72].mxu0 }
 0xff2   : > { %v5283_v19 = vadd.f32 %v5277_v17, %v5171_v1  ;;  %v8122_v39 = vpop.f32.mrb[73].mxu0  ;;  %v5969_v1 = vld [vmem:[%s12043_s22] sm:$0x1]  ;;  %s8992_s22 = scalar_lea.vmem %s11667_s24, 16 }
 0xff3   : > { %v5280_v21 = vpop.f32.mrb[74].mxu0  ;;  %v8821_v39 = vld [vmem:[#allocation13 + $0x48] sm:$0xff]   ;;  %p8993_p13 = scmp.ne.s32.totalorder %s11667_s24, %s8992_s22  ;;  %p9000_p0 = scmp.lt.s32.totalorder %s8998_s27, %s8992_s22 }
 0xff4   : > { %v5291_v45 = vadd.f32 %v6861_v37, %v5283_v19  ;;  %v8123_v22 = vpop.f32.mrb[75].mxu0  ;;  %v8820_v37 = vld [vmem:[#allocation13 + $0x40] sm:$0xff]   ;;  %v8822_v21 = vld [vmem:[#allocation13 + $0x50] sm:$0xff]  }
 0xff5   : > { %v6130_v22 = vld [vmem:[#allocation3 + $0x2] sm:$0x1]  ;;  %p8994_p6 = pnand %p8993_p13, %p12049_p1  ;;  %p9001_p10 = por %p9000_p0, %p8999_p5 }
 0xff6   : > { %v5292_v23 = vmax.f32 %v5291_v45, 0.0  ;;  %v8823_v45 = vld [vmem:[#allocation13 + $0x58] sm:$0xff]  }
 0xff7   : > { %p8995_p9 = pneg %p8994_p6 }
 0xff8   : > { %8157 = vmatmul.mubr.f32.vlgmr.msra.gmra.mrb[54].mxu1 %v5292_v23  ;;  %8192 = vmatmul.mubr.f32.vlgmr.msra.gmra.mrb[54].mxu0 %v5292_v23  ;;  %v6131_v23 = vpack.c.bf16 %v6130_v22, %v6130_v22 }
 0xff9   : > { %8196 = vmatprep.mubr.msk.f32.mxu1 %vm9081_vm0, %v9080_v0  ;;  %8224 = vmatprep.mubr.msk.bf16.mxu0 %vm9081_vm0, %v9080_v0  ;;  %p9002_p2 = pnand %p9001_p10, %p8995_p9 }
 0xffa   : > { %8217 = vmatpush3.bf16.msra.mxu0 %v8801_v40 }
 0xffb   : > { %8218 = vmatprep.subr.bf16.mxu0 %v9080_v0 }
 0xffe   : > { %8219 = vmatpush3.bf16.msra.mxu0 %v8803_v41 }
 0xfff   : > { %8220 = vmatprep.subr.bf16.mxu0 %v9080_v0 }
0x10cb   : > { %v5507_v30 = vpop.f32.mrb[54].mxu1  ;;  %v5577_v32 = vpop.f32.mrb[54].mxu0 }
0x10cc   : > { %v5581_v48 = vmax.f32 %v5507_v30, %v5577_v32  ;;  %v8158_v51 = vpop.f32.mrb[55].mxu1  ;;  %v8193_v33 = vpop.f32.mrb[55].mxu0 }
0x10ce   : > { %8195 = vmatpush3.msk.msra.mxu1 %vm5585_vm3, %v5581_v48 }
0x10cf   : > { %8197 = vmatmul.mubr.msk.f32.vlgmr.msra.gmra.mrb[72].mxu1 %vm5582_vm14, %v10065_v36  ;;  %8199 = vmatprep.subr.mxu1 %v9080_v0  ;;  %v8802_v36 = vld [vmem:[#allocation12 + $0x28] sm:$0xff]  }
0x10d0   : > { %8200 = vmatpush3.msk.msra.mxu1 %vm5585_vm3, %v5581_v48  ;;  %8201 = vmatprep.mubr.msk.f32.mxu1 %vm9081_vm0, %v9080_v0 }
0x10d1   : > { %8204 = vmatprep.subr.bf16.mxu1 %v9080_v0 }
0x10d3   : > { %8202 = vmatmul.mubr.msk.f32.vlgmr.msra.gmra.mrb[74].mxu1 %vm5582_vm14, %v10073_v38  ;;  %v8805_v38 = vld [vmem:[#allocation12 + $0x10] sm:$0xff]  }
0x10d4   : > { %8205 = vmatpush3.bf16.msra.mxu1 %v8800_v35  ;;  %8212 = vmatprep.mubr.msk.bf16.mxu1 %vm9081_vm0, %v9080_v0 }
0x10d5   : > { %8206 = vmatprep.subr.bf16.mxu1 %v9080_v0  ;;  %8221 = vmatpush3.bf16.msra.mxu0 %v8805_v38 }
0x10d6   : > { %8222 = vmatprep.subr.bf16.mxu0 %v9080_v0 }
0x10d8   : > { %8207 = vmatpush3.bf16.msra.mxu1 %v8802_v36 }
0x10d9   : > { %8208 = vmatprep.subr.bf16.mxu1 %v9080_v0  ;;  %8223 = vmatpush3.bf16.msra.mxu0 %v8807_v57 }
0x10da   : > { %8240 = vmatprep.subr.bf16.mxu0 %v9080_v0 }
0x10dc   : > { %8209 = vmatpush3.bf16.msra.mxu1 %v8804_v44  ;;  %8225 = vmatmul.mubr.msk.bf16.vlgmr.msra.gmra.mrb[76].mxu0 %vm2015_vm5, %v5736_v47 }
0x10dd   : > { %8210 = vmatprep.subr.bf16.mxu1 %v9080_v0  ;;  %8248 = vmatprep.mubr.msk.bf16.mxu0 %vm9081_vm0, %v9080_v0 }
0x10de   : > { %8241 = vmatpush3.bf16.msra.mxu0 %v8812_v20 }
0x10df   : > { %8242 = vmatprep.subr.bf16.mxu0 %v9080_v0 }
0x10e0   : > { %8211 = vmatpush3.bf16.msra.mxu1 %v8806_v46 }
0x10e1   : > { %8228 = vmatprep.subr.bf16.mxu1 %v9080_v0 }
0x10e2   : > { %8243 = vmatpush3.bf16.msra.mxu0 %v8814_v34 }
0x10e3   : > { %8244 = vmatprep.subr.bf16.mxu0 %v9080_v0 }
0x10e6   : > { %8245 = vmatpush3.bf16.msra.mxu0 %v8816_v26 }
0x10e7   : > { %8246 = vmatprep.subr.bf16.mxu0 %v9080_v0 }
0x10ea   : > { %8247 = vmatpush3.bf16.msra.mxu0 %v8818_v60 }
0x10eb   : > { %8264 = vmatprep.subr.bf16.mxu0 %v9080_v0 }
0x11a2   : > { %v5655_v49 = vpop.f32.mrb[72].mxu1 }
0x11a3   : > { %v8198_v50 = vpop.f32.mrb[73].mxu1 }
0x11a6   : > { %v5727_v52 = vpop.f32.mrb[74].mxu1 }
0x11a7   : > { %v5731_v53 = vmax.f32 %v5655_v49, %v5727_v52  ;;  %v8203_v6 = vpop.f32.mrb[75].mxu1 }
0x11a9   : > { %5734 = vst.msk [vmem:[#allocation2 + $0x1] sm:$0x1] %vm2012_vm1, %v5731_v53 }
0x11af   : > { %v5884_v14 = vpop.f32.mrb[76].mxu0 }
0x11b0   : > { %v5745_v4 = vld [vmem:[#allocation2 + $0x1] sm:$0x1]  ;;  %v8226_v15 = vpop.f32.mrb[77].mxu0 }
0x11b1   : > { %v5746_v9 = vpack.c.bf16 %v5745_v4, %v5745_v4  ;;  %v5887_v16 = vpop.f32.mrb[78].mxu0 }
0x11b2   : > { %v8227_v28 = vpop.f32.mrb[79].mxu0 }
0x11b3   : > { %8213 = vmatmul.mubr.msk.bf16.vlgmr.msra.gmra.mrb[76].mxu1 %vm2015_vm5, %v5746_v9 }
0x11b4   : > { %8229 = vmatpush3.bf16.msra.mxu1 %v8808_v5  ;;  %8236 = vmatprep.mubr.msk.bf16.mxu1 %vm9081_vm0, %v9080_v0 }
0x11b5   : > { %8230 = vmatprep.subr.bf16.mxu1 %v9080_v0 }
0x11b8   : > { %8231 = vmatpush3.bf16.msra.mxu1 %v8809_v54 }
0x11b9   : > { %8232 = vmatprep.subr.bf16.mxu1 %v9080_v0 }
0x11bc   : > { %8233 = vmatpush3.bf16.msra.mxu1 %v8810_v13 }
0x11bd   : > { %8234 = vmatprep.subr.bf16.mxu1 %v9080_v0 }
0x11c0   : > { %8235 = vmatpush3.bf16.msra.mxu1 %v8811_v55 }
0x11c1   : > { %8252 = vmatprep.subr.bf16.mxu1 %v9080_v0 }
0x11c3   : > { %8237 = vmatmul.mubr.msk.bf16.vlgmr.msra.gmra.mrb[80].mxu1 %vm2015_vm5, %v5891_v11 }
0x11c4   : > { %8260 = vmatprep.mubr.msk.bf16.mxu1 %vm9081_vm0, %v9080_v0  ;;  %8253 = vmatpush3.bf16.msra.mxu1 %v8813_v31 }
0x11c5   : > { %8254 = vmatprep.subr.bf16.mxu1 %v9080_v0 }
0x11c8   : > { %8255 = vmatpush3.bf16.msra.mxu1 %v8815_v59 }
0x11c9   : > { %8256 = vmatprep.subr.bf16.mxu1 %v9080_v0 }
0x11cc   : > { %8257 = vmatpush3.bf16.msra.mxu1 %v8817_v29 }
0x11cd   : > { %8258 = vmatprep.subr.bf16.mxu1 %v9080_v0 }
0x11d0   : > { %8259 = vmatpush3.bf16.msra.mxu1 %v8819_v62 }
0x11d3   : > { %8261 = vmatmul.mubr.msk.bf16.vlgmr.msra.gmra.mrb[84].mxu1 %vm2015_vm5, %v5976_v2 }
0x1286   : > { %v5817_v3 = vpop.f32.mrb[76].mxu1 }
0x1287   : > { %v5885_v8 = vadd.f32 %v5884_v14, %v5817_v3  ;;  %v8214_v42 = vpop.f32.mrb[77].mxu1 }
0x1288   : > { %v5820_v43 = vpop.f32.mrb[78].mxu1 }
0x1289   : > { %v8215_v18 = vpop.f32.mrb[79].mxu1 }
0x1296   : > { %v5962_v61 = vpop.f32.mrb[80].mxu1 }
0x1297   : > { %v5968_v7 = vadd.f32 %v5962_v61, %v5885_v8  ;;  %v8238_v10 = vpop.f32.mrb[81].mxu1 }
0x1298   : > { %v5965_v12 = vpop.f32.mrb[82].mxu1 }
0x1299   : > { %v5970_v24 = vadd.f32 %v5969_v1, %v5968_v7  ;;  %v8239_v25 = vpop.f32.mrb[83].mxu1 }
0x129b   : > { %v5971_v27 = vmax.f32 %v5970_v24, 0.0 }
0x129d   : > { %5974 = vst.msk [vmem:[#allocation3 + $0x1] sm:$0x1] %vm2012_vm1, %v5971_v27 }
0x12a4   : > { %v5985_v17 = vld [vmem:[#allocation3 + $0x1] sm:$0x1] }
0x12a5   : > { %v5986_v19 = vpack.c.bf16 %v5985_v17, %v5985_v17 }
0x12a6   : > { %v6124_v30 = vpop.f32.mrb[84].mxu1 }
0x12a7   : > { %8249 = vmatmul.mubr.msk.bf16.vlgmr.msra.gmra.mrb[80].mxu0 %vm2015_vm5, %v5986_v19  ;;  %v8262_v32 = vpop.f32.mrb[85].mxu1 }
0x12a8   : > { %8265 = vmatpush3.bf16.msra.mxu0 %v8820_v37  ;;  %8272 = vmatprep.mubr.msk.bf16.mxu0 %vm9081_vm0, %v9080_v0  ;;  %v6127_v48 = vpop.f32.mrb[86].mxu1 }
0x12a9   : > { %8266 = vmatprep.subr.bf16.mxu0 %v9080_v0  ;;  %v8263_v51 = vpop.f32.mrb[87].mxu1 }
0x12ac   : > { %8267 = vmatpush3.bf16.msra.mxu0 %v8821_v39 }
0x12ad   : > { %8268 = vmatprep.subr.bf16.mxu0 %v9080_v0 }
0x12b0   : > { %8269 = vmatpush3.bf16.msra.mxu0 %v8822_v21 }
0x12b1   : > { %8270 = vmatprep.subr.bf16.mxu0 %v9080_v0  ;;  %v6209_v0 = vld [vmem:[%s12045_s20] sm:$0x1] }
0x12b4   : > { %8271 = vmatpush3.bf16.msra.mxu0 %v8823_v45 }
0x12b7   : > { %8273 = vmatmul.mubr.msk.bf16.vlgmr.msra.gmra.mrb[84].mxu0 %vm2015_vm5, %v6131_v23 }
0x137a   : > { %v6057_v33 = vpop.f32.mrb[80].mxu0 }
0x137b   : > { %v6125_v35 = vadd.f32 %v6124_v30, %v6057_v33  ;;  %v8250_v40 = vpop.f32.mrb[81].mxu0 }
0x137c   : > { %v6060_v36 = vpop.f32.mrb[82].mxu0 }
0x137d   : > { %v8251_v41 = vpop.f32.mrb[83].mxu0 }
0x138a   : > { %v6202_v44 = vpop.f32.mrb[84].mxu0 }
0x138b   : > { %v6208_v38 = vadd.f32 %v6202_v44, %v6125_v35  ;;  %v8274_v46 = vpop.f32.mrb[85].mxu0 }
0x138c   : > { %v6205_v57 = vpop.f32.mrb[86].mxu0 }
0x138d   : > { %v6210_v58 = vadd.f32 %v6209_v0, %v6208_v38  ;;  %v8275_v47 = vpop.f32.mrb[87].mxu0 }
0x138f   : > { %v6211_v49 = vmax.f32 %v6210_v58, 0.0 }
0x1391   : > { %6212 = vst.msk [vmem:[%s844_s4] sm:$0x1] %vm2012_vm1, %v6211_v49 }
0x1392   : > { %9005 = shalt.err (!%p9002_p2)
}
0x1393   : > { %s9006_s5 = scalar_lea.hbm %s11665_s6, 16  ;;  %s9010_s8 = scalar_lea.hbm %s12048_s18, 32 }
0x1394   : > { %p9007_p3 = scmp.ne.s32.totalorder %s11665_s6, %s9006_s5  ;;  %p9011_p7 = scmp.lt.u32.totalorder %s11665_s6, %s12048_s18 }
0x1395   : > { %p9012_p8 = scmp.lt.u32.totalorder %s9010_s8, %s9006_s5  ;;  %p9014_p13 = scmp.lt.u32.totalorder %s9006_s5, %s11665_s6 }
0x1396   : > { %p9008_p4 = pnand %p9007_p3, %p12049_p1 }
0x1397   : > { %p9013_p11 = por %p9012_p8, %p9011_p7 }
0x1398   : > { %p9009_p12 = pneg %p9008_p4 }
0x1399   : > { %p9015_p6 = por %p9014_p13, %p9013_p11 }
0x139b   : > { %p9016_p9 = pnand %p9015_p6, %p9009_p12 }
0x139d   : > { %9019 = shalt.err (!%p9016_p9)
}
0x139e   : > { %8514 = dma.vmem_to_hbm [thread:$0]  (%p12049_p1), %s11667_s24, 16, %s11665_s6, %s6214_s25  }
0x139f PF: > { %s12050_s26 = sld [smem:[#allocation24_spill]]  ;;  %s12051_s30 = sld [smem:[#allocation21_spill]] }
0x13a0   : > { %s12052_s22 = sld [smem:[#allocation28_spill]] }
0x13a5   : > { %p8551_p5 = scmp.ge.s32.totalorder %s12050_s26, 2  ;;  %s6238_s7 = sand.u32 1, %s12051_s30  }
0x13a6   : > { %p12053_p0 = scmp.ne.s32.totalorder %s12052_s22, 0  ;;  %s6239_s2 = scalar_lea.sflag [#allocation6], %s6238_s7 }
0x13a8   : > { %p8536_p10 = pnand %p8551_p5, %p12053_p0 }
0x13aa   : > { %9053 = dma.done.wait (!%p8536_p10), %s6239_s2, 16  }
0x13ab   : > { %9055 = vsyncadd (!%p8536_p10), %s6239_s2, 4294967280  ;;  %s12054_s30 = sld [smem:[#allocation25_spill]]  ;;  %s12055_s29 = sld [smem:[#allocation22_spill]] }
0x13ac   : > { %s12056_s2 = sld [smem:[#allocation23_spill]]  ;;  %s12057_s6 = sld [smem:[#allocation26_spill]] }
0x13b1   : > { %p39_p2 = scmp.ge.s32.totalorder %s12054_s30, 4  }
0x13b3   :  { %41 = sbr.rel (!%p39_p2) target bundleno = 24 (0x18), region = 204 }
0x13ba   :  { %6243 = vsyncpa [#allocation5], 1 }
0x13bb   :  { %6245 = vsyncpa [#allocation5 + $0x1], 1 }
0x13bc   :  { %6246 = vsyncpa [#allocation8], 1 }
0x13bd   :  { %6247 = vsyncpa [#allocation11], 1 }
0x13be   :  { %6248 = vsyncpa [#allocation14], 1 }
0x13bf   :  { %6249 = vsyncpa [#allocation6], 1 }
0x13c0   :  { %6251 = vsyncpa [#allocation6 + $0x1], 1 }

</bundles_post_ra>
